<compile_context>
chip_gen: v5e
topology: v5e:2x2
jax: 0.10.0
libtpu: 0.0.40
codegen_flags: <defaults>
</compile_context>

<pallas_src>
import functools
import math

import jax
import jax.numpy as jnp
from jax.experimental import pallas as pl
from jax.experimental.pallas import tpu as pltpu


def _ot_layer_kernel(xp_ref, wk_ref, g_ref, mfw_ref, wl_ref, b_ref, o_ref, *,
                     heads, out_size, block_b, max_iter):
    # xp_ref : (S, block_b*D)      x for this step's batch slab, packed batch-on-lanes
    # wk_ref : (block_b*D, L)      OTK weights, block-diag over batch, pre-scaled by 1/eps
    # g_ref  : (L, L)              same-(batch,head) group indicator (for grouped sums, MXU)
    # mfw_ref: (L, block_b*D)      diag-batch mask for the wide feats matmul
    # wl_ref : (H, block_b*D, O)   Linear weight per head, replicated over the packed batch
    # b_ref  : (1, O)              Linear bias
    # o_ref  : (block_b*M, O)
    S, BD = xp_ref.shape
    M = out_size
    BM = block_b * M
    L = heads * BM                       # lane width of the packed Sinkhorn state
    log_a = math.log(M / S)              # log row-marginal = log(out_size / in_size)

    xp = xp_ref[...]                                                   # (S, block_b*D)
    # K[s, h*BM + b*M + m] = <x[b,s,:], w_otk[h,m,:]> / eps  -- one MXU matmul for everything.
    K = jnp.dot(xp, wk_ref[...], preferred_element_type=jnp.float32)   # (S, L)
    G = g_ref[...]                                                     # (L, L)

    # Loop-invariant group bookkeeping (hoisted out of the Sinkhorn loop).
    lane = jax.lax.broadcasted_iota(jnp.int32, (S, L), 1)
    group_start = (lane % M) == 0
    neg_inf = jnp.float32(-jnp.inf)

    def grouped_max(z):
        # Max within each aligned M-lane group, broadcast back to every lane of that group.
        r = z
        sh = 1
        while sh < M:                    # pass 1: windowed max over the next `sh` lanes
            r = jnp.maximum(r, pltpu.roll(r, shift=L - sh, axis=1))
            sh *= 2
        r = jnp.where(group_start, r, neg_inf)
        sh = 1
        while sh < M:                    # pass 2: propagate group-start value across the group
            r = jnp.maximum(r, pltpu.roll(r, shift=sh, axis=1))
            sh *= 2
        return r

    # --- log-domain Sinkhorn, batch x heads x M packed on the lane axis ------------------------
    v = jnp.zeros((1, L), jnp.float32)
    A = K                                # A == K + u (u = 0 initially)
    for _ in range(max_iter):
        T = K + v                                                      # (S, L)
        gmax = grouped_max(T)
        p = jnp.exp(T - gmax)
        gsum = jnp.dot(p, G, preferred_element_type=jnp.float32)       # grouped sum, broadcast
        u = log_a - (jnp.log(gsum) + gmax)                             # constant within group
        A = K + u
        vmax = jnp.max(A, axis=0, keepdims=True)
        v = -(jnp.log(jnp.sum(jnp.exp(A - vmax), axis=0, keepdims=True)) + vmax)
    P = jnp.exp(A + v)                                                 # (S, L) transport plans

    # feats_wide[(h,b,m), (b',d)] = sum_s P[s,(h,b,m)] * x[b',s,d]; mask keeps b'==b blocks.
    fw = jax.lax.dot_general(P, xp, (((0,), (0,)), ((), ())),
                             preferred_element_type=jnp.float32)       # (L, block_b*D)
    fw = fw * mfw_ref[...]

    # y[(b,m), o] = sum_h feats[(h,b,m), :] @ Wl_h + bias, then ReLU.
    y = jnp.dot(fw[0:BM, :], wl_ref[0], preferred_element_type=jnp.float32)
    for h in range(1, heads):
        y = y + jnp.dot(fw[h * BM:(h + 1) * BM, :], wl_ref[h],
                        preferred_element_type=jnp.float32)
    y = y + b_ref[...]
    o_ref[...] = jnp.maximum(y, 0.0)
    # TODO(synk): training-mode Dropout(p=0.4) not implemented; inference semantics only.


def _pick_block_b(batch, heads, out_size, in_dim):
    """Pick how many batch elements to pack per grid step."""
    lane_group = heads * out_size
    target = max(1, 128 // lane_group)          # fill the 128-lane vreg axis
    divisors = [d for d in range(1, batch + 1) if batch % d == 0]
    # keep the packed-x BlockSpec lane dim legal: block == full array or multiple of 128 lanes
    legal = [d for d in divisors if d == batch or (d * in_dim) % 128 == 0]
    good = [d for d in legal if d <= target] or legal
    multi = [d for d in good if batch // d >= 2]  # keep >=2 parallel steps for v7x's 2 TCs
    return max(multi) if multi else max(good)


def ot_layer(x, w_otk, w_lin, b_lin, *, eps=0.1, max_iter=10, block_b=None):
    """x: (B,S,D); w_otk: (H,M,D); w_lin: (out_dim, H*D) torch layout; b_lin: (out_dim,)."""
    x = jnp.asarray(x, jnp.float32)
    B, S, D = x.shape
    H, M, _ = w_otk.shape
    O = w_lin.shape[0]
    if block_b is None:
        block_b = _pick_block_b(B, H, M, D)
    assert B % block_b == 0
    steps = B // block_b
    BM = block_b * M
    BD = block_b * D
    L = H * BM

    # ---- host-side layout plumbing (one-time, outside the kernel) ----
    # Packed x: xp[s, b*D + d] = x[b, s, d]
    xp = jnp.transpose(x, (1, 0, 2)).reshape(S, B * D)
    # OTK weights, block-diagonal over the packed batch, pre-scaled by 1/eps:
    #   wk[b*D + d, h*BM + b*M + m] = w_otk[h, m, d] / eps
    wk = (jnp.einsum("hmd,bc->bdhcm", jnp.asarray(w_otk, jnp.float32),
                     jnp.eye(block_b, dtype=jnp.float32)).reshape(BD, L) * (1.0 / eps))
    # Same-(batch,head) group indicator: G[j,i] = 1 iff j//M == i//M.
    gmat = jnp.kron(jnp.eye(L // M, dtype=jnp.float32), jnp.ones((M, M), jnp.float32))
    # Diag-batch mask for the wide feats matmul.
    row_b = (jnp.arange(L) % BM) // M
    col_b = jnp.arange(BD) // D
    mfw = (row_b[:, None] == col_b[None, :]).astype(jnp.float32)
    # Linear weight per head, replicated across the packed batch: wl[h, b*D+d, o] = w_lin[o, h*D+d]
    wl = jnp.tile(jnp.asarray(w_lin, jnp.float32).reshape(O, H, D).transpose(1, 2, 0),
                  (1, block_b, 1))
    b_row = jnp.asarray(b_lin, jnp.float32).reshape(1, O)

    kernel = functools.partial(_ot_layer_kernel, heads=H, out_size=M,
                               block_b=block_b, max_iter=max_iter)

    flops = 2 * steps * (S * BD * L                # K matmul
                         + max_iter * S * L * L    # grouped-sum matmuls in the Sinkhorn loop
                         + L * BD * S              # feats
                         + H * BM * BD * O)        # Linear
    transcendentals = steps * (max_iter * (2 * S * L + 2 * L) + S * L)
    bytes_accessed = 4 * (xp.size + wk.size + gmat.size + mfw.size + wl.size + O + B * M * O)

    out2d = pl.pallas_call(
        kernel,
        out_shape=jax.ShapeDtypeStruct((B * M, O), jnp.float32),
        grid_spec=pltpu.PrefetchScalarGridSpec(
            num_scalar_prefetch=0,
            grid=(steps,),
            in_specs=[
                pl.BlockSpec((S, BD), lambda i: (0, i)),         # packed x slab for this step
                pl.BlockSpec((BD, L), lambda i: (0, 0)),         # OTK weights (block-diag, /eps)
                pl.BlockSpec((L, L), lambda i: (0, 0)),          # group-sum indicator
                pl.BlockSpec((L, BD), lambda i: (0, 0)),         # feats diag-batch mask
                pl.BlockSpec((H, BD, O), lambda i: (0, 0, 0)),   # Linear weight per head
                pl.BlockSpec((1, O), lambda i: (0, 0)),          # Linear bias
            ],
            out_specs=pl.BlockSpec((BM, O), lambda i: (i, 0)),
        ),
        compiler_params=pltpu.CompilerParams(dimension_semantics=("parallel",)),
        cost_estimate=pl.CostEstimate(flops=flops, transcendentals=transcendentals,
                                      bytes_accessed=bytes_accessed),
    )(xp, wk, gmat, mfw, wl, b_row)
    return out2d.reshape(B, M, O)


def ot_layer_ref(x, w_otk, w_lin, b_lin, *, eps=0.1, max_iter=10):
    """Pure-JAX transcription of OTKernel(log_domain=True) + Linear + ReLU (eval mode)."""
    B, S, D = x.shape
    H, M, _ = w_otk.shape
    K = jnp.einsum("bsd,hmd->bhsm", x, w_otk).reshape(B * H, S, M)
    u = jnp.zeros((B * H, S), jnp.float32)
    v = jnp.zeros((B * H, M), jnp.float32)
    log_a = jnp.full((B * H, S), math.log(M / S), jnp.float32)

    def min_eps(u, v, axis):
        Z = (K + u[:, :, None] + v[:, None, :]) / eps
        return -jax.nn.logsumexp(Z, axis=axis)

    for _ in range(max_iter):
        u = eps * (log_a + min_eps(u, v, axis=-1)) + u
        v = eps * min_eps(u, v, axis=-2) + v
    P = jnp.exp((K + u[:, :, None] + v[:, None, :]) / eps).reshape(B, H, S, M)
    feats = jnp.einsum("bhsm,bsd->bmhd", P, x).reshape(B, M, H * D)
    y = feats @ w_lin.T + b_lin[None, None, :]
    return jnp.maximum(y, 0.0)


def _xavier_uniform(key, shape, fan_in, fan_out):
    bound = math.sqrt(6.0 / (fan_in + fan_out))
    return jax.random.uniform(key, shape, jnp.float32, -bound, bound)


if __name__ == "__main__":
    # Small shapes consistent with the module: in_dim=32, in_size=16, out_size=8, heads=2.
    # B=16 so the kernel packs 8 batch elements per grid step (8 * H*M = 128 lanes) and still
    # keeps 2 parallel grid steps for v7x's two TensorCores.
    B, S, D = 16, 16, 32       # batch, in_size (sequence), in_dim
    M, H = 8, 2                # out_size, heads
    out_dim = D                # default: out_dim = in_dim
    eps, max_iter = 0.1, 10

    key = jax.random.PRNGKey(0)
    k_x, k_w, k_l, k_b = jax.random.split(key, 4)

    x = jax.random.normal(k_x, (B, S, D), jnp.float32)
    # OTKernel.weight: (heads, out_size, in_dim); xavier_uniform (torch fans: M*D, H*D).
    w_otk = _xavier_uniform(k_w, (H, M, D), fan_in=M * D, fan_out=H * D)
    # nn.Linear(heads*in_dim, out_dim): weight (out_dim, H*D) xavier_uniform; default bias init.
    w_lin = _xavier_uniform(k_l, (out_dim, H * D), fan_in=H * D, fan_out=out_dim)
    b_bound = 1.0 / math.sqrt(H * D)
    b_lin = jax.random.uniform(k_b, (out_dim,), jnp.float32, -b_bound, b_bound)

    out = ot_layer(x, w_otk, w_lin, b_lin, eps=eps, max_iter=max_iter)
    out = jax.block_until_ready(out)

    ref = ot_layer_ref(x, w_otk, w_lin, b_lin, eps=eps, max_iter=max_iter)
    assert out.shape == (B, M, out_dim), out.shape
    err = float(jnp.max(jnp.abs(out - ref)))
    assert jnp.allclose(out, ref, rtol=5e-2, atol=5e-2), err

    print("KERNEL_OK")
</pallas_src>

<mosaic_0001>
module attributes {stable_mosaic.version = 11 : i64} {
  func.func @_ot_layer_kernel(%arg0: i32, %arg1: memref<16x256xf32, #tpu.memory_space<vmem>>, %arg2: memref<256x128xf32, #tpu.memory_space<vmem>>, %arg3: memref<128x128xf32, #tpu.memory_space<vmem>>, %arg4: memref<128x256xf32, #tpu.memory_space<vmem>>, %arg5: memref<2x256x32xf32, #tpu.memory_space<vmem>>, %arg6: memref<1x32xf32, #tpu.memory_space<vmem>>, %arg7: memref<64x32xf32, #tpu.memory_space<vmem>>) attributes {dimension_semantics = [#tpu.dimension_semantics<parallel>], iteration_bounds = array<i64: 2>, scalar_prefetch = 0 : i64, scratch_operands = 0 : i64, tpu.core_type = #tpu.core_type<tc>, window_params = [{transform_indices = @transform_0, window_bounds = array<i64: 16, 256>}, {pipeline_mode = #tpu.pipeline_mode<synchronous>, transform_indices = @transform_1, window_bounds = array<i64: 256, 128>}, {pipeline_mode = #tpu.pipeline_mode<synchronous>, transform_indices = @transform_2, window_bounds = array<i64: 128, 128>}, {pipeline_mode = #tpu.pipeline_mode<synchronous>, transform_indices = @transform_3, window_bounds = array<i64: 128, 256>}, {pipeline_mode = #tpu.pipeline_mode<synchronous>, transform_indices = @transform_4, window_bounds = array<i64: 2, 256, 32>}, {pipeline_mode = #tpu.pipeline_mode<synchronous>, transform_indices = @transform_5, window_bounds = array<i64: 1, 32>}, {transform_indices = @transform_6, window_bounds = array<i64: 64, 32>}]} {
    %c0 = arith.constant 0 : index
    %c0_0 = arith.constant 0 : index
    %0 = vector.load %arg1[%c0, %c0_0] : memref<16x256xf32, #tpu.memory_space<vmem>>, vector<16x256xf32>
    %c0_1 = arith.constant 0 : index
    %c0_2 = arith.constant 0 : index
    %1 = vector.load %arg2[%c0_1, %c0_2] : memref<256x128xf32, #tpu.memory_space<vmem>>, vector<256x128xf32>
    %cst = arith.constant dense<0.000000e+00> : vector<16x128xf32>
    %2 = tpu.matmul %0, %1, %cst {dimension_numbers = #tpu.dot_dimension_numbers<[1], [0], [0], [1], [0, 0, 1, 1], [], []>} : vector<16x256xf32>, vector<256x128xf32>, vector<16x128xf32> -> vector<16x128xf32>
    %c0_3 = arith.constant 0 : index
    %c0_4 = arith.constant 0 : index
    %3 = vector.load %arg3[%c0_3, %c0_4] : memref<128x128xf32, #tpu.memory_space<vmem>>, vector<128x128xf32>
    %4 = tpu.iota {dimensions = array<i32: 1>} : vector<16x128xi32>
    %c8_i32 = arith.constant 8 : i32
    %c0_i32 = arith.constant 0 : i32
    %5 = arith.cmpi eq, %c8_i32, %c0_i32 : i32
    %c1_i32 = arith.constant 1 : i32
    %6 = arith.select %5, %c1_i32, %c8_i32 : i32
    %7 = vector.broadcast %6 : i32 to vector<16x128xi32>
    %8 = arith.remsi %4, %7 : vector<16x128xi32>
    %c0_i32_5 = arith.constant 0 : i32
    %9 = vector.broadcast %c0_i32_5 : i32 to vector<16x128xi32>
    %10 = arith.cmpi ne, %8, %9 : vector<16x128xi32>
    %c0_i32_6 = arith.constant 0 : i32
    %11 = vector.broadcast %c0_i32_6 : i32 to vector<16x128xi32>
    %12 = arith.cmpi slt, %8, %11 : vector<16x128xi32>
    %c0_i32_7 = arith.constant 0 : i32
    %13 = arith.cmpi slt, %6, %c0_i32_7 : i32
    %14 = vector.broadcast %13 : i1 to vector<16x128xi1>
    %15 = vector.broadcast %14 : vector<16x128xi1> to vector<16x128xi1>
    %16 = arith.xori %12, %15 : vector<16x128xi1>
    %17 = arith.andi %16, %10 : vector<16x128xi1>
    %18 = vector.broadcast %6 : i32 to vector<16x128xi32>
    %19 = arith.addi %8, %18 : vector<16x128xi32>
    %20 = arith.select %17, %19, %8 : vector<16x128xi1>, vector<16x128xi32>
    %c0_i32_8 = arith.constant 0 : i32
    %21 = vector.broadcast %c0_i32_8 : i32 to vector<16x128xi32>
    %22 = arith.cmpi eq, %20, %21 : vector<16x128xi32>
    %cst_9 = arith.constant 0.000000e+00 : f32
    %23 = vector.broadcast %cst_9 : f32 to vector<1x128xf32>
    %24 = vector.broadcast %23 : vector<1x128xf32> to vector<16x128xf32>
    %25 = arith.addf %2, %24 : vector<16x128xf32>
    %c127_i32 = arith.constant 127 : i32
    %26 = tpu.dynamic_rotate %25 by %c127_i32 dim 1 : vector<16x128xf32>, i32 -> vector<16x128xf32>
    %27 = arith.maximumf %25, %26 : vector<16x128xf32>
    %c126_i32 = arith.constant 126 : i32
    %28 = tpu.dynamic_rotate %27 by %c126_i32 dim 1 : vector<16x128xf32>, i32 -> vector<16x128xf32>
    %29 = arith.maximumf %27, %28 : vector<16x128xf32>
    %c124_i32 = arith.constant 124 : i32
    %30 = tpu.dynamic_rotate %29 by %c124_i32 dim 1 : vector<16x128xf32>, i32 -> vector<16x128xf32>
    %31 = arith.maximumf %29, %30 : vector<16x128xf32>
    %cst_10 = arith.constant 0xFF800000 : f32
    %32 = vector.broadcast %cst_10 : f32 to vector<16x128xf32>
    %33 = arith.select %22, %31, %32 : vector<16x128xi1>, vector<16x128xf32>
    %c1_i32_11 = arith.constant 1 : i32
    %34 = tpu.dynamic_rotate %33 by %c1_i32_11 dim 1 : vector<16x128xf32>, i32 -> vector<16x128xf32>
    %35 = arith.maximumf %33, %34 : vector<16x128xf32>
    %c2_i32 = arith.constant 2 : i32
    %36 = tpu.dynamic_rotate %35 by %c2_i32 dim 1 : vector<16x128xf32>, i32 -> vector<16x128xf32>
    %37 = arith.maximumf %35, %36 : vector<16x128xf32>
    %c4_i32 = arith.constant 4 : i32
    %38 = tpu.dynamic_rotate %37 by %c4_i32 dim 1 : vector<16x128xf32>, i32 -> vector<16x128xf32>
    %39 = arith.maximumf %37, %38 : vector<16x128xf32>
    %40 = arith.subf %25, %39 : vector<16x128xf32>
    %41 = math.exp %40 : vector<16x128xf32>
    %cst_12 = arith.constant dense<0.000000e+00> : vector<16x128xf32>
    %42 = tpu.matmul %41, %3, %cst_12 {dimension_numbers = #tpu.dot_dimension_numbers<[1], [0], [0], [1], [0, 0, 1, 1], [], []>} : vector<16x128xf32>, vector<128x128xf32>, vector<16x128xf32> -> vector<16x128xf32>
    %43 = math.log %42 : vector<16x128xf32>
    %44 = arith.addf %43, %39 : vector<16x128xf32>
    %cst_13 = arith.constant -0.693147182 : f32
    %45 = vector.broadcast %cst_13 : f32 to vector<16x128xf32>
    %46 = arith.subf %45, %44 : vector<16x128xf32>
    %47 = arith.addf %2, %46 : vector<16x128xf32>
    %cst_14 = arith.constant dense<0xFF800000> : vector<128xf32>
    %48 = vector.multi_reduction <maximumf>, %47, %cst_14 [0] : vector<16x128xf32> to vector<128xf32>
    %49 = vector.shape_cast %48 : vector<128xf32> to vector<1x128xf32>
    %50 = vector.broadcast %49 : vector<1x128xf32> to vector<16x128xf32>
    %51 = arith.subf %47, %50 : vector<16x128xf32>
    %52 = math.exp %51 : vector<16x128xf32>
    %cst_15 = arith.constant dense<0.000000e+00> : vector<128xf32>
    %53 = vector.multi_reduction <add>, %52, %cst_15 [0] : vector<16x128xf32> to vector<128xf32>
    %54 = vector.shape_cast %53 : vector<128xf32> to vector<1x128xf32>
    %55 = math.log %54 : vector<1x128xf32>
    %56 = arith.addf %55, %49 : vector<1x128xf32>
    %cst_16 = arith.constant 0.000000e+00 : f32
    %57 = vector.broadcast %cst_16 : f32 to vector<1x128xf32>
    %58 = arith.subf %57, %56 : vector<1x128xf32>
    %59 = vector.broadcast %58 : vector<1x128xf32> to vector<16x128xf32>
    %60 = arith.addf %2, %59 : vector<16x128xf32>
    %c127_i32_17 = arith.constant 127 : i32
    %61 = tpu.dynamic_rotate %60 by %c127_i32_17 dim 1 : vector<16x128xf32>, i32 -> vector<16x128xf32>
    %62 = arith.maximumf %60, %61 : vector<16x128xf32>
    %c126_i32_18 = arith.constant 126 : i32
    %63 = tpu.dynamic_rotate %62 by %c126_i32_18 dim 1 : vector<16x128xf32>, i32 -> vector<16x128xf32>
    %64 = arith.maximumf %62, %63 : vector<16x128xf32>
    %c124_i32_19 = arith.constant 124 : i32
    %65 = tpu.dynamic_rotate %64 by %c124_i32_19 dim 1 : vector<16x128xf32>, i32 -> vector<16x128xf32>
    %66 = arith.maximumf %64, %65 : vector<16x128xf32>
    %cst_20 = arith.constant 0xFF800000 : f32
    %67 = vector.broadcast %cst_20 : f32 to vector<16x128xf32>
    %68 = arith.select %22, %66, %67 : vector<16x128xi1>, vector<16x128xf32>
    %c1_i32_21 = arith.constant 1 : i32
    %69 = tpu.dynamic_rotate %68 by %c1_i32_21 dim 1 : vector<16x128xf32>, i32 -> vector<16x128xf32>
    %70 = arith.maximumf %68, %69 : vector<16x128xf32>
    %c2_i32_22 = arith.constant 2 : i32
    %71 = tpu.dynamic_rotate %70 by %c2_i32_22 dim 1 : vector<16x128xf32>, i32 -> vector<16x128xf32>
    %72 = arith.maximumf %70, %71 : vector<16x128xf32>
    %c4_i32_23 = arith.constant 4 : i32
    %73 = tpu.dynamic_rotate %72 by %c4_i32_23 dim 1 : vector<16x128xf32>, i32 -> vector<16x128xf32>
    %74 = arith.maximumf %72, %73 : vector<16x128xf32>
    %75 = arith.subf %60, %74 : vector<16x128xf32>
    %76 = math.exp %75 : vector<16x128xf32>
    %cst_24 = arith.constant dense<0.000000e+00> : vector<16x128xf32>
    %77 = tpu.matmul %76, %3, %cst_24 {dimension_numbers = #tpu.dot_dimension_numbers<[1], [0], [0], [1], [0, 0, 1, 1], [], []>} : vector<16x128xf32>, vector<128x128xf32>, vector<16x128xf32> -> vector<16x128xf32>
    %78 = math.log %77 : vector<16x128xf32>
    %79 = arith.addf %78, %74 : vector<16x128xf32>
    %cst_25 = arith.constant -0.693147182 : f32
    %80 = vector.broadcast %cst_25 : f32 to vector<16x128xf32>
    %81 = arith.subf %80, %79 : vector<16x128xf32>
    %82 = arith.addf %2, %81 : vector<16x128xf32>
    %cst_26 = arith.constant dense<0xFF800000> : vector<128xf32>
    %83 = vector.multi_reduction <maximumf>, %82, %cst_26 [0] : vector<16x128xf32> to vector<128xf32>
    %84 = vector.shape_cast %83 : vector<128xf32> to vector<1x128xf32>
    %85 = vector.broadcast %84 : vector<1x128xf32> to vector<16x128xf32>
    %86 = arith.subf %82, %85 : vector<16x128xf32>
    %87 = math.exp %86 : vector<16x128xf32>
    %cst_27 = arith.constant dense<0.000000e+00> : vector<128xf32>
    %88 = vector.multi_reduction <add>, %87, %cst_27 [0] : vector<16x128xf32> to vector<128xf32>
    %89 = vector.shape_cast %88 : vector<128xf32> to vector<1x128xf32>
    %90 = math.log %89 : vector<1x128xf32>
    %91 = arith.addf %90, %84 : vector<1x128xf32>
    %cst_28 = arith.constant 0.000000e+00 : f32
    %92 = vector.broadcast %cst_28 : f32 to vector<1x128xf32>
    %93 = arith.subf %92, %91 : vector<1x128xf32>
    %94 = vector.broadcast %93 : vector<1x128xf32> to vector<16x128xf32>
    %95 = arith.addf %2, %94 : vector<16x128xf32>
    %c127_i32_29 = arith.constant 127 : i32
    %96 = tpu.dynamic_rotate %95 by %c127_i32_29 dim 1 : vector<16x128xf32>, i32 -> vector<16x128xf32>
    %97 = arith.maximumf %95, %96 : vector<16x128xf32>
    %c126_i32_30 = arith.constant 126 : i32
    %98 = tpu.dynamic_rotate %97 by %c126_i32_30 dim 1 : vector<16x128xf32>, i32 -> vector<16x128xf32>
    %99 = arith.maximumf %97, %98 : vector<16x128xf32>
    %c124_i32_31 = arith.constant 124 : i32
    %100 = tpu.dynamic_rotate %99 by %c124_i32_31 dim 1 : vector<16x128xf32>, i32 -> vector<16x128xf32>
    %101 = arith.maximumf %99, %100 : vector<16x128xf32>
    %cst_32 = arith.constant 0xFF800000 : f32
    %102 = vector.broadcast %cst_32 : f32 to vector<16x128xf32>
    %103 = arith.select %22, %101, %102 : vector<16x128xi1>, vector<16x128xf32>
    %c1_i32_33 = arith.constant 1 : i32
    %104 = tpu.dynamic_rotate %103 by %c1_i32_33 dim 1 : vector<16x128xf32>, i32 -> vector<16x128xf32>
    %105 = arith.maximumf %103, %104 : vector<16x128xf32>
    %c2_i32_34 = arith.constant 2 : i32
    %106 = tpu.dynamic_rotate %105 by %c2_i32_34 dim 1 : vector<16x128xf32>, i32 -> vector<16x128xf32>
    %107 = arith.maximumf %105, %106 : vector<16x128xf32>
    %c4_i32_35 = arith.constant 4 : i32
    %108 = tpu.dynamic_rotate %107 by %c4_i32_35 dim 1 : vector<16x128xf32>, i32 -> vector<16x128xf32>
    %109 = arith.maximumf %107, %108 : vector<16x128xf32>
    %110 = arith.subf %95, %109 : vector<16x128xf32>
    %111 = math.exp %110 : vector<16x128xf32>
    %cst_36 = arith.constant dense<0.000000e+00> : vector<16x128xf32>
    %112 = tpu.matmul %111, %3, %cst_36 {dimension_numbers = #tpu.dot_dimension_numbers<[1], [0], [0], [1], [0, 0, 1, 1], [], []>} : vector<16x128xf32>, vector<128x128xf32>, vector<16x128xf32> -> vector<16x128xf32>
    %113 = math.log %112 : vector<16x128xf32>
    %114 = arith.addf %113, %109 : vector<16x128xf32>
    %cst_37 = arith.constant -0.693147182 : f32
    %115 = vector.broadcast %cst_37 : f32 to vector<16x128xf32>
    %116 = arith.subf %115, %114 : vector<16x128xf32>
    %117 = arith.addf %2, %116 : vector<16x128xf32>
    %cst_38 = arith.constant dense<0xFF800000> : vector<128xf32>
    %118 = vector.multi_reduction <maximumf>, %117, %cst_38 [0] : vector<16x128xf32> to vector<128xf32>
    %119 = vector.shape_cast %118 : vector<128xf32> to vector<1x128xf32>
    %120 = vector.broadcast %119 : vector<1x128xf32> to vector<16x128xf32>
    %121 = arith.subf %117, %120 : vector<16x128xf32>
    %122 = math.exp %121 : vector<16x128xf32>
    %cst_39 = arith.constant dense<0.000000e+00> : vector<128xf32>
    %123 = vector.multi_reduction <add>, %122, %cst_39 [0] : vector<16x128xf32> to vector<128xf32>
    %124 = vector.shape_cast %123 : vector<128xf32> to vector<1x128xf32>
    %125 = math.log %124 : vector<1x128xf32>
    %126 = arith.addf %125, %119 : vector<1x128xf32>
    %cst_40 = arith.constant 0.000000e+00 : f32
    %127 = vector.broadcast %cst_40 : f32 to vector<1x128xf32>
    %128 = arith.subf %127, %126 : vector<1x128xf32>
    %129 = vector.broadcast %128 : vector<1x128xf32> to vector<16x128xf32>
    %130 = arith.addf %2, %129 : vector<16x128xf32>
    %c127_i32_41 = arith.constant 127 : i32
    %131 = tpu.dynamic_rotate %130 by %c127_i32_41 dim 1 : vector<16x128xf32>, i32 -> vector<16x128xf32>
    %132 = arith.maximumf %130, %131 : vector<16x128xf32>
    %c126_i32_42 = arith.constant 126 : i32
    %133 = tpu.dynamic_rotate %132 by %c126_i32_42 dim 1 : vector<16x128xf32>, i32 -> vector<16x128xf32>
    %134 = arith.maximumf %132, %133 : vector<16x128xf32>
    %c124_i32_43 = arith.constant 124 : i32
    %135 = tpu.dynamic_rotate %134 by %c124_i32_43 dim 1 : vector<16x128xf32>, i32 -> vector<16x128xf32>
    %136 = arith.maximumf %134, %135 : vector<16x128xf32>
    %cst_44 = arith.constant 0xFF800000 : f32
    %137 = vector.broadcast %cst_44 : f32 to vector<16x128xf32>
    %138 = arith.select %22, %136, %137 : vector<16x128xi1>, vector<16x128xf32>
    %c1_i32_45 = arith.constant 1 : i32
    %139 = tpu.dynamic_rotate %138 by %c1_i32_45 dim 1 : vector<16x128xf32>, i32 -> vector<16x128xf32>
    %140 = arith.maximumf %138, %139 : vector<16x128xf32>
    %c2_i32_46 = arith.constant 2 : i32
    %141 = tpu.dynamic_rotate %140 by %c2_i32_46 dim 1 : vector<16x128xf32>, i32 -> vector<16x128xf32>
    %142 = arith.maximumf %140, %141 : vector<16x128xf32>
    %c4_i32_47 = arith.constant 4 : i32
    %143 = tpu.dynamic_rotate %142 by %c4_i32_47 dim 1 : vector<16x128xf32>, i32 -> vector<16x128xf32>
    %144 = arith.maximumf %142, %143 : vector<16x128xf32>
    %145 = arith.subf %130, %144 : vector<16x128xf32>
    %146 = math.exp %145 : vector<16x128xf32>
    %cst_48 = arith.constant dense<0.000000e+00> : vector<16x128xf32>
    %147 = tpu.matmul %146, %3, %cst_48 {dimension_numbers = #tpu.dot_dimension_numbers<[1], [0], [0], [1], [0, 0, 1, 1], [], []>} : vector<16x128xf32>, vector<128x128xf32>, vector<16x128xf32> -> vector<16x128xf32>
    %148 = math.log %147 : vector<16x128xf32>
    %149 = arith.addf %148, %144 : vector<16x128xf32>
    %cst_49 = arith.constant -0.693147182 : f32
    %150 = vector.broadcast %cst_49 : f32 to vector<16x128xf32>
    %151 = arith.subf %150, %149 : vector<16x128xf32>
    %152 = arith.addf %2, %151 : vector<16x128xf32>
    %cst_50 = arith.constant dense<0xFF800000> : vector<128xf32>
    %153 = vector.multi_reduction <maximumf>, %152, %cst_50 [0] : vector<16x128xf32> to vector<128xf32>
    %154 = vector.shape_cast %153 : vector<128xf32> to vector<1x128xf32>
    %155 = vector.broadcast %154 : vector<1x128xf32> to vector<16x128xf32>
    %156 = arith.subf %152, %155 : vector<16x128xf32>
    %157 = math.exp %156 : vector<16x128xf32>
    %cst_51 = arith.constant dense<0.000000e+00> : vector<128xf32>
    %158 = vector.multi_reduction <add>, %157, %cst_51 [0] : vector<16x128xf32> to vector<128xf32>
    %159 = vector.shape_cast %158 : vector<128xf32> to vector<1x128xf32>
    %160 = math.log %159 : vector<1x128xf32>
    %161 = arith.addf %160, %154 : vector<1x128xf32>
    %cst_52 = arith.constant 0.000000e+00 : f32
    %162 = vector.broadcast %cst_52 : f32 to vector<1x128xf32>
    %163 = arith.subf %162, %161 : vector<1x128xf32>
    %164 = vector.broadcast %163 : vector<1x128xf32> to vector<16x128xf32>
    %165 = arith.addf %2, %164 : vector<16x128xf32>
    %c127_i32_53 = arith.constant 127 : i32
    %166 = tpu.dynamic_rotate %165 by %c127_i32_53 dim 1 : vector<16x128xf32>, i32 -> vector<16x128xf32>
    %167 = arith.maximumf %165, %166 : vector<16x128xf32>
    %c126_i32_54 = arith.constant 126 : i32
    %168 = tpu.dynamic_rotate %167 by %c126_i32_54 dim 1 : vector<16x128xf32>, i32 -> vector<16x128xf32>
    %169 = arith.maximumf %167, %168 : vector<16x128xf32>
    %c124_i32_55 = arith.constant 124 : i32
    %170 = tpu.dynamic_rotate %169 by %c124_i32_55 dim 1 : vector<16x128xf32>, i32 -> vector<16x128xf32>
    %171 = arith.maximumf %169, %170 : vector<16x128xf32>
    %cst_56 = arith.constant 0xFF800000 : f32
    %172 = vector.broadcast %cst_56 : f32 to vector<16x128xf32>
    %173 = arith.select %22, %171, %172 : vector<16x128xi1>, vector<16x128xf32>
    %c1_i32_57 = arith.constant 1 : i32
    %174 = tpu.dynamic_rotate %173 by %c1_i32_57 dim 1 : vector<16x128xf32>, i32 -> vector<16x128xf32>
    %175 = arith.maximumf %173, %174 : vector<16x128xf32>
    %c2_i32_58 = arith.constant 2 : i32
    %176 = tpu.dynamic_rotate %175 by %c2_i32_58 dim 1 : vector<16x128xf32>, i32 -> vector<16x128xf32>
    %177 = arith.maximumf %175, %176 : vector<16x128xf32>
    %c4_i32_59 = arith.constant 4 : i32
    %178 = tpu.dynamic_rotate %177 by %c4_i32_59 dim 1 : vector<16x128xf32>, i32 -> vector<16x128xf32>
    %179 = arith.maximumf %177, %178 : vector<16x128xf32>
    %180 = arith.subf %165, %179 : vector<16x128xf32>
    %181 = math.exp %180 : vector<16x128xf32>
    %cst_60 = arith.constant dense<0.000000e+00> : vector<16x128xf32>
    %182 = tpu.matmul %181, %3, %cst_60 {dimension_numbers = #tpu.dot_dimension_numbers<[1], [0], [0], [1], [0, 0, 1, 1], [], []>} : vector<16x128xf32>, vector<128x128xf32>, vector<16x128xf32> -> vector<16x128xf32>
    %183 = math.log %182 : vector<16x128xf32>
    %184 = arith.addf %183, %179 : vector<16x128xf32>
    %cst_61 = arith.constant -0.693147182 : f32
    %185 = vector.broadcast %cst_61 : f32 to vector<16x128xf32>
    %186 = arith.subf %185, %184 : vector<16x128xf32>
    %187 = arith.addf %2, %186 : vector<16x128xf32>
    %cst_62 = arith.constant dense<0xFF800000> : vector<128xf32>
    %188 = vector.multi_reduction <maximumf>, %187, %cst_62 [0] : vector<16x128xf32> to vector<128xf32>
    %189 = vector.shape_cast %188 : vector<128xf32> to vector<1x128xf32>
    %190 = vector.broadcast %189 : vector<1x128xf32> to vector<16x128xf32>
    %191 = arith.subf %187, %190 : vector<16x128xf32>
    %192 = math.exp %191 : vector<16x128xf32>
    %cst_63 = arith.constant dense<0.000000e+00> : vector<128xf32>
    %193 = vector.multi_reduction <add>, %192, %cst_63 [0] : vector<16x128xf32> to vector<128xf32>
    %194 = vector.shape_cast %193 : vector<128xf32> to vector<1x128xf32>
    %195 = math.log %194 : vector<1x128xf32>
    %196 = arith.addf %195, %189 : vector<1x128xf32>
    %cst_64 = arith.constant 0.000000e+00 : f32
    %197 = vector.broadcast %cst_64 : f32 to vector<1x128xf32>
    %198 = arith.subf %197, %196 : vector<1x128xf32>
    %199 = vector.broadcast %198 : vector<1x128xf32> to vector<16x128xf32>
    %200 = arith.addf %2, %199 : vector<16x128xf32>
    %c127_i32_65 = arith.constant 127 : i32
    %201 = tpu.dynamic_rotate %200 by %c127_i32_65 dim 1 : vector<16x128xf32>, i32 -> vector<16x128xf32>
    %202 = arith.maximumf %200, %201 : vector<16x128xf32>
    %c126_i32_66 = arith.constant 126 : i32
    %203 = tpu.dynamic_rotate %202 by %c126_i32_66 dim 1 : vector<16x128xf32>, i32 -> vector<16x128xf32>
    %204 = arith.maximumf %202, %203 : vector<16x128xf32>
    %c124_i32_67 = arith.constant 124 : i32
    %205 = tpu.dynamic_rotate %204 by %c124_i32_67 dim 1 : vector<16x128xf32>, i32 -> vector<16x128xf32>
    %206 = arith.maximumf %204, %205 : vector<16x128xf32>
    %cst_68 = arith.constant 0xFF800000 : f32
    %207 = vector.broadcast %cst_68 : f32 to vector<16x128xf32>
    %208 = arith.select %22, %206, %207 : vector<16x128xi1>, vector<16x128xf32>
    %c1_i32_69 = arith.constant 1 : i32
    %209 = tpu.dynamic_rotate %208 by %c1_i32_69 dim 1 : vector<16x128xf32>, i32 -> vector<16x128xf32>
    %210 = arith.maximumf %208, %209 : vector<16x128xf32>
    %c2_i32_70 = arith.constant 2 : i32
    %211 = tpu.dynamic_rotate %210 by %c2_i32_70 dim 1 : vector<16x128xf32>, i32 -> vector<16x128xf32>
    %212 = arith.maximumf %210, %211 : vector<16x128xf32>
    %c4_i32_71 = arith.constant 4 : i32
    %213 = tpu.dynamic_rotate %212 by %c4_i32_71 dim 1 : vector<16x128xf32>, i32 -> vector<16x128xf32>
    %214 = arith.maximumf %212, %213 : vector<16x128xf32>
    %215 = arith.subf %200, %214 : vector<16x128xf32>
    %216 = math.exp %215 : vector<16x128xf32>
    %cst_72 = arith.constant dense<0.000000e+00> : vector<16x128xf32>
    %217 = tpu.matmul %216, %3, %cst_72 {dimension_numbers = #tpu.dot_dimension_numbers<[1], [0], [0], [1], [0, 0, 1, 1], [], []>} : vector<16x128xf32>, vector<128x128xf32>, vector<16x128xf32> -> vector<16x128xf32>
    %218 = math.log %217 : vector<16x128xf32>
    %219 = arith.addf %218, %214 : vector<16x128xf32>
    %cst_73 = arith.constant -0.693147182 : f32
    %220 = vector.broadcast %cst_73 : f32 to vector<16x128xf32>
    %221 = arith.subf %220, %219 : vector<16x128xf32>
    %222 = arith.addf %2, %221 : vector<16x128xf32>
    %cst_74 = arith.constant dense<0xFF800000> : vector<128xf32>
    %223 = vector.multi_reduction <maximumf>, %222, %cst_74 [0] : vector<16x128xf32> to vector<128xf32>
    %224 = vector.shape_cast %223 : vector<128xf32> to vector<1x128xf32>
    %225 = vector.broadcast %224 : vector<1x128xf32> to vector<16x128xf32>
    %226 = arith.subf %222, %225 : vector<16x128xf32>
    %227 = math.exp %226 : vector<16x128xf32>
    %cst_75 = arith.constant dense<0.000000e+00> : vector<128xf32>
    %228 = vector.multi_reduction <add>, %227, %cst_75 [0] : vector<16x128xf32> to vector<128xf32>
    %229 = vector.shape_cast %228 : vector<128xf32> to vector<1x128xf32>
    %230 = math.log %229 : vector<1x128xf32>
    %231 = arith.addf %230, %224 : vector<1x128xf32>
    %cst_76 = arith.constant 0.000000e+00 : f32
    %232 = vector.broadcast %cst_76 : f32 to vector<1x128xf32>
    %233 = arith.subf %232, %231 : vector<1x128xf32>
    %234 = vector.broadcast %233 : vector<1x128xf32> to vector<16x128xf32>
    %235 = arith.addf %2, %234 : vector<16x128xf32>
    %c127_i32_77 = arith.constant 127 : i32
    %236 = tpu.dynamic_rotate %235 by %c127_i32_77 dim 1 : vector<16x128xf32>, i32 -> vector<16x128xf32>
    %237 = arith.maximumf %235, %236 : vector<16x128xf32>
    %c126_i32_78 = arith.constant 126 : i32
    %238 = tpu.dynamic_rotate %237 by %c126_i32_78 dim 1 : vector<16x128xf32>, i32 -> vector<16x128xf32>
    %239 = arith.maximumf %237, %238 : vector<16x128xf32>
    %c124_i32_79 = arith.constant 124 : i32
    %240 = tpu.dynamic_rotate %239 by %c124_i32_79 dim 1 : vector<16x128xf32>, i32 -> vector<16x128xf32>
    %241 = arith.maximumf %239, %240 : vector<16x128xf32>
    %cst_80 = arith.constant 0xFF800000 : f32
    %242 = vector.broadcast %cst_80 : f32 to vector<16x128xf32>
    %243 = arith.select %22, %241, %242 : vector<16x128xi1>, vector<16x128xf32>
    %c1_i32_81 = arith.constant 1 : i32
    %244 = tpu.dynamic_rotate %243 by %c1_i32_81 dim 1 : vector<16x128xf32>, i32 -> vector<16x128xf32>
    %245 = arith.maximumf %243, %244 : vector<16x128xf32>
    %c2_i32_82 = arith.constant 2 : i32
    %246 = tpu.dynamic_rotate %245 by %c2_i32_82 dim 1 : vector<16x128xf32>, i32 -> vector<16x128xf32>
    %247 = arith.maximumf %245, %246 : vector<16x128xf32>
    %c4_i32_83 = arith.constant 4 : i32
    %248 = tpu.dynamic_rotate %247 by %c4_i32_83 dim 1 : vector<16x128xf32>, i32 -> vector<16x128xf32>
    %249 = arith.maximumf %247, %248 : vector<16x128xf32>
    %250 = arith.subf %235, %249 : vector<16x128xf32>
    %251 = math.exp %250 : vector<16x128xf32>
    %cst_84 = arith.constant dense<0.000000e+00> : vector<16x128xf32>
    %252 = tpu.matmul %251, %3, %cst_84 {dimension_numbers = #tpu.dot_dimension_numbers<[1], [0], [0], [1], [0, 0, 1, 1], [], []>} : vector<16x128xf32>, vector<128x128xf32>, vector<16x128xf32> -> vector<16x128xf32>
    %253 = math.log %252 : vector<16x128xf32>
    %254 = arith.addf %253, %249 : vector<16x128xf32>
    %cst_85 = arith.constant -0.693147182 : f32
    %255 = vector.broadcast %cst_85 : f32 to vector<16x128xf32>
    %256 = arith.subf %255, %254 : vector<16x128xf32>
    %257 = arith.addf %2, %256 : vector<16x128xf32>
    %cst_86 = arith.constant dense<0xFF800000> : vector<128xf32>
    %258 = vector.multi_reduction <maximumf>, %257, %cst_86 [0] : vector<16x128xf32> to vector<128xf32>
    %259 = vector.shape_cast %258 : vector<128xf32> to vector<1x128xf32>
    %260 = vector.broadcast %259 : vector<1x128xf32> to vector<16x128xf32>
    %261 = arith.subf %257, %260 : vector<16x128xf32>
    %262 = math.exp %261 : vector<16x128xf32>
    %cst_87 = arith.constant dense<0.000000e+00> : vector<128xf32>
    %263 = vector.multi_reduction <add>, %262, %cst_87 [0] : vector<16x128xf32> to vector<128xf32>
    %264 = vector.shape_cast %263 : vector<128xf32> to vector<1x128xf32>
    %265 = math.log %264 : vector<1x128xf32>
    %266 = arith.addf %265, %259 : vector<1x128xf32>
    %cst_88 = arith.constant 0.000000e+00 : f32
    %267 = vector.broadcast %cst_88 : f32 to vector<1x128xf32>
    %268 = arith.subf %267, %266 : vector<1x128xf32>
    %269 = vector.broadcast %268 : vector<1x128xf32> to vector<16x128xf32>
    %270 = arith.addf %2, %269 : vector<16x128xf32>
    %c127_i32_89 = arith.constant 127 : i32
    %271 = tpu.dynamic_rotate %270 by %c127_i32_89 dim 1 : vector<16x128xf32>, i32 -> vector<16x128xf32>
    %272 = arith.maximumf %270, %271 : vector<16x128xf32>
    %c126_i32_90 = arith.constant 126 : i32
    %273 = tpu.dynamic_rotate %272 by %c126_i32_90 dim 1 : vector<16x128xf32>, i32 -> vector<16x128xf32>
    %274 = arith.maximumf %272, %273 : vector<16x128xf32>
    %c124_i32_91 = arith.constant 124 : i32
    %275 = tpu.dynamic_rotate %274 by %c124_i32_91 dim 1 : vector<16x128xf32>, i32 -> vector<16x128xf32>
    %276 = arith.maximumf %274, %275 : vector<16x128xf32>
    %cst_92 = arith.constant 0xFF800000 : f32
    %277 = vector.broadcast %cst_92 : f32 to vector<16x128xf32>
    %278 = arith.select %22, %276, %277 : vector<16x128xi1>, vector<16x128xf32>
    %c1_i32_93 = arith.constant 1 : i32
    %279 = tpu.dynamic_rotate %278 by %c1_i32_93 dim 1 : vector<16x128xf32>, i32 -> vector<16x128xf32>
    %280 = arith.maximumf %278, %279 : vector<16x128xf32>
    %c2_i32_94 = arith.constant 2 : i32
    %281 = tpu.dynamic_rotate %280 by %c2_i32_94 dim 1 : vector<16x128xf32>, i32 -> vector<16x128xf32>
    %282 = arith.maximumf %280, %281 : vector<16x128xf32>
    %c4_i32_95 = arith.constant 4 : i32
    %283 = tpu.dynamic_rotate %282 by %c4_i32_95 dim 1 : vector<16x128xf32>, i32 -> vector<16x128xf32>
    %284 = arith.maximumf %282, %283 : vector<16x128xf32>
    %285 = arith.subf %270, %284 : vector<16x128xf32>
    %286 = math.exp %285 : vector<16x128xf32>
    %cst_96 = arith.constant dense<0.000000e+00> : vector<16x128xf32>
    %287 = tpu.matmul %286, %3, %cst_96 {dimension_numbers = #tpu.dot_dimension_numbers<[1], [0], [0], [1], [0, 0, 1, 1], [], []>} : vector<16x128xf32>, vector<128x128xf32>, vector<16x128xf32> -> vector<16x128xf32>
    %288 = math.log %287 : vector<16x128xf32>
    %289 = arith.addf %288, %284 : vector<16x128xf32>
    %cst_97 = arith.constant -0.693147182 : f32
    %290 = vector.broadcast %cst_97 : f32 to vector<16x128xf32>
    %291 = arith.subf %290, %289 : vector<16x128xf32>
    %292 = arith.addf %2, %291 : vector<16x128xf32>
    %cst_98 = arith.constant dense<0xFF800000> : vector<128xf32>
    %293 = vector.multi_reduction <maximumf>, %292, %cst_98 [0] : vector<16x128xf32> to vector<128xf32>
    %294 = vector.shape_cast %293 : vector<128xf32> to vector<1x128xf32>
    %295 = vector.broadcast %294 : vector<1x128xf32> to vector<16x128xf32>
    %296 = arith.subf %292, %295 : vector<16x128xf32>
    %297 = math.exp %296 : vector<16x128xf32>
    %cst_99 = arith.constant dense<0.000000e+00> : vector<128xf32>
    %298 = vector.multi_reduction <add>, %297, %cst_99 [0] : vector<16x128xf32> to vector<128xf32>
    %299 = vector.shape_cast %298 : vector<128xf32> to vector<1x128xf32>
    %300 = math.log %299 : vector<1x128xf32>
    %301 = arith.addf %300, %294 : vector<1x128xf32>
    %cst_100 = arith.constant 0.000000e+00 : f32
    %302 = vector.broadcast %cst_100 : f32 to vector<1x128xf32>
    %303 = arith.subf %302, %301 : vector<1x128xf32>
    %304 = vector.broadcast %303 : vector<1x128xf32> to vector<16x128xf32>
    %305 = arith.addf %2, %304 : vector<16x128xf32>
    %c127_i32_101 = arith.constant 127 : i32
    %306 = tpu.dynamic_rotate %305 by %c127_i32_101 dim 1 : vector<16x128xf32>, i32 -> vector<16x128xf32>
    %307 = arith.maximumf %305, %306 : vector<16x128xf32>
    %c126_i32_102 = arith.constant 126 : i32
    %308 = tpu.dynamic_rotate %307 by %c126_i32_102 dim 1 : vector<16x128xf32>, i32 -> vector<16x128xf32>
    %309 = arith.maximumf %307, %308 : vector<16x128xf32>
    %c124_i32_103 = arith.constant 124 : i32
    %310 = tpu.dynamic_rotate %309 by %c124_i32_103 dim 1 : vector<16x128xf32>, i32 -> vector<16x128xf32>
    %311 = arith.maximumf %309, %310 : vector<16x128xf32>
    %cst_104 = arith.constant 0xFF800000 : f32
    %312 = vector.broadcast %cst_104 : f32 to vector<16x128xf32>
    %313 = arith.select %22, %311, %312 : vector<16x128xi1>, vector<16x128xf32>
    %c1_i32_105 = arith.constant 1 : i32
    %314 = tpu.dynamic_rotate %313 by %c1_i32_105 dim 1 : vector<16x128xf32>, i32 -> vector<16x128xf32>
    %315 = arith.maximumf %313, %314 : vector<16x128xf32>
    %c2_i32_106 = arith.constant 2 : i32
    %316 = tpu.dynamic_rotate %315 by %c2_i32_106 dim 1 : vector<16x128xf32>, i32 -> vector<16x128xf32>
    %317 = arith.maximumf %315, %316 : vector<16x128xf32>
    %c4_i32_107 = arith.constant 4 : i32
    %318 = tpu.dynamic_rotate %317 by %c4_i32_107 dim 1 : vector<16x128xf32>, i32 -> vector<16x128xf32>
    %319 = arith.maximumf %317, %318 : vector<16x128xf32>
    %320 = arith.subf %305, %319 : vector<16x128xf32>
    %321 = math.exp %320 : vector<16x128xf32>
    %cst_108 = arith.constant dense<0.000000e+00> : vector<16x128xf32>
    %322 = tpu.matmul %321, %3, %cst_108 {dimension_numbers = #tpu.dot_dimension_numbers<[1], [0], [0], [1], [0, 0, 1, 1], [], []>} : vector<16x128xf32>, vector<128x128xf32>, vector<16x128xf32> -> vector<16x128xf32>
    %323 = math.log %322 : vector<16x128xf32>
    %324 = arith.addf %323, %319 : vector<16x128xf32>
    %cst_109 = arith.constant -0.693147182 : f32
    %325 = vector.broadcast %cst_109 : f32 to vector<16x128xf32>
    %326 = arith.subf %325, %324 : vector<16x128xf32>
    %327 = arith.addf %2, %326 : vector<16x128xf32>
    %cst_110 = arith.constant dense<0xFF800000> : vector<128xf32>
    %328 = vector.multi_reduction <maximumf>, %327, %cst_110 [0] : vector<16x128xf32> to vector<128xf32>
    %329 = vector.shape_cast %328 : vector<128xf32> to vector<1x128xf32>
    %330 = vector.broadcast %329 : vector<1x128xf32> to vector<16x128xf32>
    %331 = arith.subf %327, %330 : vector<16x128xf32>
    %332 = math.exp %331 : vector<16x128xf32>
    %cst_111 = arith.constant dense<0.000000e+00> : vector<128xf32>
    %333 = vector.multi_reduction <add>, %332, %cst_111 [0] : vector<16x128xf32> to vector<128xf32>
    %334 = vector.shape_cast %333 : vector<128xf32> to vector<1x128xf32>
    %335 = math.log %334 : vector<1x128xf32>
    %336 = arith.addf %335, %329 : vector<1x128xf32>
    %cst_112 = arith.constant 0.000000e+00 : f32
    %337 = vector.broadcast %cst_112 : f32 to vector<1x128xf32>
    %338 = arith.subf %337, %336 : vector<1x128xf32>
    %339 = vector.broadcast %338 : vector<1x128xf32> to vector<16x128xf32>
    %340 = arith.addf %2, %339 : vector<16x128xf32>
    %c127_i32_113 = arith.constant 127 : i32
    %341 = tpu.dynamic_rotate %340 by %c127_i32_113 dim 1 : vector<16x128xf32>, i32 -> vector<16x128xf32>
    %342 = arith.maximumf %340, %341 : vector<16x128xf32>
    %c126_i32_114 = arith.constant 126 : i32
    %343 = tpu.dynamic_rotate %342 by %c126_i32_114 dim 1 : vector<16x128xf32>, i32 -> vector<16x128xf32>
    %344 = arith.maximumf %342, %343 : vector<16x128xf32>
    %c124_i32_115 = arith.constant 124 : i32
    %345 = tpu.dynamic_rotate %344 by %c124_i32_115 dim 1 : vector<16x128xf32>, i32 -> vector<16x128xf32>
    %346 = arith.maximumf %344, %345 : vector<16x128xf32>
    %cst_116 = arith.constant 0xFF800000 : f32
    %347 = vector.broadcast %cst_116 : f32 to vector<16x128xf32>
    %348 = arith.select %22, %346, %347 : vector<16x128xi1>, vector<16x128xf32>
    %c1_i32_117 = arith.constant 1 : i32
    %349 = tpu.dynamic_rotate %348 by %c1_i32_117 dim 1 : vector<16x128xf32>, i32 -> vector<16x128xf32>
    %350 = arith.maximumf %348, %349 : vector<16x128xf32>
    %c2_i32_118 = arith.constant 2 : i32
    %351 = tpu.dynamic_rotate %350 by %c2_i32_118 dim 1 : vector<16x128xf32>, i32 -> vector<16x128xf32>
    %352 = arith.maximumf %350, %351 : vector<16x128xf32>
    %c4_i32_119 = arith.constant 4 : i32
    %353 = tpu.dynamic_rotate %352 by %c4_i32_119 dim 1 : vector<16x128xf32>, i32 -> vector<16x128xf32>
    %354 = arith.maximumf %352, %353 : vector<16x128xf32>
    %355 = arith.subf %340, %354 : vector<16x128xf32>
    %356 = math.exp %355 : vector<16x128xf32>
    %cst_120 = arith.constant dense<0.000000e+00> : vector<16x128xf32>
    %357 = tpu.matmul %356, %3, %cst_120 {dimension_numbers = #tpu.dot_dimension_numbers<[1], [0], [0], [1], [0, 0, 1, 1], [], []>} : vector<16x128xf32>, vector<128x128xf32>, vector<16x128xf32> -> vector<16x128xf32>
    %358 = math.log %357 : vector<16x128xf32>
    %359 = arith.addf %358, %354 : vector<16x128xf32>
    %cst_121 = arith.constant -0.693147182 : f32
    %360 = vector.broadcast %cst_121 : f32 to vector<16x128xf32>
    %361 = arith.subf %360, %359 : vector<16x128xf32>
    %362 = arith.addf %2, %361 : vector<16x128xf32>
    %cst_122 = arith.constant dense<0xFF800000> : vector<128xf32>
    %363 = vector.multi_reduction <maximumf>, %362, %cst_122 [0] : vector<16x128xf32> to vector<128xf32>
    %364 = vector.shape_cast %363 : vector<128xf32> to vector<1x128xf32>
    %365 = vector.broadcast %364 : vector<1x128xf32> to vector<16x128xf32>
    %366 = arith.subf %362, %365 : vector<16x128xf32>
    %367 = math.exp %366 : vector<16x128xf32>
    %cst_123 = arith.constant dense<0.000000e+00> : vector<128xf32>
    %368 = vector.multi_reduction <add>, %367, %cst_123 [0] : vector<16x128xf32> to vector<128xf32>
    %369 = vector.shape_cast %368 : vector<128xf32> to vector<1x128xf32>
    %370 = math.log %369 : vector<1x128xf32>
    %371 = arith.addf %370, %364 : vector<1x128xf32>
    %cst_124 = arith.constant 0.000000e+00 : f32
    %372 = vector.broadcast %cst_124 : f32 to vector<1x128xf32>
    %373 = arith.subf %372, %371 : vector<1x128xf32>
    %374 = vector.broadcast %373 : vector<1x128xf32> to vector<16x128xf32>
    %375 = arith.addf %362, %374 : vector<16x128xf32>
    %376 = math.exp %375 : vector<16x128xf32>
    %cst_125 = arith.constant dense<0.000000e+00> : vector<128x256xf32>
    %377 = tpu.matmul %376, %0, %cst_125 {dimension_numbers = #tpu.dot_dimension_numbers<[0], [0], [1], [1], [0, 1, 1, 1], [], []>} : vector<16x128xf32>, vector<16x256xf32>, vector<128x256xf32> -> vector<128x256xf32>
    %c0_126 = arith.constant 0 : index
    %c0_127 = arith.constant 0 : index
    %378 = vector.load %arg4[%c0_126, %c0_127] : memref<128x256xf32, #tpu.memory_space<vmem>>, vector<128x256xf32>
    %379 = arith.mulf %377, %378 : vector<128x256xf32>
    %380 = vector.extract_strided_slice %379 {offsets = [0, 0], sizes = [64, 256], strides = [1, 1]} : vector<128x256xf32> to vector<64x256xf32>
    %c0_128 = arith.constant 0 : index
    %c0_129 = arith.constant 0 : index
    %c0_130 = arith.constant 0 : index
    %381 = vector.load %arg5[%c0_128, %c0_129, %c0_130] : memref<2x256x32xf32, #tpu.memory_space<vmem>>, vector<1x256x32xf32>
    %382 = vector.shape_cast %381 : vector<1x256x32xf32> to vector<256x32xf32>
    %cst_131 = arith.constant dense<0.000000e+00> : vector<64x32xf32>
    %383 = tpu.matmul %380, %382, %cst_131 {dimension_numbers = #tpu.dot_dimension_numbers<[1], [0], [0], [1], [0, 0, 1, 1], [], []>} : vector<64x256xf32>, vector<256x32xf32>, vector<64x32xf32> -> vector<64x32xf32>
    %384 = vector.extract_strided_slice %379 {offsets = [64, 0], sizes = [64, 256], strides = [1, 1]} : vector<128x256xf32> to vector<64x256xf32>
    %c1 = arith.constant 1 : index
    %c0_132 = arith.constant 0 : index
    %c0_133 = arith.constant 0 : index
    %385 = vector.load %arg5[%c1, %c0_132, %c0_133] : memref<2x256x32xf32, #tpu.memory_space<vmem>>, vector<1x256x32xf32>
    %386 = vector.shape_cast %385 : vector<1x256x32xf32> to vector<256x32xf32>
    %cst_134 = arith.constant dense<0.000000e+00> : vector<64x32xf32>
    %387 = tpu.matmul %384, %386, %cst_134 {dimension_numbers = #tpu.dot_dimension_numbers<[1], [0], [0], [1], [0, 0, 1, 1], [], []>} : vector<64x256xf32>, vector<256x32xf32>, vector<64x32xf32> -> vector<64x32xf32>
    %388 = arith.addf %383, %387 : vector<64x32xf32>
    %c0_135 = arith.constant 0 : index
    %c0_136 = arith.constant 0 : index
    %389 = vector.load %arg6[%c0_135, %c0_136] : memref<1x32xf32, #tpu.memory_space<vmem>>, vector<1x32xf32>
    %390 = vector.broadcast %389 : vector<1x32xf32> to vector<64x32xf32>
    %391 = arith.addf %388, %390 : vector<64x32xf32>
    %cst_137 = arith.constant 0.000000e+00 : f32
    %392 = vector.broadcast %cst_137 : f32 to vector<64x32xf32>
    %393 = arith.maximumf %391, %392 : vector<64x32xf32>
    %c0_138 = arith.constant 0 : index
    %c0_139 = arith.constant 0 : index
    %394 = vector.load %arg7[%c0_138, %c0_139] : memref<64x32xf32, #tpu.memory_space<vmem>>, vector<64x32xf32>
    tpu.vector_store %arg7[%c0_138, %c0_139], %393 {strides = array<i32>} : memref<64x32xf32, #tpu.memory_space<vmem>>, vector<64x32xf32>,
    return
  }
  func.func @transform_0(%arg0: i32) -> (i32, i32) {
    %c0_i32 = arith.constant 0 : i32
    %c0_i32_0 = arith.constant 0 : i32
    return %c0_i32, %arg0 : i32, i32
  }
  func.func @transform_1(%arg0: i32) -> (i32, i32) {
    %c0_i32 = arith.constant 0 : i32
    %c0_i32_0 = arith.constant 0 : i32
    %c0_i32_1 = arith.constant 0 : i32
    return %c0_i32, %c0_i32_0 : i32, i32
  }
  func.func @transform_2(%arg0: i32) -> (i32, i32) {
    %c0_i32 = arith.constant 0 : i32
    %c0_i32_0 = arith.constant 0 : i32
    %c0_i32_1 = arith.constant 0 : i32
    return %c0_i32, %c0_i32_0 : i32, i32
  }
  func.func @transform_3(%arg0: i32) -> (i32, i32) {
    %c0_i32 = arith.constant 0 : i32
    %c0_i32_0 = arith.constant 0 : i32
    %c0_i32_1 = arith.constant 0 : i32
    return %c0_i32, %c0_i32_0 : i32, i32
  }
  func.func @transform_4(%arg0: i32) -> (i32, i32, i32) {
    %c0_i32 = arith.constant 0 : i32
    %c0_i32_0 = arith.constant 0 : i32
    %c0_i32_1 = arith.constant 0 : i32
    %c0_i32_2 = arith.constant 0 : i32
    return %c0_i32, %c0_i32_0, %c0_i32_1 : i32, i32, i32
  }
  func.func @transform_5(%arg0: i32) -> (i32, i32) {
    %c0_i32 = arith.constant 0 : i32
    %c0_i32_0 = arith.constant 0 : i32
    %c0_i32_1 = arith.constant 0 : i32
    return %c0_i32, %c0_i32_0 : i32, i32
  }
  func.func @transform_6(%arg0: i32) -> (i32, i32) {
    %c0_i32 = arith.constant 0 : i32
    %c0_i32_0 = arith.constant 0 : i32
    return %arg0, %c0_i32 : i32, i32
  }
}

</mosaic_0001>

<bundles_post_ra>
// kernel: tpu_custom_call.1
= control target key start
LH: loop header
LB: loop body
LE: loop exit
PB: predicated region body
PF: predicated region fallthrough
CT: control target
= control target key end

     0   :  { %11 = vsyncpa [#allocation3], 0  ;;  %s3594_s0 = inlined_call_operand.hbm [shape: f32[16,512], index: 0, kind: input, shape index: {}]   ;;  %s3595_s1 = inlined_call_operand.vmem [shape: f32[256,128], index: 1, kind: input, shape index: {}]   ;;  %s3596_s2 = inlined_call_operand.vmem [shape: f32[128,128], index: 2, kind: input, shape index: {}]   ;;  %s3597_s3 = inlined_call_operand.vmem [shape: f32[128,256], index: 3, kind: input, shape index: {}]   ;;  %s3598_s4 = inlined_call_operand.vmem [shape: f32[2,256,32], index: 4, kind: input, shape index: {}]   ;;  %s3599_s5 = inlined_call_operand.hbm [shape: f32[1,32], index: 5, kind: input, shape index: {}]   ;;  %s3600_s6 = inlined_call_operand.vmem [shape: f32[128,32], index: 6, kind: output, shape index: {}]  }
   0x1   :  { %13 = vsyncpa [#allocation3 + $0x1], 0 }
   0x2   :  { %14 = vsyncpa [#allocation5], 0  ;;  %s2514_s21 = smov 0   ;;  %s2516_s22 = smov 0  }
   0x3   :  { %s2518_s23 = smov 0   ;;  %s2520_s24 = smov 0  }
   0x4 LB: > { %s3601_s25 = sadd.s32 4294967295, %s2467_s24   ;;  %s2534_s26 = sadd.s32 1, %s2467_s24   ;;  %s2467_s24 = sphi %s2520_s24, %s3613_s24   ;;  %s2463_s23 = sphi %s2518_s23, %s3612_s23   ;;  %s2459_s22 = sphi %s2516_s22, %s3611_s22   ;;  %s2455_s21 = sphi %s2514_s21, %s3610_s21  }
   0x5   : > { %s24_s27 = ssub.s32 %s2467_s24, %s2534_s26  ;;  %s27_s28 = sadd.s32 1, %s2463_s23 }
   0x6   : > { %p25_p0 = scmp.eq.s32.totalorder %s24_s27, 0  ;;  %p34_p1 = scmp.ne.s32.totalorder %s2463_s23, %s2459_s22 }
   0x7   : > { %p35_p2 = scmp.eq.s32.totalorder %s2467_s24, 0  ;;  %p40_p3 = scmp.ne.s32.totalorder %s2459_s22, %s2455_s21 }
   0x8   : > { %s2544_s29 = scalar_select %p25_p0, %s2463_s23, %s27_s28  }
   0x9   : > { %p2546_p4 = por %p35_p2, %p34_p1  ;;  %p2552_p5 = scmp.eq.s32.totalorder %s3601_s25, 0 }
   0xa   : > { %p2052_p6 = scmp.ge.s32.totalorder %s2467_s24, 1  ;;  %p182_p7 = scmp.lt.s32.totalorder %s2467_s24, 3 }
   0xb   : > { %p2560_p8 = por %p2552_p5, %p40_p3  ;;  %s206_s12 = sshll.u32 %s3599_s5, 4  ;;  %s207_s12 = int_to_ptr.hbm [resolvable:$true] %s206_s12 }
   0xc   : > { %p2564_p9 = pnand %p2052_p6, %p182_p7  ;;  %s2469_s13 = smov [#allocation4]  }
   0xd   : > { %s208_s14 = sshll.u32 %s2469_s13, 4  ;;  %p2177_p12 = scmp.lt.s32.totalorder %s2467_s24, 2  ;;  %s209_s14 = int_to_ptr.vmem [resolvable:$true] %s208_s14 }
   0xe   : > { %p2168_p10 = pneg %p2564_p9  ;;  %s219_s15 = sand.u32 1, %s2463_s23  }
   0xf   : > { %s2129_s16 = sshll.u32 %s2467_s24, 4  ;;  %p2580_p13 = pnand %p2177_p12, %p2546_p4 }
  0x10   : > { %p2169_p11 = pnand %p2168_p10, %p2552_p5  ;;  %s2055_s18 = sshll.u32 %s219_s15, 5 }
  0x11   : > { %s228_s21 = scalar_lea.hbm %s3594_s0, %s2129_s16  ;;  %s223_s28 = scalar_lea.vmem [#allocation2], %s2055_s18 }
  0x12   : > { %2171 = dma.hbm_to_vmem [thread:$0]  (!%p2169_p11), %s207_s12, 16, %s209_s14, [#allocation5]  }
  0x13   : > { %s229_s27 = sshll.u32 %s228_s21, 4  ;;  %s231_s10 = sshll.u32 %s223_s28, 4  ;;  %s230_s27 = int_to_ptr.hbm [resolvable:$true] %s229_s27  ;;  %s232_s10 = int_to_ptr.vmem [resolvable:$true] %s231_s10 }
  0x14   : > { %s220_s11 = scalar_lea.sflag [#allocation3], %s219_s15  ;;  %s2399_s13 = sshra.s32 %s230_s27, 4  ;;  %s2400_s13 = int_to_ptr.hbm [resolvable:$true] %s2399_s13 }
  0x15   : > { %s2401_s30 = scalar_lea.hbm %s2400_s13, 32  ;;  %p2403_p1 = pneg %p2580_p13 }
  0x16   : > { %p2402_p0 = scmp.ne.s32.totalorder %s2400_s13, %s2401_s30  ;;  %s2406_s25 = scalar_lea.hbm %s3594_s0, 64 }
  0x17   : > { %p2407_p4 = scmp.lt.s32.totalorder %s2400_s13, %s3594_s0  ;;  %p2408_p6 = scmp.lt.s32.totalorder %s2406_s25, %s2401_s30 }
  0x18   : > { %p2404_p2 = pnand %p2403_p1, %p2402_p0 }
  0x19   : > { %p2409_p7 = por %p2408_p6, %p2407_p4 }
  0x1a   : > { %p2405_p3 = pneg %p2404_p2 }
  0x1c   : > { %p2410_p10 = pnand %p2409_p7, %p2405_p3 }
  0x1e   : > { %2413 = shalt.err (!%p2410_p10)
}
  0x1f   : > { %s2470_s15 = smov 512   ;;  %s2471_s18 = smov 256  }
  0x20   : > { %s2472_s20 = smov 16   ;;  %243 = sbr.rel (%p2564_p9) target bundleno = 9564 (0x255c), region = 44 }
  0x21   : > { %2175 = dma.hbm_to_vmem [thread:$0]  (!%p2580_p13), %s230_s27, 512, %s232_s10, %s220_s11, %s2470_s15, %s2471_s18, %s2472_s20  }
  0x22   : > { %s245_s21 = sand.u32 (!%p2564_p9), 1, %s2459_s22  }
  0x23   : > { %s2059_s28 = sshll.u32 (!%p2564_p9), %s245_s21, 5  ;;  %s246_s12 = scalar_lea.sflag (!%p2564_p9), [#allocation3], %s245_s21 }
  0x24   : > { %s2600_s14 = scalar_lea.vmem (!%p2564_p9), [#allocation2], %s2059_s28 }
  0x25   : > { %2446 = dma.done.wait (%p2560_p8), %s246_s12, 512  }
  0x26   : > { %2448 = vsyncadd (%p2560_p8), %s246_s12, 4294966784 }
  0x27   : > { %2450 = dma.done.wait (%p2552_p5), [#allocation5], 16  }
  0x28   : > { %2452 = vsyncadd (%p2552_p5), [#allocation5], 4294967280  ;;  %v310_v0 = vld [vmem:[%s3595_s1 + $0x78] sm:$0xff]  ;;  %v309_v2 = vld [vmem:[%s3595_s1 + $0x70] sm:$0xff]  ;;  %s2473_s19 = smov 127   ;;  %s2474_s16 = smov 126   ;;  %v389_v50 = vlaneseq }
  0x29   : > { %v326_v1 = vld [vmem:[%s3595_s1 + $0xf8] sm:$0xff]  ;;  %327 = vmatpush.msra.mxu0 %v310_v0  ;;  %v325_v3 = vld [vmem:[%s3595_s1 + $0xf0] sm:$0xff]  ;;  %v308_v4 = vld [vmem:[%s3595_s1 + $0x68] sm:$0xff]  ;;  %s2475_s15 = smov 124   ;;  %s2476_s18 = smov 1   ;;  %vm1472_vm1 = vcmask 130048  }
  0x2a   : > { %350 = vmatpush.msra.mxu1 %v326_v1  ;;  %v324_v5 = vld [vmem:[%s3595_s1 + $0xe8] sm:$0xff]  ;;  %v307_v6 = vld [vmem:[%s3595_s1 + $0x60] sm:$0xff]  ;;  %v306_v8 = vld [vmem:[%s3595_s1 + $0x58] sm:$0xff]  ;;  %v390_v51 = vand.u32 127, %v389_v50  ;;  %s2477_s20 = smov 2   ;;  %s2478_s21 = smov 4  }
  0x2b   : > { %328 = vmatpush.msra.mxu0 %v309_v2  ;;  %v323_v7 = vld [vmem:[%s3595_s1 + $0xe0] sm:$0xff]  ;;  %v322_v9 = vld [vmem:[%s3595_s1 + $0xd8] sm:$0xff]  ;;  %v305_v10 = vld [vmem:[%s3595_s1 + $0x50] sm:$0xff]  ;;  %vm1964_vm2 = vcmask 261120  }
  0x2c   : > { %351 = vmatpush.msra.mxu1 %v325_v3  ;;  %v321_v11 = vld [vmem:[%s3595_s1 + $0xd0] sm:$0xff]  ;;  %v304_v12 = vld [vmem:[%s3595_s1 + $0x48] sm:$0xff]  ;;  %v303_v14 = vld [vmem:[%s3595_s1 + $0x40] sm:$0xff]  ;;  %v395_v52 = vand.u32 7, %v390_v51 }
  0x2d   : > { %329 = vmatpush.msra.mxu0 %v308_v4  ;;  %v320_v13 = vld [vmem:[%s3595_s1 + $0xc8] sm:$0xff]  ;;  %v319_v15 = vld [vmem:[%s3595_s1 + $0xc0] sm:$0xff]  ;;  %v302_v16 = vld [vmem:[%s3595_s1 + $0x38] sm:$0xff] }
  0x2e   : > { %352 = vmatpush.msra.mxu1 %v324_v5  ;;  %v318_v17 = vld [vmem:[%s3595_s1 + $0xb8] sm:$0xff]  ;;  %v301_v18 = vld [vmem:[%s3595_s1 + $0x30] sm:$0xff]  ;;  %v300_v20 = vld [vmem:[%s3595_s1 + $0x28] sm:$0xff]  ;;  %vm2730_vm0 = vcmp.eq.s32.totalorder %v395_v52, 0 }
  0x2f   : > { %330 = vmatpush.msra.mxu0 %v307_v6  ;;  %v317_v19 = vld [vmem:[%s3595_s1 + $0xb0] sm:$0xff]  ;;  %v316_v21 = vld [vmem:[%s3595_s1 + $0xa8] sm:$0xff]  ;;  %v299_v22 = vld [vmem:[%s3595_s1 + $0x20] sm:$0xff] }
  0x30   : > { %353 = vmatpush.msra.mxu1 %v323_v7  ;;  %v315_v23 = vld [vmem:[%s3595_s1 + $0xa0] sm:$0xff]  ;;  %v298_v24 = vld [vmem:[%s3595_s1 + $0x18] sm:$0xff]  ;;  %v297_v26 = vld [vmem:[%s3595_s1 + $0x10] sm:$0xff] }
  0x31   : > { %331 = vmatpush.msra.mxu0 %v306_v8  ;;  %v314_v25 = vld [vmem:[%s3595_s1 + $0x98] sm:$0xff]  ;;  %v313_v27 = vld [vmem:[%s3595_s1 + $0x90] sm:$0xff]  ;;  %v296_v28 = vld [vmem:[%s3595_s1 + $0x8] sm:$0xff] }
  0x32   : > { %354 = vmatpush.msra.mxu1 %v322_v9  ;;  %v312_v29 = vld [vmem:[%s3595_s1 + $0x88] sm:$0xff]  ;;  %v295_v30 = vld [vmem:[%s3595_s1] sm:$0xff]  ;;  %v2712_v34 = vld [vmem:[%s2600_s14 + $0x10] sm:$0xff] }
  0x33   : > { %332 = vmatpush.msra.mxu0 %v305_v10  ;;  %v311_v31 = vld [vmem:[%s3595_s1 + $0x80] sm:$0xff]  ;;  %v292_v33 = vld [vmem:[%s2600_s14 + $0x8] sm:$0xff]  ;;  %v294_v35 = vld [vmem:[%s2600_s14 + $0x18] sm:$0xff] }
  0x34   : > { %355 = vmatpush.msra.mxu1 %v321_v11  ;;  %v2707_v32 = vld [vmem:[%s2600_s14] sm:$0xff]  ;;  %v2749_v2 = vld [vmem:[%s3596_s2 + $0x78] sm:$0xff]  ;;  %v2754_v3 = vld [vmem:[%s3596_s2 + $0x70] sm:$0xff] }
  0x35   : > { %333 = vmatpush.msra.mxu0 %v304_v12  ;;  %450 = vmatpush.msra.mxu2 %v2749_v2  ;;  %v2761_v4 = vld [vmem:[%s3596_s2 + $0x68] sm:$0xff]  ;;  %v2770_v5 = vld [vmem:[%s3596_s2 + $0x60] sm:$0xff]  ;;  %v2779_v6 = vld [vmem:[%s3596_s2 + $0x58] sm:$0xff] }
  0x36   : > { %356 = vmatpush.msra.mxu1 %v320_v13  ;;  %553 = vmatpush.msra.mxu3 %v2749_v2  ;;  %v2788_v7 = vld [vmem:[%s3596_s2 + $0x50] sm:$0xff]  ;;  %v2797_v8 = vld [vmem:[%s3596_s2 + $0x48] sm:$0xff]  ;;  %v2806_v9 = vld [vmem:[%s3596_s2 + $0x40] sm:$0xff] }
  0x37   : > { %334 = vmatpush.msra.mxu0 %v303_v14  ;;  %451 = vmatpush.msra.mxu2 %v2754_v3  ;;  %v2815_v10 = vld [vmem:[%s3596_s2 + $0x38] sm:$0xff]  ;;  %v2834_v13 = vld [vmem:[%s3596_s2 + $0x30] sm:$0xff]  ;;  %v2841_v14 = vld [vmem:[%s3596_s2 + $0x28] sm:$0xff] }
  0x38   : > { %357 = vmatpush.msra.mxu1 %v319_v15  ;;  %554 = vmatpush.msra.mxu3 %v2754_v3  ;;  %v2850_v15 = vld [vmem:[%s3596_s2 + $0x20] sm:$0xff] }
  0x39   : > { %335 = vmatpush.msra.mxu0 %v302_v16  ;;  %452 = vmatpush.msra.mxu2 %v2761_v4  ;;  %v2859_v16 = vld [vmem:[%s3596_s2 + $0x18] sm:$0xff] }
  0x3a   : > { %358 = vmatpush.msra.mxu1 %v318_v17  ;;  %555 = vmatpush.msra.mxu3 %v2761_v4  ;;  %v2868_v17 = vld [vmem:[%s3596_s2 + $0x10] sm:$0xff] }
  0x3b   : > { %336 = vmatpush.msra.mxu0 %v301_v18  ;;  %453 = vmatpush.msra.mxu2 %v2770_v5  ;;  %v2877_v18 = vld [vmem:[%s3596_s2 + $0x8] sm:$0xff] }
  0x3c   : > { %359 = vmatpush.msra.mxu1 %v317_v19  ;;  %556 = vmatpush.msra.mxu3 %v2770_v5  ;;  %v2886_v19 = vld [vmem:[%s3596_s2] sm:$0xff] }
  0x3d   : > { %337 = vmatpush.msra.mxu0 %v300_v20  ;;  %454 = vmatpush.msra.mxu2 %v2779_v6 }
  0x3e   : > { %360 = vmatpush.msra.mxu1 %v316_v21  ;;  %557 = vmatpush.msra.mxu3 %v2779_v6 }
  0x3f   : > { %338 = vmatpush.msra.mxu0 %v299_v22  ;;  %455 = vmatpush.msra.mxu2 %v2788_v7 }
  0x40   : > { %361 = vmatpush.msra.mxu1 %v315_v23  ;;  %558 = vmatpush.msra.mxu3 %v2788_v7 }
  0x41   : > { %339 = vmatpush.msra.mxu0 %v298_v24  ;;  %456 = vmatpush.msra.mxu2 %v2797_v8 }
  0x42   : > { %362 = vmatpush.msra.mxu1 %v314_v25  ;;  %559 = vmatpush.msra.mxu3 %v2797_v8 }
  0x43   : > { %340 = vmatpush.msra.mxu0 %v297_v26  ;;  %457 = vmatpush.msra.mxu2 %v2806_v9 }
  0x44   : > { %363 = vmatpush.msra.mxu1 %v313_v27  ;;  %560 = vmatpush.msra.mxu3 %v2806_v9 }
  0x45   : > { %341 = vmatpush.msra.mxu0 %v296_v28  ;;  %458 = vmatpush.msra.mxu2 %v2815_v10 }
  0x46   : > { %364 = vmatpush.msra.mxu1 %v312_v29  ;;  %561 = vmatpush.msra.mxu3 %v2815_v10 }
  0x47   : > { %342 = vmatpush.msra.mxu0 %v295_v30  ;;  %459 = vmatpush.msra.mxu2 %v2834_v13 }
  0x48   : > { %365 = vmatpush.msra.mxu1 %v311_v31  ;;  %343 = vmatmul.f32.vlgmr.msra.gmra.mxu0 %v2707_v32 }
  0x49   : > { %366 = vmatmul.f32.vlgmr.msra.gmra.mxu1 %v292_v33  ;;  %656 = vmatpush.msrb.mxu0 %v2749_v2 }
  0x4a   : > { %759 = vmatpush.msrb.mxu1 %v2749_v2  ;;  %562 = vmatpush.msra.mxu3 %v2834_v13 }
  0x4b   : > { %657 = vmatpush.msrb.mxu0 %v2754_v3  ;;  %460 = vmatpush.msra.mxu2 %v2841_v14 }
  0x4c   : > { %760 = vmatpush.msrb.mxu1 %v2754_v3  ;;  %563 = vmatpush.msra.mxu3 %v2841_v14 }
  0x4d   : > { %658 = vmatpush.msrb.mxu0 %v2761_v4  ;;  %461 = vmatpush.msra.mxu2 %v2850_v15 }
  0x4e   : > { %761 = vmatpush.msrb.mxu1 %v2761_v4  ;;  %564 = vmatpush.msra.mxu3 %v2850_v15 }
  0x4f   : > { %659 = vmatpush.msrb.mxu0 %v2770_v5  ;;  %462 = vmatpush.msra.mxu2 %v2859_v16 }
  0x50   : > { %346 = vmatmul.f32.gmra.mxu0 %v2712_v34  ;;  %762 = vmatpush.msrb.mxu1 %v2770_v5 }
  0x51   : > { %369 = vmatmul.f32.gmra.mxu1 %v294_v35  ;;  %660 = vmatpush.msrb.mxu0 %v2779_v6 }
  0x52   : > { %763 = vmatpush.msrb.mxu1 %v2779_v6  ;;  %565 = vmatpush.msra.mxu3 %v2859_v16 }
  0x53   : > { %661 = vmatpush.msrb.mxu0 %v2788_v7  ;;  %463 = vmatpush.msra.mxu2 %v2868_v17 }
  0x54   : > { %764 = vmatpush.msrb.mxu1 %v2788_v7  ;;  %566 = vmatpush.msra.mxu3 %v2868_v17 }
  0x55   : > { %662 = vmatpush.msrb.mxu0 %v2797_v8  ;;  %464 = vmatpush.msra.mxu2 %v2877_v18 }
  0x56   : > { %765 = vmatpush.msrb.mxu1 %v2797_v8  ;;  %567 = vmatpush.msra.mxu3 %v2877_v18 }
  0x57   : > { %663 = vmatpush.msrb.mxu0 %v2806_v9  ;;  %465 = vmatpush.msra.mxu2 %v2886_v19 }
  0x58   : > { %766 = vmatpush.msrb.mxu1 %v2806_v9  ;;  %568 = vmatpush.msra.mxu3 %v2886_v19 }
  0x59   : > { %664 = vmatpush.msrb.mxu0 %v2815_v10  ;;  %862 = vmatpush.msrb.mxu2 %v2749_v2 }
  0x5a   : > { %767 = vmatpush.msrb.mxu1 %v2815_v10  ;;  %965 = vmatpush.msrb.mxu3 %v2749_v2 }
  0x5b   : > { %665 = vmatpush.msrb.mxu0 %v2834_v13  ;;  %863 = vmatpush.msrb.mxu2 %v2754_v3 }
  0x5c   : > { %768 = vmatpush.msrb.mxu1 %v2834_v13  ;;  %966 = vmatpush.msrb.mxu3 %v2754_v3 }
  0x5d   : > { %666 = vmatpush.msrb.mxu0 %v2841_v14  ;;  %864 = vmatpush.msrb.mxu2 %v2761_v4 }
  0x5e   : > { %769 = vmatpush.msrb.mxu1 %v2841_v14  ;;  %967 = vmatpush.msrb.mxu3 %v2761_v4 }
  0x5f   : > { %667 = vmatpush.msrb.mxu0 %v2850_v15  ;;  %865 = vmatpush.msrb.mxu2 %v2770_v5 }
  0x60   : > { %770 = vmatpush.msrb.mxu1 %v2850_v15  ;;  %968 = vmatpush.msrb.mxu3 %v2770_v5 }
  0x61   : > { %668 = vmatpush.msrb.mxu0 %v2859_v16  ;;  %866 = vmatpush.msrb.mxu2 %v2779_v6 }
  0x62   : > { %771 = vmatpush.msrb.mxu1 %v2859_v16  ;;  %969 = vmatpush.msrb.mxu3 %v2779_v6 }
  0x63   : > { %669 = vmatpush.msrb.mxu0 %v2868_v17  ;;  %867 = vmatpush.msrb.mxu2 %v2788_v7 }
  0x64   : > { %772 = vmatpush.msrb.mxu1 %v2868_v17  ;;  %970 = vmatpush.msrb.mxu3 %v2788_v7 }
  0x65   : > { %670 = vmatpush.msrb.mxu0 %v2877_v18  ;;  %868 = vmatpush.msrb.mxu2 %v2797_v8 }
  0x66   : > { %773 = vmatpush.msrb.mxu1 %v2877_v18  ;;  %971 = vmatpush.msrb.mxu3 %v2797_v8 }
  0x67   : > { %671 = vmatpush.msrb.mxu0 %v2886_v19  ;;  %869 = vmatpush.msrb.mxu2 %v2806_v9 }
  0x68   : > { %774 = vmatpush.msrb.mxu1 %v2886_v19  ;;  %972 = vmatpush.msrb.mxu3 %v2806_v9 }
  0x69   : > { %1068 = vmatpush.msra.mxu0 %v2749_v2  ;;  %870 = vmatpush.msrb.mxu2 %v2815_v10 }
  0x6a   : > { %1171 = vmatpush.msra.mxu1 %v2749_v2  ;;  %973 = vmatpush.msrb.mxu3 %v2815_v10 }
  0x6b   : > { %1069 = vmatpush.msra.mxu0 %v2754_v3  ;;  %871 = vmatpush.msrb.mxu2 %v2834_v13 }
  0x6c   : > { %1172 = vmatpush.msra.mxu1 %v2754_v3  ;;  %974 = vmatpush.msrb.mxu3 %v2834_v13 }
  0x6d   : > { %1070 = vmatpush.msra.mxu0 %v2761_v4  ;;  %872 = vmatpush.msrb.mxu2 %v2841_v14 }
  0x6e   : > { %1173 = vmatpush.msra.mxu1 %v2761_v4  ;;  %975 = vmatpush.msrb.mxu3 %v2841_v14 }
  0x6f   : > { %1071 = vmatpush.msra.mxu0 %v2770_v5  ;;  %873 = vmatpush.msrb.mxu2 %v2850_v15 }
  0x70   : > { %1174 = vmatpush.msra.mxu1 %v2770_v5  ;;  %976 = vmatpush.msrb.mxu3 %v2850_v15 }
  0x71   : > { %1072 = vmatpush.msra.mxu0 %v2779_v6  ;;  %874 = vmatpush.msrb.mxu2 %v2859_v16 }
  0x72   : > { %1175 = vmatpush.msra.mxu1 %v2779_v6  ;;  %977 = vmatpush.msrb.mxu3 %v2859_v16 }
  0x73   : > { %1073 = vmatpush.msra.mxu0 %v2788_v7  ;;  %875 = vmatpush.msrb.mxu2 %v2868_v17 }
  0x74   : > { %1176 = vmatpush.msra.mxu1 %v2788_v7  ;;  %978 = vmatpush.msrb.mxu3 %v2868_v17 }
  0x75   : > { %1074 = vmatpush.msra.mxu0 %v2797_v8  ;;  %876 = vmatpush.msrb.mxu2 %v2877_v18 }
  0x76   : > { %1177 = vmatpush.msra.mxu1 %v2797_v8  ;;  %979 = vmatpush.msrb.mxu3 %v2877_v18 }
  0x77   : > { %1075 = vmatpush.msra.mxu0 %v2806_v9  ;;  %877 = vmatpush.msrb.mxu2 %v2886_v19 }
  0x78   : > { %1178 = vmatpush.msra.mxu1 %v2806_v9  ;;  %980 = vmatpush.msrb.mxu3 %v2886_v19 }
  0x79   : > { %1076 = vmatpush.msra.mxu0 %v2815_v10 }
  0x7a   : > { %1179 = vmatpush.msra.mxu1 %v2815_v10 }
  0x7b   : > { %1077 = vmatpush.msra.mxu0 %v2834_v13 }
  0x7c   : > { %1180 = vmatpush.msra.mxu1 %v2834_v13 }
  0x7d   : > { %1078 = vmatpush.msra.mxu0 %v2841_v14 }
  0x7e   : > { %1181 = vmatpush.msra.mxu1 %v2841_v14 }
  0x7f   : > { %1079 = vmatpush.msra.mxu0 %v2850_v15 }
  0x80   : > { %1182 = vmatpush.msra.mxu1 %v2850_v15 }
  0x81   : > { %1080 = vmatpush.msra.mxu0 %v2859_v16 }
  0x82   : > { %1183 = vmatpush.msra.mxu1 %v2859_v16 }
  0x83   : > { %1081 = vmatpush.msra.mxu0 %v2868_v17 }
  0x84   : > { %1184 = vmatpush.msra.mxu1 %v2868_v17 }
  0x85   : > { %1082 = vmatpush.msra.mxu0 %v2877_v18 }
  0x86   : > { %1185 = vmatpush.msra.mxu1 %v2877_v18 }
  0x87   : > { %1083 = vmatpush.msra.mxu0 %v2886_v19 }
  0x88   : > { %1186 = vmatpush.msra.mxu1 %v2886_v19 }
  0xc5   : > { %v344_v36 = vpop.f32.mrf.mxu0 }
  0xc6   : > { %v367_v37 = vpop.f32.mrf.mxu1 }
  0xc7   : > { %v2716_v38 = vadd.f32 %v367_v37, %v344_v36 }
  0xc9   : > { %406 = vrot.lane.b32.xlu0 %v2716_v38, %s2473_s19 }
  0xcd   : > { %v347_v39 = vpop.f32.mrf.mxu0 }
  0xce   : > { %v370_v40 = vpop.f32.mrf.mxu1 }
  0xcf   : > { %v2720_v41 = vadd.f32 %v370_v40, %v347_v39 }
  0xd1   : > { %408 = vrot.lane.b32.xlu0 %v2720_v41, %s2473_s19 }
 0x13b   : > { %v407_v42 = vpop.permute.xlu0 %406 }
 0x13c   : > { %v410_v43 = vmax.f32 %v2716_v38, %v407_v42 }
 0x13e   : > { %412 = vrot.lane.b32.xlu1 %v410_v43, %s2474_s16 }
 0x143   : > { %v409_v44 = vpop.permute.xlu0 %408 }
 0x144   : > { %v411_v45 = vmax.f32 %v2720_v41, %v409_v44 }
 0x146   : > { %414 = vrot.lane.b32.xlu1 %v411_v45, %s2474_s16 }
 0x1b0   : > { %v413_v46 = vpop.permute.xlu1 %412 }
 0x1b1   : > { %v416_v47 = vmax.f32 %v410_v43, %v413_v46 }
 0x1b3   : > { %418 = vrot.lane.b32.xlu2 %v416_v47, %s2475_s15 }
 0x1b8   : > { %v415_v48 = vpop.permute.xlu1 %414 }
 0x1b9   : > { %v417_v49 = vmax.f32 %v411_v45, %v415_v48 }
 0x1bb   : > { %420 = vrot.lane.b32.xlu2 %v417_v49, %s2475_s15 }
 0x20d   : > { %v419_v53 = vpop.permute.xlu2 %418 }
 0x20e   : > { %v422_v55 = vmax.f32 %v416_v47, %v419_v53 }
 0x210   : > { %v424_v56 = vsel %vm2730_vm0, %v422_v55, -inf }
 0x211   : > { %426 = vrot.lane.b32.xlu0 %v424_v56, %s2476_s18 }
 0x215   : > { %v421_v57 = vpop.permute.xlu2 %420 }
 0x216   : > { %v423_v58 = vmax.f32 %v417_v49, %v421_v57 }
 0x218   : > { %v425_v59 = vsel %vm2730_vm0, %v423_v58, -inf }
 0x219   : > { %428 = vrot.lane.b32.xlu1 %v425_v59, %s2476_s18 }
 0x283   : > { %v427_v60 = vpop.permute.xlu0 %426 }
 0x284   : > { %v430_v61 = vmax.f32 %v424_v56, %v427_v60 }
 0x286   : > { %432 = vrot.lane.b32.xlu2 %v430_v61, %s2477_s20 }
 0x28b   : > { %v429_v62 = vpop.permute.xlu1 %428 }
 0x28c   : > { %v431_v63 = vmax.f32 %v425_v59, %v429_v62 }
 0x28e   : > { %434 = vrot.lane.b32.xlu0 %v431_v63, %s2477_s20 }
 0x2e0   : > { %v433_v0 = vpop.permute.xlu2 %432 }
 0x2e1   : > { %v2742_v1 = vmax.f32 %v430_v61, %v433_v0 }
 0x2e3   : > { %438 = vrot.lane.b32.xlu1 %v2742_v1, %s2478_s21 }
 0x300   : > { %v435_v11 = vpop.permute.xlu0 %434 }
 0x301   : > { %v2827_v12 = vmax.f32 %v431_v63, %v435_v11 }
 0x303   : > { %440 = vrot.lane.b32.xlu2 %v2827_v12, %s2478_s21 }
 0x355   : > { %v439_v20 = vpop.permute.xlu1 %438 }
 0x356   : > { %v2931_v21 = vmax.f32 %v2742_v1, %v439_v20 }
 0x358   : > { %v444_v22 = vsub.f32 %v2716_v38, %v2931_v21 }
 0x35a   : > { %v446_v23 = vmul.f32 1.442695, %v444_v22 }
 0x35c   : > { %2223 = vpow2.f32 %v446_v23 }
 0x35d   : > { %v441_v24 = vpop.permute.xlu2 %440 }
 0x35e   : > { %v443_v25 = vmax.f32 %v2827_v12, %v441_v24 }
 0x360   : > { %v445_v26 = vsub.f32 %v2720_v41, %v443_v25 }
 0x362   : > { %v2224_v27 = vpop.eup %2223  ;;  %v448_v28 = vmul.f32 1.442695, %v445_v26 }
 0x363   : > { %466 = vmatmul.f32.vlgmr.msra.gmra.mxu2 %v2224_v27 }
 0x364   : > { %2225 = vpow2.f32 %v448_v28  ;;  %1274 = vmatpush.msra.mxu2 %v2749_v2 }
 0x366   : > { %1275 = vmatpush.msra.mxu2 %v2754_v3 }
 0x368   : > { %1276 = vmatpush.msra.mxu2 %v2761_v4 }
 0x36a   : > { %v2226_v29 = vpop.eup %2225  ;;  %1277 = vmatpush.msra.mxu2 %v2770_v5 }
 0x36b   : > { %469 = vmatmul.f32.gmra.mxu2 %v2226_v29 }
 0x36c   : > { %1278 = vmatpush.msra.mxu2 %v2779_v6 }
 0x36e   : > { %1279 = vmatpush.msra.mxu2 %v2788_v7 }
 0x370   : > { %1280 = vmatpush.msra.mxu2 %v2797_v8 }
 0x372   : > { %1281 = vmatpush.msra.mxu2 %v2806_v9 }
 0x374   : > { %1282 = vmatpush.msra.mxu2 %v2815_v10 }
 0x376   : > { %1283 = vmatpush.msra.mxu2 %v2834_v13 }
 0x378   : > { %1284 = vmatpush.msra.mxu2 %v2841_v14 }
 0x37a   : > { %1285 = vmatpush.msra.mxu2 %v2850_v15 }
 0x37c   : > { %1286 = vmatpush.msra.mxu2 %v2859_v16 }
 0x37e   : > { %1287 = vmatpush.msra.mxu2 %v2868_v17 }
 0x380   : > { %1288 = vmatpush.msra.mxu2 %v2877_v18 }
 0x382   : > { %1289 = vmatpush.msra.mxu2 %v2886_v19 }
 0x3e6   : > { %v467_v30 = vpop.f32.mrf.mxu2 }
 0x3e7   : > { %2227 = vlog2.f32 %v467_v30 }
 0x3ed   : > { %v2228_v31 = vpop.eup %2227 }
 0x3ee   : > { %v470_v33 = vpop.f32.mrf.mxu2  ;;  %v474_v35 = vmul.f32 0.6931472, %v2228_v31 }
 0x3ef   : > { %2229 = vlog2.f32 %v470_v33 }
 0x3f0   : > { %v477_v36 = vadd.f32 %v474_v35, %v2931_v21 }
 0x3f2   : > { %v479_v40 = vsub.f32 -0.6931472, %v477_v36 }
 0x3f4   : > { %v481_v44 = vadd.f32 %v479_v40, %v2716_v38 }
 0x3f5   : > { %v2230_v37 = vpop.eup %2229 }
 0x3f6   : > { %v476_v39 = vmul.f32 0.6931472, %v2230_v37 }
 0x3f8   : > { %v478_v42 = vadd.f32 %v476_v39, %v443_v25 }
 0x3fa   : > { %v480_v43 = vsub.f32 -0.6931472, %v478_v42 }
 0x3fc   : > { %v482_v45 = vadd.f32 %v480_v43, %v2720_v41 }
 0x3fe   : > { %v483_v46 = vmax.f32 %v481_v44, %v482_v45 }
 0x400   : > { %v484_v47 = vrot.slane %v483_v46, 4 }
 0x402   : > { %v485_v48 = vmax.f32 %v483_v46, %v484_v47 }
 0x404   : > { %v486_v49 = vrot.slane %v485_v48, 2 }
 0x406   : > { %v487_v50 = vmax.f32 %v485_v48, %v486_v49 }
 0x408   : > { %v488_v51 = vrot.slane %v487_v50, 1 }
 0x40a   : > { %v489_v52 = vmax.f32 %v487_v50, %v488_v51 }
 0x40c   : > { %v490_v53 = vsub.f32 %v481_v44, %v489_v52  ;;  %v491_v55 = vsub.f32 %v482_v45, %v489_v52 }
 0x40e   : > { %v492_v56 = vmul.f32 1.442695, %v490_v53  ;;  %v494_v57 = vmul.f32 1.442695, %v491_v55 }
 0x410   : > { %2231 = vpow2.f32 %v492_v56 }
 0x411   : > { %2233 = vpow2.f32 %v494_v57 }
 0x416   : > { %v2232_v58 = vpop.eup %2231 }
 0x417   : > { %v2234_v59 = vpop.eup %2233 }
 0x418   : > { %v496_v60 = vadd.f32 %v2234_v59, %v2232_v58 }
 0x41a   : > { %v497_v61 = vrot.slane %v496_v60, 4 }
 0x41c   : > { %v498_v62 = vadd.f32 %v497_v61, %v496_v60 }
 0x41e   : > { %v499_v63 = vrot.slane %v498_v62, 2 }
 0x420   : > { %v500_v0 = vadd.f32 %v499_v63, %v498_v62 }
 0x422   : > { %v501_v1 = vrot.slane %v500_v0, 1 }
 0x424   : > { %v502_v11 = vadd.f32 %v501_v1, %v500_v0 }
 0x426   : > { %2235 = vlog2.f32 %v502_v11 }
 0x42c   : > { %v2236_v12 = vpop.eup %2235 }
 0x42d   : > { %v504_v20 = vmul.f32 0.6931472, %v2236_v12 }
 0x42f   : > { %v505_v21 = vadd.f32 %v504_v20, %v489_v52 }
 0x431   : > { %v506_v22 = vsub.f32 0.0, %v505_v21 }
 0x433   : > { %v508_v23 = vadd.f32 %v506_v22, %v2720_v41  ;;  %v507_v24 = vadd.f32 %v506_v22, %v2716_v38 }
 0x435   : > { %511 = vrot.lane.b32.xlu1 %v508_v23, %s2473_s19  ;;  %509 = vrot.lane.b32.xlu0 %v507_v24, %s2473_s19 }
 0x4a7   : > { %v512_v25 = vpop.permute.xlu1 %511  ;;  %v510_v26 = vpop.permute.xlu0 %509 }
 0x4a8   : > { %v514_v27 = vmax.f32 %v508_v23, %v512_v25  ;;  %v513_v28 = vmax.f32 %v507_v24, %v510_v26 }
 0x4aa   : > { %517 = vrot.lane.b32.xlu0 %v514_v27, %s2474_s16  ;;  %515 = vrot.lane.b32.xlu2 %v513_v28, %s2474_s16 }
 0x504   : > { %v516_v29 = vpop.permute.xlu2 %515 }
 0x505   : > { %v519_v30 = vmax.f32 %v513_v28, %v516_v29 }
 0x507   : > { %521 = vrot.lane.b32.xlu1 %v519_v30, %s2475_s15 }
 0x51c   : > { %v518_v31 = vpop.permute.xlu0 %517 }
 0x51d   : > { %v520_v33 = vmax.f32 %v514_v27, %v518_v31 }
 0x51f   : > { %523 = vrot.lane.b32.xlu2 %v520_v33, %s2475_s15 }
 0x579   : > { %v522_v35 = vpop.permute.xlu1 %521  ;;  %v524_v36 = vpop.permute.xlu2 %523 }
 0x57a   : > { %v525_v37 = vmax.f32 %v519_v30, %v522_v35  ;;  %v526_v39 = vmax.f32 %v520_v33, %v524_v36 }
 0x57c   : > { %v527_v40 = vsel %vm2730_vm0, %v525_v37, -inf  ;;  %v528_v42 = vsel %vm2730_vm0, %v526_v39, -inf }
 0x57d   : > { %529 = vrot.lane.b32.xlu0 %v527_v40, %s2476_s18  ;;  %531 = vrot.lane.b32.xlu1 %v528_v42, %s2476_s18 }
 0x5ef   : > { %v532_v43 = vpop.permute.xlu1 %531  ;;  %v530_v44 = vpop.permute.xlu0 %529 }
 0x5f0   : > { %v534_v45 = vmax.f32 %v528_v42, %v532_v43  ;;  %v533_v46 = vmax.f32 %v527_v40, %v530_v44 }
 0x5f2   : > { %537 = vrot.lane.b32.xlu0 %v534_v45, %s2477_s20  ;;  %535 = vrot.lane.b32.xlu2 %v533_v46, %s2477_s20 }
 0x64c   : > { %v536_v47 = vpop.permute.xlu2 %535 }
 0x64d   : > { %v539_v48 = vmax.f32 %v533_v46, %v536_v47 }
 0x64f   : > { %541 = vrot.lane.b32.xlu1 %v539_v48, %s2478_s21 }
 0x664   : > { %v538_v49 = vpop.permute.xlu0 %537 }
 0x665   : > { %v540_v50 = vmax.f32 %v534_v45, %v538_v49 }
 0x667   : > { %543 = vrot.lane.b32.xlu2 %v540_v50, %s2478_s21 }
 0x6c1   : > { %v542_v51 = vpop.permute.xlu1 %541  ;;  %v544_v52 = vpop.permute.xlu2 %543 }
 0x6c2   : > { %v545_v53 = vmax.f32 %v539_v48, %v542_v51  ;;  %v546_v56 = vmax.f32 %v540_v50, %v544_v52 }
 0x6c4   : > { %v547_v55 = vsub.f32 %v507_v24, %v545_v53  ;;  %v548_v58 = vsub.f32 %v508_v23, %v546_v56 }
 0x6c6   : > { %v549_v57 = vmul.f32 1.442695, %v547_v55  ;;  %v551_v59 = vmul.f32 1.442695, %v548_v58 }
 0x6c8   : > { %2237 = vpow2.f32 %v549_v57 }
 0x6c9   : > { %2239 = vpow2.f32 %v551_v59 }
 0x6ce   : > { %v2238_v60 = vpop.eup %2237 }
 0x6cf   : > { %569 = vmatmul.f32.vlgmr.msra.gmra.mxu3 %v2238_v60  ;;  %v2240_v61 = vpop.eup %2239 }
 0x6d0   : > { %1377 = vmatpush.msra.mxu3 %v2749_v2 }
 0x6d2   : > { %1378 = vmatpush.msra.mxu3 %v2754_v3 }
 0x6d4   : > { %1379 = vmatpush.msra.mxu3 %v2761_v4 }
 0x6d6   : > { %1380 = vmatpush.msra.mxu3 %v2770_v5 }
 0x6d7   : > { %572 = vmatmul.f32.gmra.mxu3 %v2240_v61 }
 0x6d8   : > { %1381 = vmatpush.msra.mxu3 %v2779_v6 }
 0x6da   : > { %1382 = vmatpush.msra.mxu3 %v2788_v7 }
 0x6dc   : > { %1383 = vmatpush.msra.mxu3 %v2797_v8 }
 0x6de   : > { %1384 = vmatpush.msra.mxu3 %v2806_v9 }
 0x6e0   : > { %1385 = vmatpush.msra.mxu3 %v2815_v10 }
 0x6e2   : > { %1386 = vmatpush.msra.mxu3 %v2834_v13 }
 0x6e4   : > { %1387 = vmatpush.msra.mxu3 %v2841_v14 }
 0x6e6   : > { %1388 = vmatpush.msra.mxu3 %v2850_v15 }
 0x6e8   : > { %1389 = vmatpush.msra.mxu3 %v2859_v16 }
 0x6ea   : > { %1390 = vmatpush.msra.mxu3 %v2868_v17 }
 0x6ec   : > { %1391 = vmatpush.msra.mxu3 %v2877_v18 }
 0x6ee   : > { %1392 = vmatpush.msra.mxu3 %v2886_v19 }
 0x752   : > { %v570_v2 = vpop.f32.mrf.mxu3 }
 0x753   : > { %2241 = vlog2.f32 %v570_v2 }
 0x759   : > { %v2242_v3 = vpop.eup %2241 }
 0x75a   : > { %v573_v4 = vpop.f32.mrf.mxu3  ;;  %v577_v5 = vmul.f32 0.6931472, %v2242_v3 }
 0x75b   : > { %2243 = vlog2.f32 %v573_v4 }
 0x75c   : > { %v580_v6 = vadd.f32 %v577_v5, %v545_v53 }
 0x75e   : > { %v582_v9 = vsub.f32 -0.6931472, %v580_v6 }
 0x760   : > { %v584_v14 = vadd.f32 %v582_v9, %v2716_v38 }
 0x761   : > { %v2244_v7 = vpop.eup %2243 }
 0x762   : > { %v579_v8 = vmul.f32 0.6931472, %v2244_v7 }
 0x764   : > { %v581_v10 = vadd.f32 %v579_v8, %v546_v56 }
 0x766   : > { %v583_v13 = vsub.f32 -0.6931472, %v581_v10 }
 0x768   : > { %v585_v15 = vadd.f32 %v583_v13, %v2720_v41 }
 0x76a   : > { %v586_v16 = vmax.f32 %v584_v14, %v585_v15 }
 0x76c   : > { %v587_v17 = vrot.slane %v586_v16, 4 }
 0x76e   : > { %v588_v18 = vmax.f32 %v586_v16, %v587_v17 }
 0x770   : > { %v589_v19 = vrot.slane %v588_v18, 2 }
 0x772   : > { %v590_v62 = vmax.f32 %v588_v18, %v589_v19 }
 0x774   : > { %v591_v63 = vrot.slane %v590_v62, 1 }
 0x776   : > { %v592_v0 = vmax.f32 %v590_v62, %v591_v63 }
 0x778   : > { %v593_v1 = vsub.f32 %v584_v14, %v592_v0  ;;  %v594_v11 = vsub.f32 %v585_v15, %v592_v0 }
 0x77a   : > { %v595_v12 = vmul.f32 1.442695, %v593_v1  ;;  %v597_v20 = vmul.f32 1.442695, %v594_v11 }
 0x77c   : > { %2245 = vpow2.f32 %v595_v12 }
 0x77d   : > { %2247 = vpow2.f32 %v597_v20 }
 0x782   : > { %v2246_v21 = vpop.eup %2245 }
 0x783   : > { %v2248_v22 = vpop.eup %2247 }
 0x784   : > { %v599_v23 = vadd.f32 %v2248_v22, %v2246_v21 }
 0x786   : > { %v600_v24 = vrot.slane %v599_v23, 4 }
 0x788   : > { %v601_v25 = vadd.f32 %v600_v24, %v599_v23 }
 0x78a   : > { %v602_v26 = vrot.slane %v601_v25, 2 }
 0x78c   : > { %v603_v27 = vadd.f32 %v602_v26, %v601_v25 }
 0x78e   : > { %v604_v28 = vrot.slane %v603_v27, 1 }
 0x790   : > { %v605_v29 = vadd.f32 %v604_v28, %v603_v27 }
 0x792   : > { %2249 = vlog2.f32 %v605_v29 }
 0x798   : > { %v2250_v30 = vpop.eup %2249 }
 0x799   : > { %v607_v31 = vmul.f32 0.6931472, %v2250_v30 }
 0x79b   : > { %v608_v33 = vadd.f32 %v607_v31, %v592_v0 }
 0x79d   : > { %v609_v35 = vsub.f32 0.0, %v608_v33 }
 0x79f   : > { %v611_v36 = vadd.f32 %v609_v35, %v2720_v41  ;;  %v610_v37 = vadd.f32 %v609_v35, %v2716_v38 }
 0x7a1   : > { %614 = vrot.lane.b32.xlu1 %v611_v36, %s2473_s19  ;;  %612 = vrot.lane.b32.xlu0 %v610_v37, %s2473_s19 }
 0x813   : > { %v615_v39 = vpop.permute.xlu1 %614  ;;  %v613_v40 = vpop.permute.xlu0 %612 }
 0x814   : > { %v617_v42 = vmax.f32 %v611_v36, %v615_v39  ;;  %v616_v43 = vmax.f32 %v610_v37, %v613_v40 }
 0x816   : > { %620 = vrot.lane.b32.xlu0 %v617_v42, %s2474_s16  ;;  %618 = vrot.lane.b32.xlu2 %v616_v43, %s2474_s16 }
 0x870   : > { %v619_v44 = vpop.permute.xlu2 %618 }
 0x871   : > { %v622_v45 = vmax.f32 %v616_v43, %v619_v44 }
 0x873   : > { %624 = vrot.lane.b32.xlu1 %v622_v45, %s2475_s15 }
 0x888   : > { %v621_v46 = vpop.permute.xlu0 %620 }
 0x889   : > { %v623_v47 = vmax.f32 %v617_v42, %v621_v46 }
 0x88b   : > { %626 = vrot.lane.b32.xlu2 %v623_v47, %s2475_s15 }
 0x8e5   : > { %v625_v48 = vpop.permute.xlu1 %624  ;;  %v627_v49 = vpop.permute.xlu2 %626 }
 0x8e6   : > { %v628_v50 = vmax.f32 %v622_v45, %v625_v48  ;;  %v629_v51 = vmax.f32 %v623_v47, %v627_v49 }
 0x8e8   : > { %v630_v52 = vsel %vm2730_vm0, %v628_v50, -inf  ;;  %v631_v53 = vsel %vm2730_vm0, %v629_v51, -inf }
 0x8e9   : > { %632 = vrot.lane.b32.xlu0 %v630_v52, %s2476_s18  ;;  %634 = vrot.lane.b32.xlu1 %v631_v53, %s2476_s18 }
 0x95b   : > { %v635_v55 = vpop.permute.xlu1 %634  ;;  %v633_v56 = vpop.permute.xlu0 %632 }
 0x95c   : > { %v637_v57 = vmax.f32 %v631_v53, %v635_v55  ;;  %v636_v58 = vmax.f32 %v630_v52, %v633_v56 }
 0x95e   : > { %640 = vrot.lane.b32.xlu0 %v637_v57, %s2477_s20  ;;  %638 = vrot.lane.b32.xlu2 %v636_v58, %s2477_s20 }
 0x9b8   : > { %v639_v59 = vpop.permute.xlu2 %638 }
 0x9b9   : > { %v642_v60 = vmax.f32 %v636_v58, %v639_v59 }
 0x9bb   : > { %644 = vrot.lane.b32.xlu1 %v642_v60, %s2478_s21 }
 0x9d0   : > { %v641_v61 = vpop.permute.xlu0 %640 }
 0x9d1   : > { %v643_v2 = vmax.f32 %v637_v57, %v641_v61 }
 0x9d3   : > { %646 = vrot.lane.b32.xlu2 %v643_v2, %s2478_s21 }
 0xa2d   : > { %v645_v3 = vpop.permute.xlu1 %644  ;;  %v647_v4 = vpop.permute.xlu2 %646 }
 0xa2e   : > { %v648_v5 = vmax.f32 %v642_v60, %v645_v3  ;;  %v649_v7 = vmax.f32 %v643_v2, %v647_v4 }
 0xa30   : > { %v650_v6 = vsub.f32 %v610_v37, %v648_v5  ;;  %v651_v9 = vsub.f32 %v611_v36, %v649_v7 }
 0xa32   : > { %v652_v8 = vmul.f32 1.442695, %v650_v6  ;;  %v654_v10 = vmul.f32 1.442695, %v651_v9 }
 0xa34   : > { %2251 = vpow2.f32 %v652_v8 }
 0xa35   : > { %2253 = vpow2.f32 %v654_v10 }
 0xa3a   : > { %v2252_v13 = vpop.eup %2251 }
 0xa3b   : > { %672 = vmatmul.f32.vlgmr.msrb.gmra.mxu0 %v2252_v13  ;;  %v2254_v14 = vpop.eup %2253 }
 0xa3c   : > { %1535 = vmatpush.msrb.mxu0 %v2712_v34 }
 0xa3e   : > { %1536 = vmatpush.msrb.mxu0 %v2707_v32 }
 0xa43   : > { %675 = vmatmul.f32.gmra.mxu0 %v2254_v14 }
 0xab8   : > { %v673_v15 = vpop.f32.mrf.mxu0 }
 0xab9   : > { %2255 = vlog2.f32 %v673_v15 }
 0xabf   : > { %v2256_v16 = vpop.eup %2255 }
 0xac0   : > { %v676_v17 = vpop.f32.mrf.mxu0  ;;  %v680_v18 = vmul.f32 0.6931472, %v2256_v16 }
 0xac1   : > { %2257 = vlog2.f32 %v676_v17 }
 0xac2   : > { %v683_v19 = vadd.f32 %v680_v18, %v648_v5 }
 0xac4   : > { %v685_v0 = vsub.f32 -0.6931472, %v683_v19 }
 0xac6   : > { %v687_v12 = vadd.f32 %v685_v0, %v2716_v38 }
 0xac7   : > { %v2258_v62 = vpop.eup %2257 }
 0xac8   : > { %v682_v63 = vmul.f32 0.6931472, %v2258_v62 }
 0xaca   : > { %v684_v1 = vadd.f32 %v682_v63, %v649_v7 }
 0xacc   : > { %v686_v11 = vsub.f32 -0.6931472, %v684_v1  ;;  %v2367_v1 = vld [vmem:[%s2600_s14 + $0x18] sm:$0xff] }
 0xace   : > { %v688_v34 = vadd.f32 %v686_v11, %v2720_v41  ;;  %v2368_v11 = vld [vmem:[%s2600_s14 + $0x8] sm:$0xff] }
 0xad0   : > { %v689_v20 = vmax.f32 %v687_v12, %v688_v34 }
 0xad2   : > { %v690_v32 = vrot.slane %v689_v20, 4 }
 0xad4   : > { %v691_v21 = vmax.f32 %v689_v20, %v690_v32 }
 0xad6   : > { %v692_v22 = vrot.slane %v691_v21, 2 }
 0xad8   : > { %v693_v23 = vmax.f32 %v691_v21, %v692_v22 }
 0xada   : > { %v694_v24 = vrot.slane %v693_v23, 1 }
 0xadc   : > { %v695_v25 = vmax.f32 %v693_v23, %v694_v24 }
 0xade   : > { %v696_v26 = vsub.f32 %v687_v12, %v695_v25  ;;  %v697_v27 = vsub.f32 %v688_v34, %v695_v25 }
 0xae0   : > { %v698_v28 = vmul.f32 1.442695, %v696_v26  ;;  %v700_v29 = vmul.f32 1.442695, %v697_v27 }
 0xae2   : > { %2259 = vpow2.f32 %v698_v28 }
 0xae3   : > { %2261 = vpow2.f32 %v700_v29 }
 0xae8   : > { %v2260_v30 = vpop.eup %2259 }
 0xae9   : > { %v2262_v31 = vpop.eup %2261 }
 0xaea   : > { %v702_v33 = vadd.f32 %v2262_v31, %v2260_v30 }
 0xaec   : > { %v703_v35 = vrot.slane %v702_v33, 4 }
 0xaee   : > { %v704_v36 = vadd.f32 %v703_v35, %v702_v33 }
 0xaf0   : > { %v705_v37 = vrot.slane %v704_v36, 2 }
 0xaf2   : > { %v706_v39 = vadd.f32 %v705_v37, %v704_v36 }
 0xaf4   : > { %v707_v40 = vrot.slane %v706_v39, 1 }
 0xaf6   : > { %v708_v42 = vadd.f32 %v707_v40, %v706_v39 }
 0xaf8   : > { %2263 = vlog2.f32 %v708_v42 }
 0xafe   : > { %v2264_v43 = vpop.eup %2263 }
 0xaff   : > { %v710_v44 = vmul.f32 0.6931472, %v2264_v43 }
 0xb01   : > { %v711_v45 = vadd.f32 %v710_v44, %v695_v25 }
 0xb03   : > { %v712_v46 = vsub.f32 0.0, %v711_v45 }
 0xb05   : > { %v714_v47 = vadd.f32 %v712_v46, %v2720_v41  ;;  %v713_v48 = vadd.f32 %v712_v46, %v2716_v38 }
 0xb07   : > { %717 = vrot.lane.b32.xlu1 %v714_v47, %s2473_s19  ;;  %715 = vrot.lane.b32.xlu0 %v713_v48, %s2473_s19 }
 0xb79   : > { %v718_v49 = vpop.permute.xlu1 %717  ;;  %v716_v50 = vpop.permute.xlu0 %715 }
 0xb7a   : > { %v720_v51 = vmax.f32 %v714_v47, %v718_v49  ;;  %v719_v52 = vmax.f32 %v713_v48, %v716_v50 }
 0xb7c   : > { %723 = vrot.lane.b32.xlu0 %v720_v51, %s2474_s16  ;;  %721 = vrot.lane.b32.xlu2 %v719_v52, %s2474_s16 }
 0xbd6   : > { %v722_v53 = vpop.permute.xlu2 %721 }
 0xbd7   : > { %v725_v55 = vmax.f32 %v719_v52, %v722_v53 }
 0xbd9   : > { %727 = vrot.lane.b32.xlu1 %v725_v55, %s2475_s15 }
 0xbee   : > { %v724_v56 = vpop.permute.xlu0 %723 }
 0xbef   : > { %v726_v57 = vmax.f32 %v720_v51, %v724_v56 }
 0xbf1   : > { %729 = vrot.lane.b32.xlu2 %v726_v57, %s2475_s15 }
 0xc4b   : > { %v728_v58 = vpop.permute.xlu1 %727  ;;  %v730_v59 = vpop.permute.xlu2 %729 }
 0xc4c   : > { %v731_v60 = vmax.f32 %v725_v55, %v728_v58  ;;  %v732_v61 = vmax.f32 %v726_v57, %v730_v59 }
 0xc4e   : > { %v733_v2 = vsel %vm2730_vm0, %v731_v60, -inf  ;;  %v734_v3 = vsel %vm2730_vm0, %v732_v61, -inf }
 0xc4f   : > { %735 = vrot.lane.b32.xlu0 %v733_v2, %s2476_s18  ;;  %737 = vrot.lane.b32.xlu1 %v734_v3, %s2476_s18 }
 0xcc1   : > { %v738_v4 = vpop.permute.xlu1 %737  ;;  %v736_v5 = vpop.permute.xlu0 %735 }
 0xcc2   : > { %v740_v6 = vmax.f32 %v734_v3, %v738_v4  ;;  %v739_v7 = vmax.f32 %v733_v2, %v736_v5 }
 0xcc4   : > { %743 = vrot.lane.b32.xlu0 %v740_v6, %s2477_s20  ;;  %741 = vrot.lane.b32.xlu2 %v739_v7, %s2477_s20 }
 0xd1e   : > { %v742_v8 = vpop.permute.xlu2 %741 }
 0xd1f   : > { %v745_v9 = vmax.f32 %v739_v7, %v742_v8 }
 0xd21   : > { %747 = vrot.lane.b32.xlu1 %v745_v9, %s2478_s21 }
 0xd36   : > { %v744_v10 = vpop.permute.xlu0 %743 }
 0xd37   : > { %v746_v13 = vmax.f32 %v740_v6, %v744_v10 }
 0xd39   : > { %749 = vrot.lane.b32.xlu2 %v746_v13, %s2478_s21 }
 0xd93   : > { %v748_v14 = vpop.permute.xlu1 %747  ;;  %v750_v15 = vpop.permute.xlu2 %749 }
 0xd94   : > { %v751_v16 = vmax.f32 %v745_v9, %v748_v14  ;;  %v752_v18 = vmax.f32 %v746_v13, %v750_v15 }
 0xd96   : > { %v753_v17 = vsub.f32 %v713_v48, %v751_v16  ;;  %v754_v62 = vsub.f32 %v714_v47, %v752_v18 }
 0xd98   : > { %v755_v19 = vmul.f32 1.442695, %v753_v17  ;;  %v757_v63 = vmul.f32 1.442695, %v754_v62 }
 0xd9a   : > { %2265 = vpow2.f32 %v755_v19 }
 0xd9b   : > { %2267 = vpow2.f32 %v757_v63 }
 0xda0   : > { %v2266_v0 = vpop.eup %2265 }
 0xda1   : > { %775 = vmatmul.f32.vlgmr.msrb.gmra.mxu1 %v2266_v0  ;;  %v2268_v12 = vpop.eup %2267 }
 0xda2   : > { %1600 = vmatpush.msrb.mxu1 %v2367_v1 }
 0xda4   : > { %1601 = vmatpush.msrb.mxu1 %v2368_v11 }
 0xda9   : > { %778 = vmatmul.f32.gmra.mxu1 %v2268_v12 }
 0xe1e   : > { %v776_v34 = vpop.f32.mrf.mxu1 }
 0xe1f   : > { %2269 = vlog2.f32 %v776_v34 }
 0xe25   : > { %v2270_v20 = vpop.eup %2269 }
 0xe26   : > { %v779_v32 = vpop.f32.mrf.mxu1  ;;  %v783_v21 = vmul.f32 0.6931472, %v2270_v20 }
 0xe27   : > { %2271 = vlog2.f32 %v779_v32 }
 0xe28   : > { %v786_v22 = vadd.f32 %v783_v21, %v751_v16 }
 0xe2a   : > { %v788_v25 = vsub.f32 -0.6931472, %v786_v22 }
 0xe2c   : > { %v790_v28 = vadd.f32 %v788_v25, %v2716_v38 }
 0xe2d   : > { %v2272_v23 = vpop.eup %2271 }
 0xe2e   : > { %v785_v24 = vmul.f32 0.6931472, %v2272_v23 }
 0xe30   : > { %v787_v26 = vadd.f32 %v785_v24, %v752_v18 }
 0xe32   : > { %v789_v27 = vsub.f32 -0.6931472, %v787_v26 }
 0xe34   : > { %v791_v29 = vadd.f32 %v789_v27, %v2720_v41 }
 0xe36   : > { %v792_v30 = vmax.f32 %v790_v28, %v791_v29 }
 0xe38   : > { %v793_v31 = vrot.slane %v792_v30, 4 }
 0xe3a   : > { %v794_v33 = vmax.f32 %v792_v30, %v793_v31 }
 0xe3c   : > { %v795_v35 = vrot.slane %v794_v33, 2 }
 0xe3e   : > { %v796_v36 = vmax.f32 %v794_v33, %v795_v35 }
 0xe40   : > { %v797_v37 = vrot.slane %v796_v36, 1 }
 0xe42   : > { %v798_v39 = vmax.f32 %v796_v36, %v797_v37 }
 0xe44   : > { %v799_v40 = vsub.f32 %v790_v28, %v798_v39  ;;  %v800_v42 = vsub.f32 %v791_v29, %v798_v39 }
 0xe46   : > { %v801_v43 = vmul.f32 1.442695, %v799_v40  ;;  %v803_v44 = vmul.f32 1.442695, %v800_v42 }
 0xe48   : > { %2273 = vpow2.f32 %v801_v43 }
 0xe49   : > { %2275 = vpow2.f32 %v803_v44 }
 0xe4e   : > { %v2274_v45 = vpop.eup %2273 }
 0xe4f   : > { %v2276_v46 = vpop.eup %2275 }
 0xe50   : > { %v805_v47 = vadd.f32 %v2276_v46, %v2274_v45 }
 0xe52   : > { %v806_v48 = vrot.slane %v805_v47, 4 }
 0xe54   : > { %v807_v49 = vadd.f32 %v806_v48, %v805_v47 }
 0xe56   : > { %v808_v50 = vrot.slane %v807_v49, 2 }
 0xe58   : > { %v809_v51 = vadd.f32 %v808_v50, %v807_v49 }
 0xe5a   : > { %v810_v52 = vrot.slane %v809_v51, 1 }
 0xe5c   : > { %v811_v53 = vadd.f32 %v810_v52, %v809_v51 }
 0xe5e   : > { %2277 = vlog2.f32 %v811_v53 }
 0xe64   : > { %v2278_v55 = vpop.eup %2277 }
 0xe65   : > { %v813_v56 = vmul.f32 0.6931472, %v2278_v55 }
 0xe67   : > { %v814_v57 = vadd.f32 %v813_v56, %v798_v39 }
 0xe69   : > { %v815_v58 = vsub.f32 0.0, %v814_v57 }
 0xe6b   : > { %v817_v59 = vadd.f32 %v815_v58, %v2720_v41  ;;  %v816_v60 = vadd.f32 %v815_v58, %v2716_v38 }
 0xe6d   : > { %820 = vrot.lane.b32.xlu1 %v817_v59, %s2473_s19  ;;  %818 = vrot.lane.b32.xlu0 %v816_v60, %s2473_s19 }
 0xedf   : > { %v821_v61 = vpop.permute.xlu1 %820  ;;  %v819_v2 = vpop.permute.xlu0 %818 }
 0xee0   : > { %v823_v3 = vmax.f32 %v817_v59, %v821_v61  ;;  %v822_v4 = vmax.f32 %v816_v60, %v819_v2 }
 0xee2   : > { %826 = vrot.lane.b32.xlu0 %v823_v3, %s2474_s16  ;;  %824 = vrot.lane.b32.xlu2 %v822_v4, %s2474_s16 }
 0xf3c   : > { %v825_v5 = vpop.permute.xlu2 %824 }
 0xf3d   : > { %v828_v6 = vmax.f32 %v822_v4, %v825_v5 }
 0xf3f   : > { %830 = vrot.lane.b32.xlu1 %v828_v6, %s2475_s15 }
 0xf54   : > { %v827_v7 = vpop.permute.xlu0 %826 }
 0xf55   : > { %v829_v8 = vmax.f32 %v823_v3, %v827_v7 }
 0xf57   : > { %832 = vrot.lane.b32.xlu2 %v829_v8, %s2475_s15 }
 0xfb1   : > { %v831_v9 = vpop.permute.xlu1 %830  ;;  %v833_v10 = vpop.permute.xlu2 %832 }
 0xfb2   : > { %v834_v13 = vmax.f32 %v828_v6, %v831_v9  ;;  %v835_v14 = vmax.f32 %v829_v8, %v833_v10 }
 0xfb4   : > { %v836_v15 = vsel %vm2730_vm0, %v834_v13, -inf  ;;  %v837_v16 = vsel %vm2730_vm0, %v835_v14, -inf }
 0xfb5   : > { %838 = vrot.lane.b32.xlu0 %v836_v15, %s2476_s18  ;;  %840 = vrot.lane.b32.xlu1 %v837_v16, %s2476_s18 }
0x1027   : > { %v841_v17 = vpop.permute.xlu1 %840  ;;  %v839_v18 = vpop.permute.xlu0 %838 }
0x1028   : > { %v843_v19 = vmax.f32 %v837_v16, %v841_v17  ;;  %v842_v62 = vmax.f32 %v836_v15, %v839_v18 }
0x102a   : > { %846 = vrot.lane.b32.xlu0 %v843_v19, %s2477_s20  ;;  %844 = vrot.lane.b32.xlu2 %v842_v62, %s2477_s20 }
0x1084   : > { %v845_v63 = vpop.permute.xlu2 %844 }
0x1085   : > { %v848_v0 = vmax.f32 %v842_v62, %v845_v63 }
0x1087   : > { %850 = vrot.lane.b32.xlu1 %v848_v0, %s2478_s21 }
0x109c   : > { %v847_v1 = vpop.permute.xlu0 %846 }
0x109d   : > { %v849_v11 = vmax.f32 %v843_v19, %v847_v1 }
0x109f   : > { %852 = vrot.lane.b32.xlu2 %v849_v11, %s2478_s21 }
0x10f9   : > { %v851_v12 = vpop.permute.xlu1 %850  ;;  %v853_v34 = vpop.permute.xlu2 %852 }
0x10fa   : > { %v854_v20 = vmax.f32 %v848_v0, %v851_v12  ;;  %v855_v21 = vmax.f32 %v849_v11, %v853_v34 }
0x10fc   : > { %v856_v32 = vsub.f32 %v816_v60, %v854_v20  ;;  %v857_v23 = vsub.f32 %v817_v59, %v855_v21 }
0x10fe   : > { %v858_v22 = vmul.f32 1.442695, %v856_v32  ;;  %v860_v24 = vmul.f32 1.442695, %v857_v23 }
0x1100   : > { %2279 = vpow2.f32 %v858_v22 }
0x1101   : > { %2281 = vpow2.f32 %v860_v24 }
0x1106   : > { %v2280_v25 = vpop.eup %2279 }
0x1107   : > { %878 = vmatmul.f32.vlgmr.msrb.gmra.mxu2 %v2280_v25  ;;  %v2282_v26 = vpop.eup %2281 }
0x110f   : > { %881 = vmatmul.f32.gmra.mxu2 %v2282_v26 }
0x118a   : > { %v879_v27 = vpop.f32.mrf.mxu2 }
0x118b   : > { %2283 = vlog2.f32 %v879_v27 }
0x1191   : > { %v2284_v28 = vpop.eup %2283 }
0x1192   : > { %v882_v29 = vpop.f32.mrf.mxu2  ;;  %v886_v30 = vmul.f32 0.6931472, %v2284_v28 }
0x1193   : > { %2285 = vlog2.f32 %v882_v29 }
0x1194   : > { %v889_v31 = vadd.f32 %v886_v30, %v854_v20 }
0x1196   : > { %v891_v36 = vsub.f32 -0.6931472, %v889_v31 }
0x1198   : > { %v893_v40 = vadd.f32 %v891_v36, %v2716_v38 }
0x1199   : > { %v2286_v33 = vpop.eup %2285 }
0x119a   : > { %v888_v35 = vmul.f32 0.6931472, %v2286_v33 }
0x119c   : > { %v890_v37 = vadd.f32 %v888_v35, %v855_v21 }
0x119e   : > { %v892_v39 = vsub.f32 -0.6931472, %v890_v37 }
0x11a0   : > { %v894_v42 = vadd.f32 %v892_v39, %v2720_v41 }
0x11a2   : > { %v895_v43 = vmax.f32 %v893_v40, %v894_v42 }
0x11a4   : > { %v896_v44 = vrot.slane %v895_v43, 4 }
0x11a6   : > { %v897_v45 = vmax.f32 %v895_v43, %v896_v44 }
0x11a8   : > { %v898_v46 = vrot.slane %v897_v45, 2 }
0x11aa   : > { %v899_v47 = vmax.f32 %v897_v45, %v898_v46 }
0x11ac   : > { %v900_v48 = vrot.slane %v899_v47, 1 }
0x11ae   : > { %v901_v49 = vmax.f32 %v899_v47, %v900_v48 }
0x11b0   : > { %v902_v50 = vsub.f32 %v893_v40, %v901_v49  ;;  %v903_v51 = vsub.f32 %v894_v42, %v901_v49 }
0x11b2   : > { %v904_v52 = vmul.f32 1.442695, %v902_v50  ;;  %v906_v53 = vmul.f32 1.442695, %v903_v51 }
0x11b4   : > { %2287 = vpow2.f32 %v904_v52 }
0x11b5   : > { %2289 = vpow2.f32 %v906_v53 }
0x11ba   : > { %v2288_v55 = vpop.eup %2287 }
0x11bb   : > { %v2290_v56 = vpop.eup %2289 }
0x11bc   : > { %v908_v57 = vadd.f32 %v2290_v56, %v2288_v55 }
0x11be   : > { %v909_v58 = vrot.slane %v908_v57, 4 }
0x11c0   : > { %v910_v59 = vadd.f32 %v909_v58, %v908_v57 }
0x11c2   : > { %v911_v60 = vrot.slane %v910_v59, 2 }
0x11c4   : > { %v912_v61 = vadd.f32 %v911_v60, %v910_v59 }
0x11c6   : > { %v913_v2 = vrot.slane %v912_v61, 1 }
0x11c8   : > { %v914_v3 = vadd.f32 %v913_v2, %v912_v61 }
0x11ca   : > { %2291 = vlog2.f32 %v914_v3 }
0x11d0   : > { %v2292_v4 = vpop.eup %2291 }
0x11d1   : > { %v916_v5 = vmul.f32 0.6931472, %v2292_v4 }
0x11d3   : > { %v917_v6 = vadd.f32 %v916_v5, %v901_v49 }
0x11d5   : > { %v918_v7 = vsub.f32 0.0, %v917_v6 }
0x11d7   : > { %v920_v8 = vadd.f32 %v918_v7, %v2720_v41  ;;  %v919_v9 = vadd.f32 %v918_v7, %v2716_v38 }
0x11d9   : > { %923 = vrot.lane.b32.xlu1 %v920_v8, %s2473_s19  ;;  %921 = vrot.lane.b32.xlu0 %v919_v9, %s2473_s19 }
0x124b   : > { %v924_v10 = vpop.permute.xlu1 %923  ;;  %v922_v13 = vpop.permute.xlu0 %921 }
0x124c   : > { %v926_v14 = vmax.f32 %v920_v8, %v924_v10  ;;  %v925_v15 = vmax.f32 %v919_v9, %v922_v13 }
0x124e   : > { %929 = vrot.lane.b32.xlu0 %v926_v14, %s2474_s16  ;;  %927 = vrot.lane.b32.xlu2 %v925_v15, %s2474_s16 }
0x12a8   : > { %v928_v16 = vpop.permute.xlu2 %927 }
0x12a9   : > { %v931_v17 = vmax.f32 %v925_v15, %v928_v16 }
0x12ab   : > { %933 = vrot.lane.b32.xlu1 %v931_v17, %s2475_s15 }
0x12c0   : > { %v930_v18 = vpop.permute.xlu0 %929 }
0x12c1   : > { %v932_v19 = vmax.f32 %v926_v14, %v930_v18 }
0x12c3   : > { %935 = vrot.lane.b32.xlu2 %v932_v19, %s2475_s15 }
0x131d   : > { %v934_v62 = vpop.permute.xlu1 %933  ;;  %v936_v63 = vpop.permute.xlu2 %935 }
0x131e   : > { %v937_v0 = vmax.f32 %v931_v17, %v934_v62  ;;  %v938_v1 = vmax.f32 %v932_v19, %v936_v63 }
0x1320   : > { %v939_v11 = vsel %vm2730_vm0, %v937_v0, -inf  ;;  %v940_v12 = vsel %vm2730_vm0, %v938_v1, -inf }
0x1321   : > { %941 = vrot.lane.b32.xlu0 %v939_v11, %s2476_s18  ;;  %943 = vrot.lane.b32.xlu1 %v940_v12, %s2476_s18 }
0x1393   : > { %v944_v34 = vpop.permute.xlu1 %943  ;;  %v942_v20 = vpop.permute.xlu0 %941 }
0x1394   : > { %v946_v32 = vmax.f32 %v940_v12, %v944_v34  ;;  %v945_v21 = vmax.f32 %v939_v11, %v942_v20 }
0x1396   : > { %949 = vrot.lane.b32.xlu0 %v946_v32, %s2477_s20  ;;  %947 = vrot.lane.b32.xlu2 %v945_v21, %s2477_s20 }
0x13f0   : > { %v948_v22 = vpop.permute.xlu2 %947 }
0x13f1   : > { %v951_v23 = vmax.f32 %v945_v21, %v948_v22 }
0x13f3   : > { %953 = vrot.lane.b32.xlu1 %v951_v23, %s2478_s21 }
0x1408   : > { %v950_v24 = vpop.permute.xlu0 %949 }
0x1409   : > { %v952_v25 = vmax.f32 %v946_v32, %v950_v24 }
0x140b   : > { %955 = vrot.lane.b32.xlu2 %v952_v25, %s2478_s21 }
0x1465   : > { %v954_v26 = vpop.permute.xlu1 %953  ;;  %v956_v27 = vpop.permute.xlu2 %955 }
0x1466   : > { %v957_v28 = vmax.f32 %v951_v23, %v954_v26  ;;  %v958_v30 = vmax.f32 %v952_v25, %v956_v27 }
0x1468   : > { %v959_v29 = vsub.f32 %v919_v9, %v957_v28  ;;  %v960_v33 = vsub.f32 %v920_v8, %v958_v30 }
0x146a   : > { %v961_v31 = vmul.f32 1.442695, %v959_v29  ;;  %v963_v35 = vmul.f32 1.442695, %v960_v33 }
0x146c   : > { %2293 = vpow2.f32 %v961_v31 }
0x146d   : > { %2295 = vpow2.f32 %v963_v35 }
0x1472   : > { %v2294_v36 = vpop.eup %2293 }
0x1473   : > { %981 = vmatmul.f32.vlgmr.msrb.gmra.mxu3 %v2294_v36  ;;  %v2296_v37 = vpop.eup %2295 }
0x147b   : > { %984 = vmatmul.f32.gmra.mxu3 %v2296_v37 }
0x14f6   : > { %v982_v39 = vpop.f32.mrf.mxu3 }
0x14f7   : > { %2297 = vlog2.f32 %v982_v39 }
0x14fd   : > { %v2298_v40 = vpop.eup %2297 }
0x14fe   : > { %v985_v42 = vpop.f32.mrf.mxu3  ;;  %v989_v43 = vmul.f32 0.6931472, %v2298_v40 }
0x14ff   : > { %2299 = vlog2.f32 %v985_v42 }
0x1500   : > { %v992_v44 = vadd.f32 %v989_v43, %v957_v28 }
0x1502   : > { %v994_v47 = vsub.f32 -0.6931472, %v992_v44 }
0x1504   : > { %v996_v50 = vadd.f32 %v994_v47, %v2716_v38 }
0x1505   : > { %v2300_v45 = vpop.eup %2299 }
0x1506   : > { %v991_v46 = vmul.f32 0.6931472, %v2300_v45 }
0x1508   : > { %v993_v48 = vadd.f32 %v991_v46, %v958_v30 }
0x150a   : > { %v995_v49 = vsub.f32 -0.6931472, %v993_v48 }
0x150c   : > { %v997_v51 = vadd.f32 %v995_v49, %v2720_v41 }
0x150e   : > { %v998_v52 = vmax.f32 %v996_v50, %v997_v51 }
0x1510   : > { %v999_v53 = vrot.slane %v998_v52, 4 }
0x1512   : > { %v1000_v55 = vmax.f32 %v998_v52, %v999_v53 }
0x1514   : > { %v1001_v56 = vrot.slane %v1000_v55, 2 }
0x1516   : > { %v1002_v57 = vmax.f32 %v1000_v55, %v1001_v56 }
0x1518   : > { %v1003_v58 = vrot.slane %v1002_v57, 1 }
0x151a   : > { %v1004_v59 = vmax.f32 %v1002_v57, %v1003_v58 }
0x151c   : > { %v1005_v60 = vsub.f32 %v996_v50, %v1004_v59  ;;  %v1006_v61 = vsub.f32 %v997_v51, %v1004_v59 }
0x151e   : > { %v1007_v2 = vmul.f32 1.442695, %v1005_v60  ;;  %v1009_v3 = vmul.f32 1.442695, %v1006_v61 }
0x1520   : > { %2301 = vpow2.f32 %v1007_v2 }
0x1521   : > { %2303 = vpow2.f32 %v1009_v3 }
0x1526   : > { %v2302_v4 = vpop.eup %2301 }
0x1527   : > { %v2304_v5 = vpop.eup %2303 }
0x1528   : > { %v1011_v6 = vadd.f32 %v2304_v5, %v2302_v4 }
0x152a   : > { %v1012_v7 = vrot.slane %v1011_v6, 4 }
0x152c   : > { %v1013_v8 = vadd.f32 %v1012_v7, %v1011_v6 }
0x152e   : > { %v1014_v9 = vrot.slane %v1013_v8, 2 }
0x1530   : > { %v1015_v10 = vadd.f32 %v1014_v9, %v1013_v8 }
0x1532   : > { %v1016_v13 = vrot.slane %v1015_v10, 1 }
0x1534   : > { %v1017_v14 = vadd.f32 %v1016_v13, %v1015_v10 }
0x1536   : > { %2305 = vlog2.f32 %v1017_v14 }
0x153c   : > { %v2306_v15 = vpop.eup %2305 }
0x153d   : > { %v1019_v16 = vmul.f32 0.6931472, %v2306_v15 }
0x153f   : > { %v1020_v17 = vadd.f32 %v1019_v16, %v1004_v59 }
0x1541   : > { %v1021_v18 = vsub.f32 0.0, %v1020_v17 }
0x1543   : > { %v1023_v19 = vadd.f32 %v1021_v18, %v2720_v41  ;;  %v1022_v62 = vadd.f32 %v1021_v18, %v2716_v38 }
0x1545   : > { %1026 = vrot.lane.b32.xlu1 %v1023_v19, %s2473_s19  ;;  %1024 = vrot.lane.b32.xlu0 %v1022_v62, %s2473_s19 }
0x15b7   : > { %v1027_v63 = vpop.permute.xlu1 %1026  ;;  %v1025_v0 = vpop.permute.xlu0 %1024 }
0x15b8   : > { %v1029_v1 = vmax.f32 %v1023_v19, %v1027_v63  ;;  %v1028_v11 = vmax.f32 %v1022_v62, %v1025_v0 }
0x15ba   : > { %1032 = vrot.lane.b32.xlu0 %v1029_v1, %s2474_s16  ;;  %1030 = vrot.lane.b32.xlu2 %v1028_v11, %s2474_s16 }
0x1614   : > { %v1031_v12 = vpop.permute.xlu2 %1030 }
0x1615   : > { %v1034_v34 = vmax.f32 %v1028_v11, %v1031_v12 }
0x1617   : > { %1036 = vrot.lane.b32.xlu1 %v1034_v34, %s2475_s15 }
0x162c   : > { %v1033_v20 = vpop.permute.xlu0 %1032 }
0x162d   : > { %v1035_v32 = vmax.f32 %v1029_v1, %v1033_v20 }
0x162f   : > { %1038 = vrot.lane.b32.xlu2 %v1035_v32, %s2475_s15 }
0x1689   : > { %v1037_v21 = vpop.permute.xlu1 %1036  ;;  %v1039_v22 = vpop.permute.xlu2 %1038 }
0x168a   : > { %v1040_v23 = vmax.f32 %v1034_v34, %v1037_v21  ;;  %v1041_v24 = vmax.f32 %v1035_v32, %v1039_v22 }
0x168c   : > { %v1042_v25 = vsel %vm2730_vm0, %v1040_v23, -inf  ;;  %v1043_v26 = vsel %vm2730_vm0, %v1041_v24, -inf }
0x168d   : > { %1044 = vrot.lane.b32.xlu0 %v1042_v25, %s2476_s18  ;;  %1046 = vrot.lane.b32.xlu1 %v1043_v26, %s2476_s18 }
0x16ff   : > { %v1047_v27 = vpop.permute.xlu1 %1046  ;;  %v1045_v28 = vpop.permute.xlu0 %1044 }
0x1700   : > { %v1049_v29 = vmax.f32 %v1043_v26, %v1047_v27  ;;  %v1048_v30 = vmax.f32 %v1042_v25, %v1045_v28 }
0x1702   : > { %1052 = vrot.lane.b32.xlu0 %v1049_v29, %s2477_s20  ;;  %1050 = vrot.lane.b32.xlu2 %v1048_v30, %s2477_s20 }
0x175c   : > { %v1051_v31 = vpop.permute.xlu2 %1050 }
0x175d   : > { %v1054_v33 = vmax.f32 %v1048_v30, %v1051_v31 }
0x175f   : > { %1056 = vrot.lane.b32.xlu1 %v1054_v33, %s2478_s21 }
0x1774   : > { %v1053_v35 = vpop.permute.xlu0 %1052 }
0x1775   : > { %v1055_v36 = vmax.f32 %v1049_v29, %v1053_v35 }
0x1777   : > { %1058 = vrot.lane.b32.xlu2 %v1055_v36, %s2478_s21 }
0x17d1   : > { %v1057_v37 = vpop.permute.xlu1 %1056  ;;  %v1059_v39 = vpop.permute.xlu2 %1058 }
0x17d2   : > { %v1060_v40 = vmax.f32 %v1054_v33, %v1057_v37  ;;  %v1061_v43 = vmax.f32 %v1055_v36, %v1059_v39 }
0x17d4   : > { %v1062_v42 = vsub.f32 %v1022_v62, %v1060_v40  ;;  %v1063_v45 = vsub.f32 %v1023_v19, %v1061_v43 }
0x17d6   : > { %v1064_v44 = vmul.f32 1.442695, %v1062_v42  ;;  %v1066_v46 = vmul.f32 1.442695, %v1063_v45 }
0x17d8   : > { %2307 = vpow2.f32 %v1064_v44 }
0x17d9   : > { %2309 = vpow2.f32 %v1066_v46 }
0x17de   : > { %v2308_v47 = vpop.eup %2307 }
0x17df   : > { %1084 = vmatmul.f32.vlgmr.msra.gmra.mxu0 %v2308_v47  ;;  %v2310_v48 = vpop.eup %2309 }
0x17e7   : > { %1087 = vmatmul.f32.gmra.mxu0 %v2310_v48 }
0x185c   : > { %v1085_v49 = vpop.f32.mrf.mxu0 }
0x185d   : > { %2311 = vlog2.f32 %v1085_v49 }
0x1863   : > { %v2312_v50 = vpop.eup %2311 }
0x1864   : > { %v1088_v51 = vpop.f32.mrf.mxu0  ;;  %v1092_v52 = vmul.f32 0.6931472, %v2312_v50 }
0x1865   : > { %2313 = vlog2.f32 %v1088_v51 }
0x1866   : > { %v1095_v53 = vadd.f32 %v1092_v52, %v1060_v40 }
0x1868   : > { %v1097_v57 = vsub.f32 -0.6931472, %v1095_v53 }
0x186a   : > { %v1099_v60 = vadd.f32 %v1097_v57, %v2716_v38 }
0x186b   : > { %v2314_v55 = vpop.eup %2313 }
0x186c   : > { %v1094_v56 = vmul.f32 0.6931472, %v2314_v55 }
0x186e   : > { %v1096_v58 = vadd.f32 %v1094_v56, %v1061_v43 }
0x1870   : > { %v1098_v59 = vsub.f32 -0.6931472, %v1096_v58 }
0x1872   : > { %v1100_v61 = vadd.f32 %v1098_v59, %v2720_v41 }
0x1874   : > { %v1101_v2 = vmax.f32 %v1099_v60, %v1100_v61 }
0x1876   : > { %v1102_v3 = vrot.slane %v1101_v2, 4 }
0x1878   : > { %v1103_v4 = vmax.f32 %v1101_v2, %v1102_v3 }
0x187a   : > { %v1104_v5 = vrot.slane %v1103_v4, 2 }
0x187c   : > { %v1105_v6 = vmax.f32 %v1103_v4, %v1104_v5 }
0x187e   : > { %v1106_v7 = vrot.slane %v1105_v6, 1 }
0x1880   : > { %v1107_v8 = vmax.f32 %v1105_v6, %v1106_v7 }
0x1882   : > { %v1108_v9 = vsub.f32 %v1099_v60, %v1107_v8  ;;  %v1109_v10 = vsub.f32 %v1100_v61, %v1107_v8 }
0x1884   : > { %v1110_v13 = vmul.f32 1.442695, %v1108_v9  ;;  %v1112_v14 = vmul.f32 1.442695, %v1109_v10 }
0x1886   : > { %2315 = vpow2.f32 %v1110_v13 }
0x1887   : > { %2317 = vpow2.f32 %v1112_v14 }
0x188c   : > { %v2316_v15 = vpop.eup %2315 }
0x188d   : > { %v2318_v16 = vpop.eup %2317 }
0x188e   : > { %v1114_v17 = vadd.f32 %v2318_v16, %v2316_v15 }
0x1890   : > { %v1115_v18 = vrot.slane %v1114_v17, 4 }
0x1892   : > { %v1116_v19 = vadd.f32 %v1115_v18, %v1114_v17 }
0x1894   : > { %v1117_v62 = vrot.slane %v1116_v19, 2 }
0x1896   : > { %v1118_v63 = vadd.f32 %v1117_v62, %v1116_v19 }
0x1898   : > { %v1119_v0 = vrot.slane %v1118_v63, 1 }
0x189a   : > { %v1120_v1 = vadd.f32 %v1119_v0, %v1118_v63 }
0x189c   : > { %2319 = vlog2.f32 %v1120_v1 }
0x18a2   : > { %v2320_v11 = vpop.eup %2319 }
0x18a3   : > { %v1122_v12 = vmul.f32 0.6931472, %v2320_v11 }
0x18a5   : > { %v1123_v34 = vadd.f32 %v1122_v12, %v1107_v8 }
0x18a7   : > { %v1124_v20 = vsub.f32 0.0, %v1123_v34 }
0x18a9   : > { %v1126_v32 = vadd.f32 %v1124_v20, %v2720_v41  ;;  %v1125_v21 = vadd.f32 %v1124_v20, %v2716_v38 }
0x18ab   : > { %1129 = vrot.lane.b32.xlu1 %v1126_v32, %s2473_s19  ;;  %1127 = vrot.lane.b32.xlu0 %v1125_v21, %s2473_s19 }
0x191d   : > { %v1130_v22 = vpop.permute.xlu1 %1129  ;;  %v1128_v23 = vpop.permute.xlu0 %1127 }
0x191e   : > { %v1132_v24 = vmax.f32 %v1126_v32, %v1130_v22  ;;  %v1131_v25 = vmax.f32 %v1125_v21, %v1128_v23 }
0x1920   : > { %1135 = vrot.lane.b32.xlu0 %v1132_v24, %s2474_s16  ;;  %1133 = vrot.lane.b32.xlu2 %v1131_v25, %s2474_s16 }
0x197a   : > { %v1134_v26 = vpop.permute.xlu2 %1133 }
0x197b   : > { %v1137_v27 = vmax.f32 %v1131_v25, %v1134_v26 }
0x197d   : > { %1139 = vrot.lane.b32.xlu1 %v1137_v27, %s2475_s15 }
0x1992   : > { %v1136_v28 = vpop.permute.xlu0 %1135 }
0x1993   : > { %v1138_v29 = vmax.f32 %v1132_v24, %v1136_v28 }
0x1995   : > { %1141 = vrot.lane.b32.xlu2 %v1138_v29, %s2475_s15 }
0x19ef   : > { %v1140_v30 = vpop.permute.xlu1 %1139  ;;  %v1142_v31 = vpop.permute.xlu2 %1141 }
0x19f0   : > { %v1143_v33 = vmax.f32 %v1137_v27, %v1140_v30  ;;  %v1144_v35 = vmax.f32 %v1138_v29, %v1142_v31 }
0x19f2   : > { %v1145_v36 = vsel %vm2730_vm0, %v1143_v33, -inf  ;;  %v1146_v37 = vsel %vm2730_vm0, %v1144_v35, -inf }
0x19f3   : > { %1147 = vrot.lane.b32.xlu0 %v1145_v36, %s2476_s18  ;;  %1149 = vrot.lane.b32.xlu1 %v1146_v37, %s2476_s18 }
0x1a65   : > { %v1150_v39 = vpop.permute.xlu1 %1149  ;;  %v1148_v40 = vpop.permute.xlu0 %1147 }
0x1a66   : > { %v1152_v42 = vmax.f32 %v1146_v37, %v1150_v39  ;;  %v1151_v43 = vmax.f32 %v1145_v36, %v1148_v40 }
0x1a68   : > { %1155 = vrot.lane.b32.xlu0 %v1152_v42, %s2477_s20  ;;  %1153 = vrot.lane.b32.xlu2 %v1151_v43, %s2477_s20 }
0x1ac2   : > { %v1154_v44 = vpop.permute.xlu2 %1153 }
0x1ac3   : > { %v1157_v45 = vmax.f32 %v1151_v43, %v1154_v44 }
0x1ac5   : > { %1159 = vrot.lane.b32.xlu1 %v1157_v45, %s2478_s21 }
0x1ada   : > { %v1156_v46 = vpop.permute.xlu0 %1155 }
0x1adb   : > { %v1158_v47 = vmax.f32 %v1152_v42, %v1156_v46 }
0x1add   : > { %1161 = vrot.lane.b32.xlu2 %v1158_v47, %s2478_s21 }
0x1b37   : > { %v1160_v48 = vpop.permute.xlu1 %1159  ;;  %v1162_v49 = vpop.permute.xlu2 %1161 }
0x1b38   : > { %v1163_v50 = vmax.f32 %v1157_v45, %v1160_v48  ;;  %v1164_v52 = vmax.f32 %v1158_v47, %v1162_v49 }
0x1b3a   : > { %v1165_v51 = vsub.f32 %v1125_v21, %v1163_v50  ;;  %v1166_v55 = vsub.f32 %v1126_v32, %v1164_v52 }
0x1b3c   : > { %v1167_v53 = vmul.f32 1.442695, %v1165_v51  ;;  %v1169_v56 = vmul.f32 1.442695, %v1166_v55 }
0x1b3e   : > { %2321 = vpow2.f32 %v1167_v53 }
0x1b3f   : > { %2323 = vpow2.f32 %v1169_v56 }
0x1b44   : > { %v2322_v57 = vpop.eup %2321 }
0x1b45   : > { %1187 = vmatmul.f32.vlgmr.msra.gmra.mxu1 %v2322_v57  ;;  %v2324_v58 = vpop.eup %2323 }
0x1b4d   : > { %1190 = vmatmul.f32.gmra.mxu1 %v2324_v58 }
0x1bc2   : > { %v1188_v59 = vpop.f32.mrf.mxu1 }
0x1bc3   : > { %2325 = vlog2.f32 %v1188_v59 }
0x1bc9   : > { %v2326_v60 = vpop.eup %2325 }
0x1bca   : > { %v1191_v61 = vpop.f32.mrf.mxu1  ;;  %v1195_v2 = vmul.f32 0.6931472, %v2326_v60 }
0x1bcb   : > { %2327 = vlog2.f32 %v1191_v61 }
0x1bcc   : > { %v1198_v3 = vadd.f32 %v1195_v2, %v1163_v50 }
0x1bce   : > { %v1200_v6 = vsub.f32 -0.6931472, %v1198_v3 }
0x1bd0   : > { %v1202_v9 = vadd.f32 %v1200_v6, %v2716_v38 }
0x1bd1   : > { %v2328_v4 = vpop.eup %2327 }
0x1bd2   : > { %v1197_v5 = vmul.f32 0.6931472, %v2328_v4 }
0x1bd4   : > { %v1199_v7 = vadd.f32 %v1197_v5, %v1164_v52 }
0x1bd6   : > { %v1201_v8 = vsub.f32 -0.6931472, %v1199_v7 }
0x1bd8   : > { %v1203_v10 = vadd.f32 %v1201_v8, %v2720_v41 }
0x1bda   : > { %v1204_v13 = vmax.f32 %v1202_v9, %v1203_v10 }
0x1bdc   : > { %v1205_v14 = vrot.slane %v1204_v13, 4 }
0x1bde   : > { %v1206_v15 = vmax.f32 %v1204_v13, %v1205_v14 }
0x1be0   : > { %v1207_v16 = vrot.slane %v1206_v15, 2 }
0x1be2   : > { %v1208_v17 = vmax.f32 %v1206_v15, %v1207_v16 }
0x1be4   : > { %v1209_v18 = vrot.slane %v1208_v17, 1 }
0x1be6   : > { %v1210_v19 = vmax.f32 %v1208_v17, %v1209_v18 }
0x1be8   : > { %v1211_v62 = vsub.f32 %v1202_v9, %v1210_v19  ;;  %v1212_v63 = vsub.f32 %v1203_v10, %v1210_v19 }
0x1bea   : > { %v1213_v0 = vmul.f32 1.442695, %v1211_v62  ;;  %v1215_v1 = vmul.f32 1.442695, %v1212_v63 }
0x1bec   : > { %2329 = vpow2.f32 %v1213_v0 }
0x1bed   : > { %2331 = vpow2.f32 %v1215_v1 }
0x1bf2   : > { %v2330_v11 = vpop.eup %2329 }
0x1bf3   : > { %v2332_v12 = vpop.eup %2331 }
0x1bf4   : > { %v1217_v34 = vadd.f32 %v2332_v12, %v2330_v11 }
0x1bf6   : > { %v1218_v20 = vrot.slane %v1217_v34, 4 }
0x1bf8   : > { %v1219_v32 = vadd.f32 %v1218_v20, %v1217_v34 }
0x1bfa   : > { %v1220_v21 = vrot.slane %v1219_v32, 2 }
0x1bfc   : > { %v1221_v22 = vadd.f32 %v1220_v21, %v1219_v32 }
0x1bfe   : > { %v1222_v23 = vrot.slane %v1221_v22, 1 }
0x1c00   : > { %v1223_v24 = vadd.f32 %v1222_v23, %v1221_v22 }
0x1c02   : > { %2333 = vlog2.f32 %v1223_v24 }
0x1c08   : > { %v2334_v25 = vpop.eup %2333 }
0x1c09   : > { %v1225_v26 = vmul.f32 0.6931472, %v2334_v25 }
0x1c0b   : > { %v1226_v27 = vadd.f32 %v1225_v26, %v1210_v19 }
0x1c0d   : > { %v1227_v28 = vsub.f32 0.0, %v1226_v27 }
0x1c0f   : > { %v1229_v29 = vadd.f32 %v1227_v28, %v2720_v41  ;;  %v1228_v30 = vadd.f32 %v1227_v28, %v2716_v38 }
0x1c11   : > { %1232 = vrot.lane.b32.xlu1 %v1229_v29, %s2473_s19  ;;  %1230 = vrot.lane.b32.xlu0 %v1228_v30, %s2473_s19 }
0x1c83   : > { %v1233_v31 = vpop.permute.xlu1 %1232  ;;  %v1231_v33 = vpop.permute.xlu0 %1230 }
0x1c84   : > { %v1235_v35 = vmax.f32 %v1229_v29, %v1233_v31  ;;  %v1234_v36 = vmax.f32 %v1228_v30, %v1231_v33 }
0x1c86   : > { %1238 = vrot.lane.b32.xlu0 %v1235_v35, %s2474_s16  ;;  %1236 = vrot.lane.b32.xlu2 %v1234_v36, %s2474_s16 }
0x1ce0   : > { %v1237_v37 = vpop.permute.xlu2 %1236 }
0x1ce1   : > { %v1240_v39 = vmax.f32 %v1234_v36, %v1237_v37 }
0x1ce3   : > { %1242 = vrot.lane.b32.xlu1 %v1240_v39, %s2475_s15 }
0x1cf8   : > { %v1239_v40 = vpop.permute.xlu0 %1238 }
0x1cf9   : > { %v1241_v42 = vmax.f32 %v1235_v35, %v1239_v40 }
0x1cfb   : > { %1244 = vrot.lane.b32.xlu2 %v1241_v42, %s2475_s15 }
0x1d55   : > { %v1243_v43 = vpop.permute.xlu1 %1242  ;;  %v1245_v44 = vpop.permute.xlu2 %1244 }
0x1d56   : > { %v1246_v45 = vmax.f32 %v1240_v39, %v1243_v43  ;;  %v1247_v46 = vmax.f32 %v1241_v42, %v1245_v44 }
0x1d58   : > { %v1248_v47 = vsel %vm2730_vm0, %v1246_v45, -inf  ;;  %v1249_v48 = vsel %vm2730_vm0, %v1247_v46, -inf }
0x1d59   : > { %1250 = vrot.lane.b32.xlu0 %v1248_v47, %s2476_s18  ;;  %1252 = vrot.lane.b32.xlu1 %v1249_v48, %s2476_s18 }
0x1dcb   : > { %v1253_v49 = vpop.permute.xlu1 %1252  ;;  %v1251_v50 = vpop.permute.xlu0 %1250 }
0x1dcc   : > { %v1255_v51 = vmax.f32 %v1249_v48, %v1253_v49  ;;  %v1254_v52 = vmax.f32 %v1248_v47, %v1251_v50 }
0x1dce   : > { %1258 = vrot.lane.b32.xlu0 %v1255_v51, %s2477_s20  ;;  %1256 = vrot.lane.b32.xlu2 %v1254_v52, %s2477_s20 }
0x1e28   : > { %v1257_v53 = vpop.permute.xlu2 %1256 }
0x1e29   : > { %v1260_v55 = vmax.f32 %v1254_v52, %v1257_v53 }
0x1e2b   : > { %1262 = vrot.lane.b32.xlu1 %v1260_v55, %s2478_s21 }
0x1e40   : > { %v1259_v56 = vpop.permute.xlu0 %1258 }
0x1e41   : > { %v1261_v57 = vmax.f32 %v1255_v51, %v1259_v56 }
0x1e43   : > { %1264 = vrot.lane.b32.xlu2 %v1261_v57, %s2478_s21 }
0x1e9d   : > { %v1263_v58 = vpop.permute.xlu1 %1262  ;;  %v1265_v59 = vpop.permute.xlu2 %1264 }
0x1e9e   : > { %v1266_v60 = vmax.f32 %v1260_v55, %v1263_v58  ;;  %v1267_v2 = vmax.f32 %v1261_v57, %v1265_v59 }
0x1ea0   : > { %v1268_v61 = vsub.f32 %v1228_v30, %v1266_v60  ;;  %v1269_v4 = vsub.f32 %v1229_v29, %v1267_v2 }
0x1ea2   : > { %v1270_v3 = vmul.f32 1.442695, %v1268_v61  ;;  %v1272_v5 = vmul.f32 1.442695, %v1269_v4 }
0x1ea4   : > { %2335 = vpow2.f32 %v1270_v3 }
0x1ea5   : > { %2337 = vpow2.f32 %v1272_v5 }
0x1eaa   : > { %v2336_v6 = vpop.eup %2335 }
0x1eab   : > { %1290 = vmatmul.f32.vlgmr.msra.gmra.mxu2 %v2336_v6  ;;  %v2338_v7 = vpop.eup %2337 }
0x1eb3   : > { %1293 = vmatmul.f32.gmra.mxu2 %v2338_v7 }
0x1f2e   : > { %v1291_v8 = vpop.f32.mrf.mxu2 }
0x1f2f   : > { %2339 = vlog2.f32 %v1291_v8 }
0x1f35   : > { %v2340_v9 = vpop.eup %2339 }
0x1f36   : > { %v1294_v10 = vpop.f32.mrf.mxu2  ;;  %v1298_v13 = vmul.f32 0.6931472, %v2340_v9 }
0x1f37   : > { %2341 = vlog2.f32 %v1294_v10 }
0x1f38   : > { %v1301_v14 = vadd.f32 %v1298_v13, %v1266_v60 }
0x1f3a   : > { %v1303_v17 = vsub.f32 -0.6931472, %v1301_v14 }
0x1f3c   : > { %v1305_v62 = vadd.f32 %v1303_v17, %v2716_v38 }
0x1f3d   : > { %v2342_v15 = vpop.eup %2341 }
0x1f3e   : > { %v1300_v16 = vmul.f32 0.6931472, %v2342_v15 }
0x1f40   : > { %v1302_v18 = vadd.f32 %v1300_v16, %v1267_v2 }
0x1f42   : > { %v1304_v19 = vsub.f32 -0.6931472, %v1302_v18 }
0x1f44   : > { %v1306_v63 = vadd.f32 %v1304_v19, %v2720_v41 }
0x1f46   : > { %v1307_v0 = vmax.f32 %v1305_v62, %v1306_v63 }
0x1f48   : > { %v1308_v1 = vrot.slane %v1307_v0, 4 }
0x1f4a   : > { %v1309_v11 = vmax.f32 %v1307_v0, %v1308_v1 }
0x1f4c   : > { %v1310_v12 = vrot.slane %v1309_v11, 2 }
0x1f4e   : > { %v1311_v34 = vmax.f32 %v1309_v11, %v1310_v12 }
0x1f50   : > { %v1312_v20 = vrot.slane %v1311_v34, 1 }
0x1f52   : > { %v1313_v32 = vmax.f32 %v1311_v34, %v1312_v20 }
0x1f54   : > { %v1314_v21 = vsub.f32 %v1305_v62, %v1313_v32  ;;  %v1315_v22 = vsub.f32 %v1306_v63, %v1313_v32 }
0x1f56   : > { %v1316_v23 = vmul.f32 1.442695, %v1314_v21  ;;  %v1318_v24 = vmul.f32 1.442695, %v1315_v22 }
0x1f58   : > { %2343 = vpow2.f32 %v1316_v23 }
0x1f59   : > { %2345 = vpow2.f32 %v1318_v24 }
0x1f5e   : > { %v2344_v25 = vpop.eup %2343 }
0x1f5f   : > { %v2346_v26 = vpop.eup %2345 }
0x1f60   : > { %v1320_v27 = vadd.f32 %v2346_v26, %v2344_v25 }
0x1f62   : > { %v1321_v28 = vrot.slane %v1320_v27, 4 }
0x1f64   : > { %v1322_v29 = vadd.f32 %v1321_v28, %v1320_v27 }
0x1f66   : > { %v1323_v30 = vrot.slane %v1322_v29, 2 }
0x1f68   : > { %v1324_v31 = vadd.f32 %v1323_v30, %v1322_v29 }
0x1f6a   : > { %v1325_v33 = vrot.slane %v1324_v31, 1 }
0x1f6c   : > { %v1326_v35 = vadd.f32 %v1325_v33, %v1324_v31 }
0x1f6e   : > { %2347 = vlog2.f32 %v1326_v35 }
0x1f74   : > { %v2348_v36 = vpop.eup %2347 }
0x1f75   : > { %v1328_v37 = vmul.f32 0.6931472, %v2348_v36 }
0x1f77   : > { %v1329_v39 = vadd.f32 %v1328_v37, %v1313_v32 }
0x1f79   : > { %v1330_v40 = vsub.f32 0.0, %v1329_v39 }
0x1f7b   : > { %v1332_v42 = vadd.f32 %v1330_v40, %v2720_v41  ;;  %v1331_v43 = vadd.f32 %v1330_v40, %v2716_v38 }
0x1f7d   : > { %1335 = vrot.lane.b32.xlu1 %v1332_v42, %s2473_s19  ;;  %1333 = vrot.lane.b32.xlu0 %v1331_v43, %s2473_s19 }
0x1fef   : > { %v1336_v44 = vpop.permute.xlu1 %1335  ;;  %v1334_v45 = vpop.permute.xlu0 %1333 }
0x1ff0   : > { %v1338_v46 = vmax.f32 %v1332_v42, %v1336_v44  ;;  %v1337_v47 = vmax.f32 %v1331_v43, %v1334_v45 }
0x1ff2   : > { %1341 = vrot.lane.b32.xlu0 %v1338_v46, %s2474_s16  ;;  %1339 = vrot.lane.b32.xlu2 %v1337_v47, %s2474_s16  ;;  %s3609_s16 = sadd.s32 4294967295, %s2467_s24  }
0x204c   : > { %v1340_v48 = vpop.permute.xlu2 %1339 }
0x204d   : > { %v1343_v49 = vmax.f32 %v1337_v47, %v1340_v48 }
0x204f   : > { %1345 = vrot.lane.b32.xlu1 %v1343_v49, %s2475_s15 }
0x2064   : > { %v1342_v50 = vpop.permute.xlu0 %1341 }
0x2065   : > { %v1344_v51 = vmax.f32 %v1338_v46, %v1342_v50 }
0x2067   : > { %1347 = vrot.lane.b32.xlu2 %v1344_v51, %s2475_s15  ;;  %s2061_s15 = sshll.u32 %s3609_s16, 3 }
0x2068   : > { %p286_p5 = scmp.lt.s32.totalorder %s2061_s15, 15 }
0x206a   : > { %s3615_s15 = smov (!%p286_p5, %s2061_s15), 15 }
0x20c1   : > { %v1346_v52 = vpop.permute.xlu1 %1345  ;;  %v1348_v53 = vpop.permute.xlu2 %1347 }
0x20c2   : > { %v1349_v55 = vmax.f32 %v1343_v49, %v1346_v52  ;;  %v1350_v56 = vmax.f32 %v1344_v51, %v1348_v53 }
0x20c4   : > { %v1351_v57 = vsel %vm2730_vm0, %v1349_v55, -inf  ;;  %v1352_v58 = vsel %vm2730_vm0, %v1350_v56, -inf }
0x20c5   : > { %1353 = vrot.lane.b32.xlu0 %v1351_v57, %s2476_s18  ;;  %1355 = vrot.lane.b32.xlu1 %v1352_v58, %s2476_s18  ;;  %s2062_s18 = sshll.u32 %s3615_s15, 3 }
0x20c6   : > { %s3561_s8 = scalar_lea.vmem %s3600_s6, %s2062_s18 }
0x2137   : > { %v1356_v59 = vpop.permute.xlu1 %1355  ;;  %v1354_v60 = vpop.permute.xlu0 %1353 }
0x2138   : > { %v1358_v61 = vmax.f32 %v1352_v58, %v1356_v59  ;;  %v1357_v2 = vmax.f32 %v1351_v57, %v1354_v60 }
0x213a   : > { %1361 = vrot.lane.b32.xlu0 %v1358_v61, %s2477_s20  ;;  %1359 = vrot.lane.b32.xlu2 %v1357_v2, %s2477_s20 }
0x2194   : > { %v1360_v3 = vpop.permute.xlu2 %1359 }
0x2195   : > { %v1363_v4 = vmax.f32 %v1357_v2, %v1360_v3 }
0x2197   : > { %1365 = vrot.lane.b32.xlu1 %v1363_v4, %s2478_s21 }
0x21ac   : > { %v1362_v5 = vpop.permute.xlu0 %1361 }
0x21ad   : > { %v1364_v6 = vmax.f32 %v1358_v61, %v1362_v5 }
0x21af   : > { %1367 = vrot.lane.b32.xlu2 %v1364_v6, %s2478_s21 }
0x2209   : > { %v1366_v54 = vpop.permute.xlu1 %1365  ;;  %v1368_v7 = vpop.permute.xlu2 %1367 }
0x220a   : > { %v1369_v8 = vmax.f32 %v1363_v4, %v1366_v54  ;;  %v1370_v10 = vmax.f32 %v1364_v6, %v1368_v7 }
0x220c   : > { %v1371_v9 = vsub.f32 %v1331_v43, %v1369_v8  ;;  %v1372_v14 = vsub.f32 %v1332_v42, %v1370_v10 }
0x220e   : > { %v1373_v13 = vmul.f32 1.442695, %v1371_v9  ;;  %v1375_v15 = vmul.f32 1.442695, %v1372_v14  ;;  %v2110_v14 = vld [vmem:[%s3598_s4 + $0x178] sm:$0xff] }
0x220f   : > { %1780 = vmatpush.msra.mxu0 %v2110_v14  ;;  %2130 = vmatpush.msrb.mxu2 %v2110_v14 }
0x2210   : > { %2349 = vpow2.f32 %v1373_v13 }
0x2211   : > { %2351 = vpow2.f32 %v1375_v15  ;;  %v2126_v15 = vld [vmem:[%s3598_s4 + $0x1f8] sm:$0xff] }
0x2212   : > { %1821 = vmatpush.msra.mxu1 %v2126_v15  ;;  %2146 = vmatpush.msrb.mxu3 %v2126_v15 }
0x2216   : > { %v2350_v16 = vpop.eup %2349 }
0x2217   : > { %1393 = vmatmul.f32.vlgmr.msra.gmra.mxu3 %v2350_v16  ;;  %v2352_v17 = vpop.eup %2351  ;;  %v2109_v16 = vld [vmem:[%s3598_s4 + $0x170] sm:$0xff] }
0x2218   : > { %1781 = vmatpush.msra.mxu0 %v2109_v16  ;;  %2131 = vmatpush.msrb.mxu2 %v2109_v16  ;;  %v1724_v16 = vld [vmem:[%s3598_s4 + $0x48] sm:$0xff] }
0x221f   : > { %1396 = vmatmul.f32.gmra.mxu3 %v2352_v17  ;;  %v2125_v17 = vld [vmem:[%s3598_s4 + $0x1f0] sm:$0xff] }
0x2220   : > { %1822 = vmatpush.msra.mxu1 %v2125_v17  ;;  %2147 = vmatpush.msrb.mxu3 %v2125_v17  ;;  %v1740_v17 = vld [vmem:[%s3598_s4 + $0xc8] sm:$0xff] }
0x229a   : > { %v1394_v18 = vpop.f32.mrf.mxu3 }
0x229b   : > { %2353 = vlog2.f32 %v1394_v18  ;;  %v2108_v18 = vld [vmem:[%s3598_s4 + $0x168] sm:$0xff] }
0x229c   : > { %1782 = vmatpush.msra.mxu0 %v2108_v18  ;;  %2132 = vmatpush.msrb.mxu2 %v2108_v18  ;;  %v1723_v18 = vld [vmem:[%s3598_s4 + $0x40] sm:$0xff] }
0x22a1   : > { %v2354_v19 = vpop.eup %2353 }
0x22a2   : > { %v1397_v62 = vpop.f32.mrf.mxu3  ;;  %v1401_v63 = vmul.f32 0.6931472, %v2354_v19  ;;  %v2124_v19 = vld [vmem:[%s3598_s4 + $0x1e8] sm:$0xff] }
0x22a3   : > { %2355 = vlog2.f32 %v1397_v62  ;;  %1823 = vmatpush.msra.mxu1 %v2124_v19  ;;  %2148 = vmatpush.msrb.mxu3 %v2124_v19  ;;  %v1739_v19 = vld [vmem:[%s3598_s4 + $0xc0] sm:$0xff] }
0x22a4   : > { %v1404_v0 = vadd.f32 %v1401_v63, %v1369_v8 }
0x22a6   : > { %v1406_v12 = vsub.f32 -0.6931472, %v1404_v0  ;;  %v2107_v0 = vld [vmem:[%s3598_s4 + $0x160] sm:$0xff] }
0x22a7   : > { %1783 = vmatpush.msra.mxu0 %v2107_v0  ;;  %2133 = vmatpush.msrb.mxu2 %v2107_v0  ;;  %v1722_v0 = vld [vmem:[%s3598_s4 + $0x38] sm:$0xff] }
0x22a8   : > { %v1408_v32 = vadd.f32 %v1406_v12, %v2716_v38  ;;  %v2122_v12 = vld [vmem:[%s3598_s4 + $0x1d8] sm:$0xff] }
0x22a9   : > { %v2356_v1 = vpop.eup %2355 }
0x22aa   : > { %v1403_v11 = vmul.f32 0.6931472, %v2356_v1  ;;  %v2123_v1 = vld [vmem:[%s3598_s4 + $0x1e0] sm:$0xff] }
0x22ab   : > { %1824 = vmatpush.msra.mxu1 %v2123_v1  ;;  %2149 = vmatpush.msrb.mxu3 %v2123_v1  ;;  %v1669_v1 = vld [vmem:[%s3597_s3 + $0x90] sm:$0xff] }
0x22ac   : > { %v1405_v34 = vadd.f32 %v1403_v11, %v1370_v10  ;;  %v2106_v11 = vld [vmem:[%s3598_s4 + $0x158] sm:$0xff] }
0x22ad   : > { %1784 = vmatpush.msra.mxu0 %v2106_v11  ;;  %1825 = vmatpush.msra.mxu1 %v2122_v12 }
0x22ae   : > { %v1407_v20 = vsub.f32 -0.6931472, %v1405_v34  ;;  %v2105_v34 = vld [vmem:[%s3598_s4 + $0x150] sm:$0xff]  ;;  %2134 = vmatpush.msrb.mxu2 %v2106_v11  ;;  %2150 = vmatpush.msrb.mxu3 %v2122_v12  ;;  %v1670_v11 = vld [vmem:[%s3597_s3 + $0x98] sm:$0xff] }
0x22af   : > { %1785 = vmatpush.msra.mxu0 %v2105_v34 }
0x22b0   : > { %v1409_v21 = vadd.f32 %v1407_v20, %v2720_v41  ;;  %v2121_v20 = vld [vmem:[%s3598_s4 + $0x1d0] sm:$0xff]  ;;  %2135 = vmatpush.msrb.mxu2 %v2105_v34 }
0x22b1   : > { %1826 = vmatpush.msra.mxu1 %v2121_v20  ;;  %2151 = vmatpush.msrb.mxu3 %v2121_v20 }
0x22b2   : > { %v1410_v22 = vmax.f32 %v1408_v32, %v1409_v21 }
0x22b4   : > { %v1411_v23 = vrot.slane %v1410_v22, 4 }
0x22b6   : > { %v1412_v24 = vmax.f32 %v1410_v22, %v1411_v23 }
0x22b8   : > { %v1413_v25 = vrot.slane %v1412_v24, 2 }
0x22ba   : > { %v1414_v26 = vmax.f32 %v1412_v24, %v1413_v25  ;;  %v2103_v24 = vld [vmem:[%s3598_s4 + $0x140] sm:$0xff] }
0x22bb   : > { %v2119_v25 = vld [vmem:[%s3598_s4 + $0x1c0] sm:$0xff] }
0x22bc   : > { %v1415_v27 = vrot.slane %v1414_v26, 1 }
0x22be   : > { %v1416_v28 = vmax.f32 %v1414_v26, %v1415_v27  ;;  %v2102_v26 = vld [vmem:[%s3598_s4 + $0x138] sm:$0xff] }
0x22bf   : > { %v2118_v27 = vld [vmem:[%s3598_s4 + $0x1b8] sm:$0xff] }
0x22c0   : > { %v1417_v29 = vsub.f32 %v1408_v32, %v1416_v28  ;;  %v1418_v30 = vsub.f32 %v1409_v21, %v1416_v28 }
0x22c2   : > { %v1419_v31 = vmul.f32 1.442695, %v1417_v29  ;;  %v1421_v33 = vmul.f32 1.442695, %v1418_v30  ;;  %v2117_v29 = vld [vmem:[%s3598_s4 + $0x1b0] sm:$0xff]  ;;  %v2100_v30 = vld [vmem:[%s3598_s4 + $0x128] sm:$0xff] }
0x22c4   : > { %2357 = vpow2.f32 %v1419_v31  ;;  %v2116_v31 = vld [vmem:[%s3598_s4 + $0x1a8] sm:$0xff] }
0x22c5   : > { %2359 = vpow2.f32 %v1421_v33 }
0x22ca   : > { %v2358_v35 = vpop.eup %2357 }
0x22cb   : > { %v2360_v36 = vpop.eup %2359 }
0x22cc   : > { %v1423_v37 = vadd.f32 %v2360_v36, %v2358_v35  ;;  %v2099_v36 = vld [vmem:[%s3598_s4 + $0x120] sm:$0xff] }
0x22ce   : > { %v1424_v39 = vrot.slane %v1423_v37, 4 }
0x22d0   : > { %v1425_v38 = vadd.f32 %v1424_v39, %v1423_v37  ;;  %v2115_v37 = vld [vmem:[%s3598_s4 + $0x1a0] sm:$0xff]  ;;  %v2098_v39 = vld [vmem:[%s3598_s4 + $0x118] sm:$0xff] }
0x22d2   : > { %v1426_v40 = vrot.slane %v1425_v38, 2 }
0x22d4   : > { %v1427_v41 = vadd.f32 %v1426_v40, %v1425_v38  ;;  %v2114_v38 = vld [vmem:[%s3598_s4 + $0x198] sm:$0xff]  ;;  %v2097_v40 = vld [vmem:[%s3598_s4 + $0x110] sm:$0xff] }
0x22d6   : > { %v1428_v42 = vrot.slane %v1427_v41, 1 }
0x22d8   : > { %v1429_v43 = vadd.f32 %v1428_v42, %v1427_v41  ;;  %v2113_v41 = vld [vmem:[%s3598_s4 + $0x190] sm:$0xff]  ;;  %v2096_v42 = vld [vmem:[%s3598_s4 + $0x108] sm:$0xff] }
0x22da   : > { %2361 = vlog2.f32 %v1429_v43  ;;  %v2112_v43 = vld [vmem:[%s3598_s4 + $0x188] sm:$0xff] }
0x22e0   : > { %v2362_v44 = vpop.eup %2361 }
0x22e1   : > { %v1431_v45 = vmul.f32 0.6931472, %v2362_v44 }
0x22e3   : > { %v1432_v46 = vadd.f32 %v1431_v45, %v1416_v28  ;;  %v2101_v28 = vld [vmem:[%s3598_s4 + $0x130] sm:$0xff] }
0x22e5   : > { %v1433_v47 = vsub.f32 0.0, %v1432_v46  ;;  %v2095_v46 = vld [vmem:[%s3598_s4 + $0x100] sm:$0xff] }
0x22e7   : > { %v1434_v48 = vadd.f32 %v1433_v47, %v1408_v32  ;;  %v1435_v50 = vadd.f32 %v1433_v47, %v1409_v21  ;;  %v2104_v32 = vld [vmem:[%s3598_s4 + $0x148] sm:$0xff]  ;;  %v2111_v47 = vld [vmem:[%s3598_s4 + $0x180] sm:$0xff] }
0x22e8   : > { %v2120_v21 = vld [vmem:[%s3598_s4 + $0x1c8] sm:$0xff]  ;;  %1786 = vmatpush.msra.mxu0 %v2104_v32  ;;  %2136 = vmatpush.msrb.mxu2 %v2104_v32 }
0x22e9   : > { %v1436_v49 = vmul.f32 1.442695, %v1434_v48  ;;  %v1438_v51 = vmul.f32 1.442695, %v1435_v50  ;;  %1827 = vmatpush.msra.mxu1 %v2120_v21  ;;  %2152 = vmatpush.msrb.mxu3 %v2120_v21  ;;  %v1730_v50 = vld [vmem:[%s3598_s4 + $0x78] sm:$0xff] }
0x22ea   : > { %1787 = vmatpush.msra.mxu0 %v2103_v24  ;;  %2137 = vmatpush.msrb.mxu2 %v2103_v24  ;;  %v1738_v21 = vld [vmem:[%s3598_s4 + $0xb8] sm:$0xff]  ;;  %v1721_v24 = vld [vmem:[%s3598_s4 + $0x30] sm:$0xff] }
0x22eb   : > { %2363 = vpow2.f32 %v1436_v49  ;;  %1828 = vmatpush.msra.mxu1 %v2119_v25  ;;  %2153 = vmatpush.msrb.mxu3 %v2119_v25  ;;  %v1737_v25 = vld [vmem:[%s3598_s4 + $0xb0] sm:$0xff] }
0x22ec   : > { %2365 = vpow2.f32 %v1438_v51  ;;  %1788 = vmatpush.msra.mxu0 %v2102_v26  ;;  %2138 = vmatpush.msrb.mxu2 %v2102_v26  ;;  %v1746_v51 = vld [vmem:[%s3598_s4 + $0xf8] sm:$0xff]  ;;  %v1720_v26 = vld [vmem:[%s3598_s4 + $0x28] sm:$0xff] }
0x22ed   : > { %1829 = vmatpush.msra.mxu1 %v2118_v27  ;;  %2154 = vmatpush.msrb.mxu3 %v2118_v27  ;;  %v1671_v27 = vld [vmem:[%s3597_s3 + $0xa0] sm:$0xff] }
0x22ee   : > { %1789 = vmatpush.msra.mxu0 %v2101_v28  ;;  %2139 = vmatpush.msrb.mxu2 %v2101_v28  ;;  %v1672_v28 = vld [vmem:[%s3597_s3 + $0xa8] sm:$0xff] }
0x22ef   : > { %1830 = vmatpush.msra.mxu1 %v2117_v29  ;;  %2155 = vmatpush.msrb.mxu3 %v2117_v29 }
0x22f0   : > { %1790 = vmatpush.msra.mxu0 %v2100_v30  ;;  %2140 = vmatpush.msrb.mxu2 %v2100_v30 }
0x22f1   : > { %v2364_v52 = vpop.eup %2363  ;;  %1831 = vmatpush.msra.mxu1 %v2116_v31  ;;  %2156 = vmatpush.msrb.mxu3 %v2116_v31 }
0x22f2   : > { %1440 = vxpose.xlu0.b32.start [1/2] (short) %v2364_v52, 128  ;;  %v2366_v53 = vpop.eup %2365  ;;  %1791 = vmatpush.msra.mxu0 %v2099_v36  ;;  %v1729_v52 = vld [vmem:[%s3598_s4 + $0x70] sm:$0xff] }
0x22f3   : > { %1832 = vmatpush.msra.mxu1 %v2115_v37  ;;  %2141 = vmatpush.msrb.mxu2 %v2099_v36 }
0x22f4   : > { %2157 = vmatpush.msrb.mxu3 %v2115_v37  ;;  %1792 = vmatpush.msra.mxu0 %v2098_v39  ;;  %v1736_v37 = vld [vmem:[%s3598_s4 + $0xa8] sm:$0xff] }
0x22f5   : > { %1833 = vmatpush.msra.mxu1 %v2114_v38  ;;  %2142 = vmatpush.msrb.mxu2 %v2098_v39  ;;  %v1719_v39 = vld [vmem:[%s3598_s4 + $0x20] sm:$0xff] }
0x22f6   : > { %2158 = vmatpush.msrb.mxu3 %v2114_v38  ;;  %1793 = vmatpush.msra.mxu0 %v2097_v40  ;;  %v1735_v38 = vld [vmem:[%s3598_s4 + $0xa0] sm:$0xff] }
0x22f7   : > { %1834 = vmatpush.msra.mxu1 %v2113_v41  ;;  %2143 = vmatpush.msrb.mxu2 %v2097_v40  ;;  %v1718_v40 = vld [vmem:[%s3598_s4 + $0x18] sm:$0xff] }
0x22f8   : > { %2159 = vmatpush.msrb.mxu3 %v2113_v41  ;;  %1794 = vmatpush.msra.mxu0 %v2096_v42  ;;  %v1734_v41 = vld [vmem:[%s3598_s4 + $0x98] sm:$0xff] }
0x22f9   : > { %1835 = vmatpush.msra.mxu1 %v2112_v43  ;;  %2144 = vmatpush.msrb.mxu2 %v2096_v42  ;;  %v1673_v42 = vld [vmem:[%s3597_s3 + $0xb0] sm:$0xff] }
0x22fa   : > { %1441 = vxpose.xlu0.b32.end [2/2] (short) %v2366_v53, 128  ;;  %2160 = vmatpush.msrb.mxu3 %v2112_v43  ;;  %v1674_v43 = vld [vmem:[%s3597_s3 + $0xb8] sm:$0xff] }
0x22fb   : > { %1795 = vmatpush.msra.mxu0 %v2095_v46  ;;  %1836 = vmatpush.msra.mxu1 %v2111_v47 }
0x22fc   : > { %2145 = vmatpush.msrb.mxu2 %v2095_v46  ;;  %2161 = vmatpush.msrb.mxu3 %v2111_v47 }
0x22fe   : > { %1862 = vmatpush.msra.mxu2 %v1730_v50  ;;  %1903 = vmatpush.msra.mxu3 %v1746_v51 }
0x2300   : > { %1863 = vmatpush.msra.mxu2 %v1729_v52  ;;  %v1717_v52 = vld [vmem:[%s3598_s4 + $0x10] sm:$0xff] }
0x2396   : > { %v1456_v55 = vpop.trf.xlu0 }
0x2397   : > { %2063 = vmatmul.msk.f32.vlgmr.msrb.gmra.mxu0 %vm1472_vm1, %v1456_v55  ;;  %2079 = vmatmul.msk.f32.vlgmr.msrb.gmra.mxu1 %vm1472_vm1, %v1456_v55 }
0x239e   : > { %v1457_v56 = vpop.trf.xlu0 }
0x239f   : > { %2064 = vmatmul.msk.f32.gmra.mxu0 %vm1472_vm1, %v1457_v56  ;;  %2080 = vmatmul.msk.f32.gmra.mxu1 %vm1472_vm1, %v1457_v56  ;;  %v1745_v56 = vld [vmem:[%s3598_s4 + $0xf0] sm:$0xff] }
0x23a0   : > { %1904 = vmatpush.msra.mxu3 %v1745_v56  ;;  %v1733_v56 = vld [vmem:[%s3598_s4 + $0x90] sm:$0xff] }
0x23a6   : > { %v1458_v57 = vpop.trf.xlu0 }
0x23a7   : > { %2065 = vmatmul.msk.f32.gmra.mxu0 %vm1472_vm1, %v1458_v57  ;;  %2081 = vmatmul.msk.f32.gmra.mxu1 %vm1472_vm1, %v1458_v57  ;;  %v1728_v57 = vld [vmem:[%s3598_s4 + $0x68] sm:$0xff] }
0x23a8   : > { %1864 = vmatpush.msra.mxu2 %v1728_v57  ;;  %v1716_v57 = vld [vmem:[%s3598_s4 + $0x8] sm:$0xff] }
0x23ae   : > { %v1459_v58 = vpop.trf.xlu0 }
0x23af   : > { %2066 = vmatmul.msk.f32.gmra.mxu0 %vm1472_vm1, %v1459_v58  ;;  %2082 = vmatmul.msk.f32.gmra.mxu1 %vm1472_vm1, %v1459_v58  ;;  %v1744_v58 = vld [vmem:[%s3598_s4 + $0xe8] sm:$0xff] }
0x23b0   : > { %1905 = vmatpush.msra.mxu3 %v1744_v58  ;;  %v1732_v58 = vld [vmem:[%s3598_s4 + $0x88] sm:$0xff] }
0x23b6   : > { %v1460_v59 = vpop.trf.xlu0 }
0x23b7   : > { %2067 = vmatmul.msk.f32.gmra.mxu0 %vm1472_vm1, %v1460_v59  ;;  %2083 = vmatmul.msk.f32.gmra.mxu1 %vm1472_vm1, %v1460_v59  ;;  %v1727_v59 = vld [vmem:[%s3598_s4 + $0x60] sm:$0xff] }
0x23b8   : > { %1865 = vmatpush.msra.mxu2 %v1727_v59  ;;  %v1715_v59 = vld [vmem:[%s3598_s4] sm:$0xff] }
0x23be   : > { %v1461_v60 = vpop.trf.xlu0 }
0x23bf   : > { %2068 = vmatmul.msk.f32.gmra.mxu0 %vm1472_vm1, %v1461_v60  ;;  %2084 = vmatmul.msk.f32.gmra.mxu1 %vm1472_vm1, %v1461_v60 }
0x23c6   : > { %v1462_v61 = vpop.trf.xlu0 }
0x23c7   : > { %2069 = vmatmul.msk.f32.gmra.mxu0 %vm1472_vm1, %v1462_v61  ;;  %2085 = vmatmul.msk.f32.gmra.mxu1 %vm1472_vm1, %v1462_v61 }
0x23ce   : > { %v1463_v2 = vpop.trf.xlu0 }
0x23cf   : > { %2070 = vmatmul.msk.f32.gmra.mxu0 %vm1472_vm1, %v1463_v2  ;;  %2086 = vmatmul.msk.f32.gmra.mxu1 %vm1472_vm1, %v1463_v2  ;;  %v1743_v2 = vld [vmem:[%s3598_s4 + $0xe0] sm:$0xff] }
0x23d0   : > { %1906 = vmatpush.msra.mxu3 %v1743_v2  ;;  %v1731_v2 = vld [vmem:[%s3598_s4 + $0x80] sm:$0xff] }
0x23d6   : > { %v1464_v3 = vpop.trf.xlu0 }
0x23d7   : > { %2071 = vmatmul.msk.f32.gmra.mxu0 %vm1472_vm1, %v1464_v3  ;;  %2087 = vmatmul.msk.f32.gmra.mxu1 %vm1472_vm1, %v1464_v3  ;;  %v1726_v3 = vld [vmem:[%s3598_s4 + $0x58] sm:$0xff] }
0x23d8   : > { %1866 = vmatpush.msra.mxu2 %v1726_v3  ;;  %v1675_v3 = vld [vmem:[%s3597_s3 + $0xc0] sm:$0xff] }
0x23de   : > { %v1465_v4 = vpop.trf.xlu0 }
0x23df   : > { %2072 = vmatmul.msk.f32.gmra.mxu0 %vm1472_vm1, %v1465_v4  ;;  %2088 = vmatmul.msk.f32.gmra.mxu1 %vm1472_vm1, %v1465_v4  ;;  %v1742_v4 = vld [vmem:[%s3598_s4 + $0xd8] sm:$0xff] }
0x23e0   : > { %1907 = vmatpush.msra.mxu3 %v1742_v4  ;;  %v1676_v4 = vld [vmem:[%s3597_s3 + $0xc8] sm:$0xff] }
0x23e6   : > { %v1466_v5 = vpop.trf.xlu0 }
0x23e7   : > { %2073 = vmatmul.msk.f32.gmra.mxu0 %vm1472_vm1, %v1466_v5  ;;  %2089 = vmatmul.msk.f32.gmra.mxu1 %vm1472_vm1, %v1466_v5  ;;  %v1725_v5 = vld [vmem:[%s3598_s4 + $0x50] sm:$0xff] }
0x23e8   : > { %1867 = vmatpush.msra.mxu2 %v1725_v5 }
0x23ea   : > { %1868 = vmatpush.msra.mxu2 %v1724_v16 }
0x23ec   : > { %1869 = vmatpush.msra.mxu2 %v1723_v18  ;;  %v1679_v18 = vld [vmem:[%s3597_s3 + $0xe0] sm:$0xff] }
0x23ee   : > { %v1467_v6 = vpop.trf.xlu0  ;;  %1870 = vmatpush.msra.mxu2 %v1722_v0 }
0x23ef   : > { %2074 = vmatmul.msk.f32.gmra.mxu0 %vm1472_vm1, %v1467_v6  ;;  %2090 = vmatmul.msk.f32.gmra.mxu1 %vm1472_vm1, %v1467_v6  ;;  %v1741_v6 = vld [vmem:[%s3598_s4 + $0xd0] sm:$0xff] }
0x23f0   : > { %1908 = vmatpush.msra.mxu3 %v1741_v6  ;;  %1871 = vmatpush.msra.mxu2 %v1721_v24 }
0x23f2   : > { %1909 = vmatpush.msra.mxu3 %v1740_v17  ;;  %1872 = vmatpush.msra.mxu2 %v1720_v26  ;;  %v1651_v26 = vld [vmem:[%s3597_s3] sm:$0xff] }
0x23f4   : > { %1910 = vmatpush.msra.mxu3 %v1739_v19  ;;  %1873 = vmatpush.msra.mxu2 %v1719_v39  ;;  %v1680_v19 = vld [vmem:[%s3597_s3 + $0xe8] sm:$0xff] }
0x23f6   : > { %v1468_v54 = vpop.trf.xlu0  ;;  %1911 = vmatpush.msra.mxu3 %v1738_v21  ;;  %1874 = vmatpush.msra.mxu2 %v1718_v40 }
0x23f7   : > { %2075 = vmatmul.msk.f32.gmra.mxu0 %vm1472_vm1, %v1468_v54  ;;  %2091 = vmatmul.msk.f32.gmra.mxu1 %vm1472_vm1, %v1468_v54  ;;  %v1667_v54 = vld [vmem:[%s3597_s3 + $0x80] sm:$0xff] }
0x23f8   : > { %1912 = vmatpush.msra.mxu3 %v1737_v25  ;;  %1875 = vmatpush.msra.mxu2 %v1717_v52 }
0x23fa   : > { %1913 = vmatpush.msra.mxu3 %v1736_v37  ;;  %1876 = vmatpush.msra.mxu2 %v1716_v57 }
0x23fc   : > { %1914 = vmatpush.msra.mxu3 %v1735_v38  ;;  %1877 = vmatpush.msra.mxu2 %v1715_v59 }
0x23fe   : > { %v1469_v7 = vpop.trf.xlu0  ;;  %1915 = vmatpush.msra.mxu3 %v1734_v41 }
0x23ff   : > { %2076 = vmatmul.msk.f32.gmra.mxu0 %vm1472_vm1, %v1469_v7  ;;  %2092 = vmatmul.msk.f32.gmra.mxu1 %vm1472_vm1, %v1469_v7  ;;  %v1668_v7 = vld [vmem:[%s3597_s3 + $0x88] sm:$0xff] }
0x2400   : > { %1916 = vmatpush.msra.mxu3 %v1733_v56 }
0x2402   : > { %1917 = vmatpush.msra.mxu3 %v1732_v58 }
0x2404   : > { %1918 = vmatpush.msra.mxu3 %v1731_v2 }
0x2406   : > { %v1470_v8 = vpop.trf.xlu0 }
0x2407   : > { %2077 = vmatmul.msk.f32.gmra.mxu0 %vm1472_vm1, %v1470_v8  ;;  %2093 = vmatmul.msk.f32.gmra.mxu1 %vm1472_vm1, %v1470_v8 }
0x240e   : > { %v1471_v9 = vpop.trf.xlu0 }
0x240f   : > { %2078 = vmatmul.msk.f32.gmra.mxu0 %vm1472_vm1, %v1471_v9  ;;  %2094 = vmatmul.msk.f32.gmra.mxu1 %vm1472_vm1, %v1471_v9 }
0x2414   : > { %v3216_v10 = vpop.f32.mrf.mxu0  ;;  %v3218_v13 = vpop.f32.mrf.mxu1 }
0x241c   : > { %v3238_v62 = vpop.f32.mrf.mxu0  ;;  %v3240_v63 = vpop.f32.mrf.mxu1 }
0x2424   : > { %v3266_v22 = vpop.f32.mrf.mxu0  ;;  %v3268_v23 = vpop.f32.mrf.mxu1 }
0x242c   : > { %v3294_v33 = vpop.f32.mrf.mxu0  ;;  %v3296_v35 = vpop.f32.mrf.mxu1 }
0x2434   : > { %v3322_v44 = vpop.f32.mrf.mxu0  ;;  %v3324_v45 = vpop.f32.mrf.mxu1 }
0x243c   : > { %v3332_v48 = vpop.f32.mrf.mxu0  ;;  %v3334_v49 = vpop.f32.mrf.mxu1 }
0x2444   : > { %v3345_v53 = vpop.f32.mrf.mxu0  ;;  %v3347_v55 = vpop.f32.mrf.mxu1 }
0x244c   : > { %v3361_v60 = vpop.f32.mrf.mxu0  ;;  %v3363_v61 = vpop.f32.mrf.mxu1 }
0x2454   : > { %v1562_v8 = vpop.f32.mrf.mxu0  ;;  %v1627_v9 = vpop.f32.mrf.mxu1 }
0x2455   : > { %v1699_v14 = vmul.f32 %v1667_v54, %v1562_v8  ;;  %v1700_v15 = vmul.f32 %v1668_v7, %v1627_v9  ;;  %v1677_v8 = vld [vmem:[%s3597_s3 + $0xd0] sm:$0xff]  ;;  %v1678_v9 = vld [vmem:[%s3597_s3 + $0xd8] sm:$0xff] }
0x2457   : > { %1796 = vmatmul.f32.vlgmr.msra.gmra.mxu0 %v1699_v14  ;;  %1837 = vmatmul.f32.vlgmr.msra.gmra.mxu1 %v1700_v15 }
0x245c   : > { %v1565_v12 = vpop.f32.mrf.mxu0  ;;  %v1630_v34 = vpop.f32.mrf.mxu1 }
0x245d   : > { %v1701_v20 = vmul.f32 %v1669_v1, %v1565_v12  ;;  %v1702_v32 = vmul.f32 %v1670_v11, %v1630_v34  ;;  %v1681_v34 = vld [vmem:[%s3597_s3 + $0xf0] sm:$0xff] }
0x245f   : > { %1799 = vmatmul.f32.vlgmr.msrb.gmra.mxu2 %v1701_v20  ;;  %1840 = vmatmul.f32.vlgmr.msrb.gmra.mxu3 %v1702_v32  ;;  %v1682_v20 = vld [vmem:[%s3597_s3 + $0xf8] sm:$0xff] }
0x2464   : > { %v1568_v29 = vpop.f32.mrf.mxu0  ;;  %v1633_v30 = vpop.f32.mrf.mxu1 }
0x2465   : > { %v1703_v31 = vmul.f32 %v1671_v27, %v1568_v29  ;;  %v1704_v36 = vmul.f32 %v1672_v28, %v1633_v30  ;;  %v1652_v27 = vld [vmem:[%s3597_s3 + $0x8] sm:$0xff]  ;;  %v1683_v28 = vmul.f32 %v1651_v26, %v3216_v10  ;;  %v1653_v30 = vld [vmem:[%s3597_s3 + $0x10] sm:$0xff]  ;;  %v1655_v10 = vld [vmem:[%s3597_s3 + $0x20] sm:$0xff] }
0x2466   : > { %v1684_v29 = vmul.f32 %v1652_v27, %v3218_v13  ;;  %v1656_v13 = vld [vmem:[%s3597_s3 + $0x28] sm:$0xff]  ;;  %v1687_v39 = vmul.f32 %v1655_v10, %v3266_v22  ;;  %v1659_v22 = vld [vmem:[%s3597_s3 + $0x40] sm:$0xff] }
0x2467   : > { %1802 = vmatmul.f32.gmra.mxu2 %v1703_v31  ;;  %1843 = vmatmul.f32.gmra.mxu3 %v1704_v36  ;;  %v1654_v31 = vld [vmem:[%s3597_s3 + $0x18] sm:$0xff]  ;;  %v1685_v36 = vmul.f32 %v1653_v30, %v3238_v62  ;;  %v1688_v38 = vmul.f32 %v1656_v13, %v3268_v23  ;;  %v1657_v62 = vld [vmem:[%s3597_s3 + $0x30] sm:$0xff]  ;;  %v1660_v23 = vld [vmem:[%s3597_s3 + $0x48] sm:$0xff] }
0x2468   : > { %v1686_v37 = vmul.f32 %v1654_v31, %v3240_v63  ;;  %v1658_v63 = vld [vmem:[%s3597_s3 + $0x38] sm:$0xff]  ;;  %v1689_v40 = vmul.f32 %v1657_v62, %v3294_v33  ;;  %v1661_v33 = vld [vmem:[%s3597_s3 + $0x50] sm:$0xff] }
0x2469   : > { %v1690_v41 = vmul.f32 %v1658_v63, %v3296_v35  ;;  %v1662_v35 = vld [vmem:[%s3597_s3 + $0x58] sm:$0xff] }
0x246c   : > { %v1571_v46 = vpop.f32.mrf.mxu0  ;;  %v1636_v47 = vpop.f32.mrf.mxu1 }
0x246d   : > { %v1705_v50 = vmul.f32 %v1673_v42, %v1571_v46  ;;  %v1706_v51 = vmul.f32 %v1674_v43, %v1636_v47  ;;  %v1691_v42 = vmul.f32 %v1659_v22, %v3322_v44  ;;  %v1692_v43 = vmul.f32 %v1660_v23, %v3324_v45  ;;  %v1663_v44 = vld [vmem:[%s3597_s3 + $0x60] sm:$0xff]  ;;  %v1664_v45 = vld [vmem:[%s3597_s3 + $0x68] sm:$0xff] }
0x246e   : > { %v1693_v46 = vmul.f32 %v1661_v33, %v3332_v48  ;;  %v1694_v47 = vmul.f32 %v1662_v35, %v3334_v49  ;;  %v1665_v48 = vld [vmem:[%s3597_s3 + $0x70] sm:$0xff]  ;;  %v1666_v49 = vld [vmem:[%s3597_s3 + $0x78] sm:$0xff] }
0x246f   : > { %1805 = vmatmul.f32.gmra.mxu2 %v1705_v50  ;;  %1846 = vmatmul.f32.gmra.mxu3 %v1706_v51  ;;  %v1695_v50 = vmul.f32 %v1663_v44, %v3345_v53  ;;  %v1696_v51 = vmul.f32 %v1664_v45, %v3347_v55  ;;  %v1697_v52 = vmul.f32 %v1665_v48, %v3361_v60 }
0x2470   : > { %v1698_v56 = vmul.f32 %v1666_v49, %v3363_v61 }
0x2474   : > { %v1574_v5 = vpop.f32.mrf.mxu0  ;;  %v1639_v6 = vpop.f32.mrf.mxu1 }
0x2475   : > { %v1707_v54 = vmul.f32 %v1675_v3, %v1574_v5  ;;  %v1708_v7 = vmul.f32 %v1676_v4, %v1639_v6 }
0x2477   : > { %1808 = vmatmul.f32.gmra.mxu2 %v1707_v54  ;;  %1849 = vmatmul.f32.gmra.mxu3 %v1708_v7 }
0x247c   : > { %v1577_v14 = vpop.f32.mrf.mxu0  ;;  %v1642_v15 = vpop.f32.mrf.mxu1 }
0x247d   : > { %v1709_v16 = vmul.f32 %v1677_v8, %v1577_v14  ;;  %v1710_v17 = vmul.f32 %v1678_v9, %v1642_v15 }
0x247f   : > { %1811 = vmatmul.f32.gmra.mxu2 %v1709_v16  ;;  %1852 = vmatmul.f32.gmra.mxu3 %v1710_v17 }
0x2484   : > { %v1580_v0 = vpop.f32.mrf.mxu0  ;;  %v1645_v1 = vpop.f32.mrf.mxu1 }
0x2485   : > { %v1711_v11 = vmul.f32 %v1679_v18, %v1580_v0  ;;  %v1712_v12 = vmul.f32 %v1680_v19, %v1645_v1  ;;  %v2222_v18 = vld [vmem:[#allocation4] ss:$0 sm:$0xff] }
0x2487   : > { %1814 = vmatmul.f32.gmra.mxu2 %v1711_v11  ;;  %1855 = vmatmul.f32.gmra.mxu3 %v1712_v12 }
0x248c   : > { %v1583_v32 = vpop.f32.mrf.mxu0  ;;  %v1648_v21 = vpop.f32.mrf.mxu1 }
0x248d   : > { %v1713_v24 = vmul.f32 %v1681_v34, %v1583_v32  ;;  %v1714_v25 = vmul.f32 %v1682_v20, %v1648_v21 }
0x248f   : > { %1817 = vmatmul.f32.gmra.mxu2 %v1713_v24  ;;  %1858 = vmatmul.f32.gmra.mxu3 %v1714_v25 }
0x2497   : > { %1878 = vmatmul.f32.vlgmr.msra.gmra.mxu2 %v1683_v28  ;;  %1919 = vmatmul.f32.vlgmr.msra.gmra.mxu3 %v1684_v29 }
0x249f   : > { %1881 = vmatmul.f32.gmra.mxu2 %v1685_v36  ;;  %1922 = vmatmul.f32.gmra.mxu3 %v1686_v37 }
0x24a7   : > { %1884 = vmatmul.f32.gmra.mxu2 %v1687_v39  ;;  %1925 = vmatmul.f32.gmra.mxu3 %v1688_v38 }
0x24af   : > { %1887 = vmatmul.f32.gmra.mxu2 %v1689_v40  ;;  %1928 = vmatmul.f32.gmra.mxu3 %v1690_v41 }
0x24b7   : > { %1890 = vmatmul.f32.gmra.mxu2 %v1691_v42  ;;  %1931 = vmatmul.f32.gmra.mxu3 %v1692_v43 }
0x24bf   : > { %1893 = vmatmul.f32.gmra.mxu2 %v1693_v46  ;;  %1934 = vmatmul.f32.gmra.mxu3 %v1694_v47 }
0x24c7   : > { %1896 = vmatmul.f32.gmra.mxu2 %v1695_v50  ;;  %1937 = vmatmul.f32.gmra.mxu3 %v1696_v51 }
0x24cf   : > { %1899 = vmatmul.f32.gmra.mxu2 %v1697_v52  ;;  %1940 = vmatmul.f32.gmra.mxu3 %v1698_v56 }
0x24d4   : > { %v1797_v61 = vpop.f32.mrf.mxu0  ;;  %v1838_v9 = vpop.f32.mrf.mxu1 }
0x24d5   : > { %v1839_v14 = vadd.f32 %v1838_v9, %v1797_v61 }
0x24e2   : > { %v1800_v53 = vpop.f32.mrf.mxu2  ;;  %v1841_v57 = vpop.f32.mrf.mxu3 }
0x24e3   : > { %v1842_v1 = vadd.f32 %v1841_v57, %v1800_v53 }
0x24ea   : > { %v1803_v55 = vpop.f32.mrf.mxu2  ;;  %v1844_v58 = vpop.f32.mrf.mxu3 }
0x24eb   : > { %v1845_v24 = vadd.f32 %v1844_v58, %v1803_v55 }
0x24f2   : > { %v1806_v59 = vpop.f32.mrf.mxu2  ;;  %v1847_v2 = vpop.f32.mrf.mxu3 }
0x24f3   : > { %v1848_v31 = vadd.f32 %v1847_v2, %v1806_v59 }
0x24fa   : > { %v1809_v3 = vpop.f32.mrf.mxu2  ;;  %v1850_v4 = vpop.f32.mrf.mxu3 }
0x24fb   : > { %v1851_v62 = vadd.f32 %v1850_v4, %v1809_v3 }
0x2502   : > { %v1812_v5 = vpop.f32.mrf.mxu2  ;;  %v1853_v6 = vpop.f32.mrf.mxu3 }
0x2503   : > { %v1854_v43 = vadd.f32 %v1853_v6, %v1812_v5 }
0x250a   : > { %v1815_v54 = vpop.f32.mrf.mxu2  ;;  %v1856_v7 = vpop.f32.mrf.mxu3 }
0x250b   : > { %v1857_v50 = vadd.f32 %v1856_v7, %v1815_v54 }
0x2512   : > { %v3552_v8 = vpop.f32.mrf.mxu2  ;;  %v3554_v60 = vpop.f32.mrf.mxu3 }
0x2513   : > { %v1860_v57 = vadd.f32 %v3554_v60, %v3552_v8 }
0x251a   : > { %v1879_v15 = vpop.f32.mrf.mxu2  ;;  %v1920_v16 = vpop.f32.mrf.mxu3 }
0x251b   : > { %v1880_v17 = vadd.f32 %v1879_v15, %v1839_v14 }
0x251d   : > { %v1921_v19 = vadd.f32 %v1920_v16, %v1880_v17 }
0x251f   : > { %v1948_v0 = vadd.f32 %v2222_v18, %v1921_v19 }
0x2521   : > { %v1956_v11 = vmax.f32 %v1948_v0, 0.0 }
0x2522   : > { %v1882_v12 = vpop.f32.mrf.mxu2  ;;  %v1923_v34 = vpop.f32.mrf.mxu3 }
0x2523   : > { %1965 = vst.msk [vmem:[%s3561_s8] sm:$0xff] %vm1964_vm2, %v1956_v11  ;;  %v1883_v20 = vadd.f32 %v1882_v12, %v1842_v1 }
0x2525   : > { %v1924_v32 = vadd.f32 %v1923_v34, %v1883_v20 }
0x2527   : > { %v1949_v21 = vadd.f32 %v2222_v18, %v1924_v32 }
0x2529   : > { %v1957_v25 = vmax.f32 %v1949_v21, 0.0 }
0x252a   : > { %v1885_v26 = vpop.f32.mrf.mxu2  ;;  %v1926_v27 = vpop.f32.mrf.mxu3 }
0x252b   : > { %1966 = vst.msk [vmem:[%s3561_s8 + $0x8] sm:$0xff] %vm1964_vm2, %v1957_v25  ;;  %v1886_v28 = vadd.f32 %v1885_v26, %v1845_v24 }
0x252d   : > { %v1927_v29 = vadd.f32 %v1926_v27, %v1886_v28 }
0x252f   : > { %v1950_v30 = vadd.f32 %v2222_v18, %v1927_v29 }
0x2531   : > { %v1958_v36 = vmax.f32 %v1950_v30, 0.0 }
0x2532   : > { %v1888_v37 = vpop.f32.mrf.mxu2  ;;  %v1929_v10 = vpop.f32.mrf.mxu3 }
0x2533   : > { %1967 = vst.msk [vmem:[%s3561_s8 + $0x10] sm:$0xff] %vm1964_vm2, %v1958_v36  ;;  %v1889_v13 = vadd.f32 %v1888_v37, %v1848_v31 }
0x2535   : > { %v1930_v39 = vadd.f32 %v1929_v10, %v1889_v13 }
0x2537   : > { %v1951_v38 = vadd.f32 %v2222_v18, %v1930_v39 }
0x2539   : > { %v1959_v63 = vmax.f32 %v1951_v38, 0.0 }
0x253a   : > { %v1891_v40 = vpop.f32.mrf.mxu2  ;;  %v1932_v41 = vpop.f32.mrf.mxu3 }
0x253b   : > { %1968 = vst.msk [vmem:[%s3561_s8 + $0x18] sm:$0xff] %vm1964_vm2, %v1959_v63  ;;  %v1892_v22 = vadd.f32 %v1891_v40, %v1851_v62 }
0x253d   : > { %v1933_v23 = vadd.f32 %v1932_v41, %v1892_v22 }
0x253f   : > { %v1952_v42 = vadd.f32 %v2222_v18, %v1933_v23 }
0x2541   : > { %v1960_v33 = vmax.f32 %v1952_v42, 0.0 }
0x2542   : > { %v1894_v35 = vpop.f32.mrf.mxu2  ;;  %v1935_v46 = vpop.f32.mrf.mxu3 }
0x2543   : > { %1969 = vst.msk [vmem:[%s3561_s8 + $0x20] sm:$0xff] %vm1964_vm2, %v1960_v33  ;;  %v1895_v47 = vadd.f32 %v1894_v35, %v1854_v43 }
0x2545   : > { %v1936_v44 = vadd.f32 %v1935_v46, %v1895_v47 }
0x2547   : > { %v1953_v45 = vadd.f32 %v2222_v18, %v1936_v44 }
0x2549   : > { %v1961_v51 = vmax.f32 %v1953_v45, 0.0 }
0x254a   : > { %v1897_v48 = vpop.f32.mrf.mxu2  ;;  %v1938_v49 = vpop.f32.mrf.mxu3 }
0x254b   : > { %1970 = vst.msk [vmem:[%s3561_s8 + $0x28] sm:$0xff] %vm1964_vm2, %v1961_v51  ;;  %v1898_v52 = vadd.f32 %v1897_v48, %v1857_v50 }
0x254d   : > { %v1939_v56 = vadd.f32 %v1938_v49, %v1898_v52 }
0x254f   : > { %v1954_v53 = vadd.f32 %v2222_v18, %v1939_v56 }
0x2551   : > { %v1962_v55 = vmax.f32 %v1954_v53, 0.0 }
0x2552   : > { %v1900_v58 = vpop.f32.mrf.mxu2  ;;  %v1941_v2 = vpop.f32.mrf.mxu3 }
0x2553   : > { %1971 = vst.msk [vmem:[%s3561_s8 + $0x30] sm:$0xff] %vm1964_vm2, %v1962_v55  ;;  %v1901_v59 = vadd.f32 %v1900_v58, %v1860_v57 }
0x2555   : > { %v1942_v3 = vadd.f32 %v1941_v2, %v1901_v59 }
0x2557   : > { %v1955_v4 = vadd.f32 %v2222_v18, %v1942_v3 }
0x2559   : > { %v1963_v5 = vmax.f32 %v1955_v4, 0.0 }
0x255b   : > { %1972 = vst.msk [vmem:[%s3561_s8 + $0x38] sm:$0xff] %vm1964_vm2, %v1963_v5 }
0x255c PF: > { %p17_p8 = scmp.ge.s32.totalorder %s2534_s26, 4   ;;  %s3610_s21 = smov %s2459_s22 }
0x255d   : > { %s3611_s22 = smov %s2463_s23  ;;  %s3612_s23 = smov %s2544_s29 }
0x255e   : > { %s3613_s24 = smov %s2534_s26  ;;  %19 = sbr.rel (!%p17_p8) target bundleno = 4 (0x4), region = 89 }
0x2563   :  { %1995 = vsyncpa [#allocation3], 1 }
0x2564   :  { %1997 = vsyncpa [#allocation3 + $0x1], 1 }
0x2565   :  { %1998 = vsyncpa [#allocation5], 1 }

</bundles_post_ra>
